<compile_context>
chip_gen: v7x
topology: tpu7x:2x2x1
jax: 0.10.0
libtpu: 0.0.40
codegen_flags: <defaults>
</compile_context>

<pallas_src>
import functools

import jax
import jax.numpy as jnp
from jax.experimental import pallas as pl
from jax.experimental.pallas import tpu as pltpu

LEAKY_SLOPE = 0.2
BN_EPS = 0.8  # faithful to nn.BatchNorm1d(out_feat, 0.8): positional arg is eps
D_PAD = 128   # lane-dense padding of the final (.. ,1) discriminator layer


# ---------------------------------------------------------------------------
# In-kernel helpers (traced inside the Pallas bodies)
# ---------------------------------------------------------------------------


def _lrelu(y):
    return jnp.where(y > 0, y, LEAKY_SLOPE * y)


def _dot_bias(x_f32, w_ref, b_ref):
    """bf16 MXU matmul with f32 accumulation + f32 bias add."""
    y = jnp.dot(
        x_f32.astype(jnp.bfloat16),
        w_ref[...],  # stored bf16
        preferred_element_type=jnp.float32,
    )
    return y + b_ref[...]


def _bn_lrelu(y, g_ref, b_ref):
    """Training-mode BatchNorm1d (batch stats, biased var, eps=0.8) + LeakyReLU."""
    mean = jnp.mean(y, axis=0, keepdims=True)
    var = jnp.mean((y - mean) * (y - mean), axis=0, keepdims=True)
    yhat = (y - mean) * jax.lax.rsqrt(var + BN_EPS)
    return _lrelu(yhat * g_ref[...] + b_ref[...])


# ---------------------------------------------------------------------------
# Fused Pallas kernels
# ---------------------------------------------------------------------------


def _generator_kernel(
    z_ref,
    w1_ref, b1_ref,
    w2_ref, b2_ref, g2_ref, be2_ref,
    w3_ref, b3_ref, g3_ref, be3_ref,
    w4_ref, b4_ref, g4_ref, be4_ref,
    w5_ref, b5_ref,
    out_ref,
):
    """Full generator: z -> 128 -> 256 -> 512 -> 1024 -> img_flat (tanh)."""
    h = _lrelu(_dot_bias(z_ref[...].astype(jnp.float32), w1_ref, b1_ref))  # no BN
    h = _bn_lrelu(_dot_bias(h, w2_ref, b2_ref), g2_ref, be2_ref)
    h = _bn_lrelu(_dot_bias(h, w3_ref, b3_ref), g3_ref, be3_ref)
    h = _bn_lrelu(_dot_bias(h, w4_ref, b4_ref), g4_ref, be4_ref)
    out_ref[...] = jnp.tanh(_dot_bias(h, w5_ref, b5_ref)).astype(out_ref.dtype)


def _discriminator_kernel(
    xfake_ref, xreal_ref,
    w1_ref, b1_ref,
    w2_ref, b2_ref,
    w3_ref, b3_ref,
    out_ref,
    xcat_ref,  # VMEM scratch (2N, img_flat) f32
):
    """Full discriminator on [fake; real] (2N rows): img_flat->512->256->1(sigmoid).

    Safe to batch fake+real together: the discriminator has no BatchNorm, so
    rows are independent.  Last layer is padded to 128 lanes; only column 0
    carries the validity.
    """
    n = xfake_ref.shape[0]
    xcat_ref[:n, :] = xfake_ref[...]
    xcat_ref[n:, :] = xreal_ref[...]
    x = xcat_ref[...]

    h = _lrelu(_dot_bias(x, w1_ref, b1_ref))
    h = _lrelu(_dot_bias(h, w2_ref, b2_ref))
    out_ref[...] = jax.nn.sigmoid(_dot_bias(h, w3_ref, b3_ref)).astype(out_ref.dtype)


# ---------------------------------------------------------------------------
# pallas_call wrappers
# ---------------------------------------------------------------------------


def _full_spec(shape):
    nd = len(shape)
    return pl.BlockSpec(shape, lambda i, _nd=nd: (0,) * _nd)


def generator_forward(p, z):
    """z (N, latent) f32 -> flat generated image (N, img_flat) f32."""
    n = z.shape[0]
    img_flat = p["g5_b"].shape[-1]
    args = (
        z,
        p["g1_w"], p["g1_b"],
        p["g2_w"], p["g2_b"], p["bn2_g"], p["bn2_b"],
        p["g3_w"], p["g3_b"], p["bn3_g"], p["bn3_b"],
        p["g4_w"], p["g4_b"], p["bn4_g"], p["bn4_b"],
        p["g5_w"], p["g5_b"],
    )
    return pl.pallas_call(
        _generator_kernel,
        out_shape=jax.ShapeDtypeStruct((n, img_flat), jnp.float32),
        grid=(1,),
        in_specs=[_full_spec(a.shape) for a in args],
        out_specs=_full_spec((n, img_flat)),
        compiler_params=pltpu.CompilerParams(dimension_semantics=("arbitrary",)),
    )(*args)


def discriminator_forward_fake_real(p, fake_flat, real_flat):
    """Run D once on [fake; real]; returns (d_fake, d_real), each (N, 1) f32."""
    n, f = fake_flat.shape
    args = (
        fake_flat, real_flat,
        p["d1_w"], p["d1_b"],
        p["d2_w"], p["d2_b"],
        p["d3_w"], p["d3_b"],
    )
    out = pl.pallas_call(
        _discriminator_kernel,
        out_shape=jax.ShapeDtypeStruct((2 * n, D_PAD), jnp.float32),
        grid=(1,),
        in_specs=[_full_spec(a.shape) for a in args],
        out_specs=_full_spec((2 * n, D_PAD)),
        scratch_shapes=[pltpu.VMEM((2 * n, f), jnp.float32)],
        compiler_params=pltpu.CompilerParams(dimension_semantics=("arbitrary",)),
    )(*args)
    validity = out[:, :1]          # only lane 0 is meaningful
    return validity[:n], validity[n:]


def traingan_forward(p, z, real_img, img_shape):
    # TODO(synk): TrainGan.forward is `pass` in the source; this implements the
    # Generator->Discriminator pipeline that traingan() runs per step.
    n = z.shape[0]
    c, hgt, wid = img_shape

    gen_flat = generator_forward(p, z)                       # (N, C*H*W)
    real_flat = real_img.reshape(n, -1)                      # same as torch .view
    d_fake, d_real = discriminator_forward_fake_real(p, gen_flat, real_flat)

    gen_imgs = gen_flat.reshape(n, c, hgt, wid)              # NCHW, returned copy only
    return gen_imgs, d_fake, d_real


# ---------------------------------------------------------------------------
# Parameter construction (deterministic, PyTorch-default-like uniform init)
# ---------------------------------------------------------------------------


def _linear_params(key, in_f, out_f):
    kw, kb = jax.random.split(key)
    bound = 1.0 / (float(in_f) ** 0.5)
    # weight stored (in_f, out_f) bf16 so the kernel does x @ w on the MXU;
    # bias kept f32 (elementwise math stays f32).
    w = jax.random.uniform(kw, (in_f, out_f), jnp.float32, -bound, bound)
    b = jax.random.uniform(kb, (1, out_f), jnp.float32, -bound, bound)
    return w.astype(jnp.bfloat16), b


def make_params(key, latent_dim, img_flat):
    keys = jax.random.split(key, 8)
    p = {}
    # Generator: latent->128 (no BN), 128->256, 256->512, 512->1024, 1024->img
    p["g1_w"], p["g1_b"] = _linear_params(keys[0], latent_dim, 128)
    p["g2_w"], p["g2_b"] = _linear_params(keys[1], 128, 256)
    p["g3_w"], p["g3_b"] = _linear_params(keys[2], 256, 512)
    p["g4_w"], p["g4_b"] = _linear_params(keys[3], 512, 1024)
    p["g5_w"], p["g5_b"] = _linear_params(keys[4], 1024, img_flat)
    for name, f in (("bn2", 256), ("bn3", 512), ("bn4", 1024)):
        p[f"{name}_g"] = jnp.ones((1, f), jnp.float32)   # BatchNorm weight init
        p[f"{name}_b"] = jnp.zeros((1, f), jnp.float32)  # BatchNorm bias init
    # Discriminator: img->512, 512->256, 256->1
    p["d1_w"], p["d1_b"] = _linear_params(keys[5], img_flat, 512)
    p["d2_w"], p["d2_b"] = _linear_params(keys[6], 512, 256)
    w3, b3 = _linear_params(keys[7], 256, 1)
    # pad the 1-wide output layer to 128 lanes (lane-dense store); col 0 is real
    p["d3_w"] = jnp.zeros((256, D_PAD), jnp.bfloat16).at[:, :1].set(w3)
    p["d3_b"] = jnp.zeros((1, D_PAD), jnp.float32).at[:, :1].set(b3)
    return p


# ---------------------------------------------------------------------------
# Demo
# ---------------------------------------------------------------------------

if __name__ == "__main__":
    batch = 8
    latent_dim = 32
    channels, img_size = 1, 16
    img_shape = (channels, img_size, img_size)
    img_flat = channels * img_size * img_size  # 256

    key = jax.random.PRNGKey(0)
    k_params, k_z, k_img = jax.random.split(key, 3)

    params = make_params(k_params, latent_dim, img_flat)
    z = jax.random.normal(k_z, (batch, latent_dim), jnp.float32)
    real_img = jax.random.normal(k_img, (batch,) + img_shape, jnp.float32)

    fwd = jax.jit(functools.partial(traingan_forward, img_shape=img_shape))
    gen_imgs, d_fake, d_real = fwd(params, z, real_img)
    jax.block_until_ready((gen_imgs, d_fake, d_real))

    assert gen_imgs.shape == (batch,) + img_shape
    assert d_fake.shape == (batch, 1) and d_real.shape == (batch, 1)
    assert bool(jnp.all(jnp.isfinite(gen_imgs)))
    assert bool(jnp.all(jnp.abs(gen_imgs) <= 1.0))                 # tanh range
    assert bool(jnp.all((d_fake >= 0) & (d_fake <= 1)))
    assert bool(jnp.all((d_real >= 0) & (d_real <= 1)))
    print("KERNEL_OK")
</pallas_src>

<mosaic_0001>
module attributes {stable_mosaic.version = 11 : i64} {
  func.func @_discriminator_kernel(%arg0: i32, %arg1: memref<8x256xf32, #tpu.memory_space<vmem>>, %arg2: memref<8x256xf32, #tpu.memory_space<vmem>>, %arg3: memref<256x512xbf16, #tpu.memory_space<vmem>>, %arg4: memref<1x512xf32, #tpu.memory_space<vmem>>, %arg5: memref<512x256xbf16, #tpu.memory_space<vmem>>, %arg6: memref<1x256xf32, #tpu.memory_space<vmem>>, %arg7: memref<256x128xbf16, #tpu.memory_space<vmem>>, %arg8: memref<1x128xf32, #tpu.memory_space<vmem>>, %arg9: memref<16x128xf32, #tpu.memory_space<vmem>>, %arg10: memref<16x256xf32, #tpu.memory_space<vmem>>) attributes {dimension_semantics = [#tpu.dimension_semantics<arbitrary>], iteration_bounds = array<i64: 1>, scalar_prefetch = 0 : i64, scratch_operands = 1 : i64, tpu.core_type = #tpu.core_type<tc>, window_params = [{pipeline_mode = #tpu.pipeline_mode<synchronous>, transform_indices = @transform_0, window_bounds = array<i64: 8, 256>}, {pipeline_mode = #tpu.pipeline_mode<synchronous>, transform_indices = @transform_1, window_bounds = array<i64: 8, 256>}, {pipeline_mode = #tpu.pipeline_mode<synchronous>, transform_indices = @transform_2, window_bounds = array<i64: 256, 512>}, {pipeline_mode = #tpu.pipeline_mode<synchronous>, transform_indices = @transform_3, window_bounds = array<i64: 1, 512>}, {pipeline_mode = #tpu.pipeline_mode<synchronous>, transform_indices = @transform_4, window_bounds = array<i64: 512, 256>}, {pipeline_mode = #tpu.pipeline_mode<synchronous>, transform_indices = @transform_5, window_bounds = array<i64: 1, 256>}, {pipeline_mode = #tpu.pipeline_mode<synchronous>, transform_indices = @transform_6, window_bounds = array<i64: 256, 128>}, {pipeline_mode = #tpu.pipeline_mode<synchronous>, transform_indices = @transform_7, window_bounds = array<i64: 1, 128>}, {pipeline_mode = #tpu.pipeline_mode<synchronous>, transform_indices = @transform_8, window_bounds = array<i64: 16, 128>}]} {
    %c0 = arith.constant 0 : index
    %c0_0 = arith.constant 0 : index
    %0 = vector.load %arg1[%c0, %c0_0] : memref<8x256xf32, #tpu.memory_space<vmem>>, vector<8x256xf32>
    %c0_1 = arith.constant 0 : index
    %c0_2 = arith.constant 0 : index
    %1 = vector.load %arg10[%c0_1, %c0_2] : memref<16x256xf32, #tpu.memory_space<vmem>>, vector<8x256xf32>
    tpu.vector_store %arg10[%c0_1, %c0_2], %0 {strides = array<i32>} : memref<16x256xf32, #tpu.memory_space<vmem>>, vector<8x256xf32>,
    %c0_3 = arith.constant 0 : index
    %c0_4 = arith.constant 0 : index
    %2 = vector.load %arg2[%c0_3, %c0_4] : memref<8x256xf32, #tpu.memory_space<vmem>>, vector<8x256xf32>
    %c8 = arith.constant 8 : index
    %c0_5 = arith.constant 0 : index
    %3 = vector.load %arg10[%c8, %c0_5] : memref<16x256xf32, #tpu.memory_space<vmem>>, vector<8x256xf32>
    tpu.vector_store %arg10[%c8, %c0_5], %2 {strides = array<i32>} : memref<16x256xf32, #tpu.memory_space<vmem>>, vector<8x256xf32>,
    %c0_6 = arith.constant 0 : index
    %c0_7 = arith.constant 0 : index
    %4 = vector.load %arg10[%c0_6, %c0_7] : memref<16x256xf32, #tpu.memory_space<vmem>>, vector<16x256xf32>
    %5 = arith.truncf %4 : vector<16x256xf32> to vector<16x256xbf16>
    %c0_8 = arith.constant 0 : index
    %c0_9 = arith.constant 0 : index
    %6 = vector.load %arg3[%c0_8, %c0_9] : memref<256x512xbf16, #tpu.memory_space<vmem>>, vector<256x512xbf16>
    %cst = arith.constant dense<0.000000e+00> : vector<16x512xf32>
    %7 = tpu.matmul %5, %6, %cst {dimension_numbers = #tpu.dot_dimension_numbers<[1], [0], [0], [1], [0, 0, 1, 1], [], []>} : vector<16x256xbf16>, vector<256x512xbf16>, vector<16x512xf32> -> vector<16x512xf32>
    %c0_10 = arith.constant 0 : index
    %c0_11 = arith.constant 0 : index
    %8 = vector.load %arg4[%c0_10, %c0_11] : memref<1x512xf32, #tpu.memory_space<vmem>>, vector<1x512xf32>
    %9 = vector.broadcast %8 : vector<1x512xf32> to vector<16x512xf32>
    %10 = arith.addf %7, %9 : vector<16x512xf32>
    %cst_12 = arith.constant 0.000000e+00 : f32
    %11 = vector.broadcast %cst_12 : f32 to vector<16x512xf32>
    %12 = arith.cmpf ogt, %10, %11 : vector<16x512xf32>
    %cst_13 = arith.constant 2.000000e-01 : f32
    %13 = vector.broadcast %cst_13 : f32 to vector<16x512xf32>
    %14 = arith.mulf %13, %10 : vector<16x512xf32>
    %15 = arith.select %12, %10, %14 : vector<16x512xi1>, vector<16x512xf32>
    %16 = arith.truncf %15 : vector<16x512xf32> to vector<16x512xbf16>
    %c0_14 = arith.constant 0 : index
    %c0_15 = arith.constant 0 : index
    %17 = vector.load %arg5[%c0_14, %c0_15] : memref<512x256xbf16, #tpu.memory_space<vmem>>, vector<512x256xbf16>
    %cst_16 = arith.constant dense<0.000000e+00> : vector<16x256xf32>
    %18 = tpu.matmul %16, %17, %cst_16 {dimension_numbers = #tpu.dot_dimension_numbers<[1], [0], [0], [1], [0, 0, 1, 1], [], []>} : vector<16x512xbf16>, vector<512x256xbf16>, vector<16x256xf32> -> vector<16x256xf32>
    %c0_17 = arith.constant 0 : index
    %c0_18 = arith.constant 0 : index
    %19 = vector.load %arg6[%c0_17, %c0_18] : memref<1x256xf32, #tpu.memory_space<vmem>>, vector<1x256xf32>
    %20 = vector.broadcast %19 : vector<1x256xf32> to vector<16x256xf32>
    %21 = arith.addf %18, %20 : vector<16x256xf32>
    %cst_19 = arith.constant 0.000000e+00 : f32
    %22 = vector.broadcast %cst_19 : f32 to vector<16x256xf32>
    %23 = arith.cmpf ogt, %21, %22 : vector<16x256xf32>
    %cst_20 = arith.constant 2.000000e-01 : f32
    %24 = vector.broadcast %cst_20 : f32 to vector<16x256xf32>
    %25 = arith.mulf %24, %21 : vector<16x256xf32>
    %26 = arith.select %23, %21, %25 : vector<16x256xi1>, vector<16x256xf32>
    %27 = arith.truncf %26 : vector<16x256xf32> to vector<16x256xbf16>
    %c0_21 = arith.constant 0 : index
    %c0_22 = arith.constant 0 : index
    %28 = vector.load %arg7[%c0_21, %c0_22] : memref<256x128xbf16, #tpu.memory_space<vmem>>, vector<256x128xbf16>
    %cst_23 = arith.constant dense<0.000000e+00> : vector<16x128xf32>
    %29 = tpu.matmul %27, %28, %cst_23 {dimension_numbers = #tpu.dot_dimension_numbers<[1], [0], [0], [1], [0, 0, 1, 1], [], []>} : vector<16x256xbf16>, vector<256x128xbf16>, vector<16x128xf32> -> vector<16x128xf32>
    %c0_24 = arith.constant 0 : index
    %c0_25 = arith.constant 0 : index
    %30 = vector.load %arg8[%c0_24, %c0_25] : memref<1x128xf32, #tpu.memory_space<vmem>>, vector<1x128xf32>
    %31 = vector.broadcast %30 : vector<1x128xf32> to vector<16x128xf32>
    %32 = arith.addf %29, %31 : vector<16x128xf32>
    %33 = arith.negf %32 : vector<16x128xf32>
    %34 = math.exp %33 : vector<16x128xf32>
    %cst_26 = arith.constant 1.000000e+00 : f32
    %35 = vector.broadcast %cst_26 : f32 to vector<16x128xf32>
    %36 = arith.addf %35, %34 : vector<16x128xf32>
    %37 = arith.divf %35, %36 : vector<16x128xf32>
    %c0_27 = arith.constant 0 : index
    %c0_28 = arith.constant 0 : index
    %38 = vector.load %arg9[%c0_27, %c0_28] : memref<16x128xf32, #tpu.memory_space<vmem>>, vector<16x128xf32>
    tpu.vector_store %arg9[%c0_27, %c0_28], %37 {strides = array<i32>} : memref<16x128xf32, #tpu.memory_space<vmem>>, vector<16x128xf32>,
    return
  }
  func.func @transform_0(%arg0: i32) -> (i32, i32) {
    %c0_i32 = arith.constant 0 : i32
    %c0_i32_0 = arith.constant 0 : i32
    %c0_i32_1 = arith.constant 0 : i32
    return %c0_i32, %c0_i32_0 : i32, i32
  }
  func.func @transform_1(%arg0: i32) -> (i32, i32) {
    %c0_i32 = arith.constant 0 : i32
    %c0_i32_0 = arith.constant 0 : i32
    %c0_i32_1 = arith.constant 0 : i32
    return %c0_i32, %c0_i32_0 : i32, i32
  }
  func.func @transform_2(%arg0: i32) -> (i32, i32) {
    %c0_i32 = arith.constant 0 : i32
    %c0_i32_0 = arith.constant 0 : i32
    %c0_i32_1 = arith.constant 0 : i32
    return %c0_i32, %c0_i32_0 : i32, i32
  }
  func.func @transform_3(%arg0: i32) -> (i32, i32) {
    %c0_i32 = arith.constant 0 : i32
    %c0_i32_0 = arith.constant 0 : i32
    %c0_i32_1 = arith.constant 0 : i32
    return %c0_i32, %c0_i32_0 : i32, i32
  }
  func.func @transform_4(%arg0: i32) -> (i32, i32) {
    %c0_i32 = arith.constant 0 : i32
    %c0_i32_0 = arith.constant 0 : i32
    %c0_i32_1 = arith.constant 0 : i32
    return %c0_i32, %c0_i32_0 : i32, i32
  }
  func.func @transform_5(%arg0: i32) -> (i32, i32) {
    %c0_i32 = arith.constant 0 : i32
    %c0_i32_0 = arith.constant 0 : i32
    %c0_i32_1 = arith.constant 0 : i32
    return %c0_i32, %c0_i32_0 : i32, i32
  }
  func.func @transform_6(%arg0: i32) -> (i32, i32) {
    %c0_i32 = arith.constant 0 : i32
    %c0_i32_0 = arith.constant 0 : i32
    %c0_i32_1 = arith.constant 0 : i32
    return %c0_i32, %c0_i32_0 : i32, i32
  }
  func.func @transform_7(%arg0: i32) -> (i32, i32) {
    %c0_i32 = arith.constant 0 : i32
    %c0_i32_0 = arith.constant 0 : i32
    %c0_i32_1 = arith.constant 0 : i32
    return %c0_i32, %c0_i32_0 : i32, i32
  }
  func.func @transform_8(%arg0: i32) -> (i32, i32) {
    %c0_i32 = arith.constant 0 : i32
    %c0_i32_0 = arith.constant 0 : i32
    %c0_i32_1 = arith.constant 0 : i32
    return %c0_i32, %c0_i32_0 : i32, i32
  }
}

module attributes {stable_mosaic.version = 11 : i64} {
  func.func @_generator_kernel(%arg0: i32, %arg1: memref<8x32xf32, #tpu.memory_space<vmem>>, %arg2: memref<32x128xbf16, #tpu.memory_space<vmem>>, %arg3: memref<1x128xf32, #tpu.memory_space<vmem>>, %arg4: memref<128x256xbf16, #tpu.memory_space<vmem>>, %arg5: memref<1x256xf32, #tpu.memory_space<vmem>>, %arg6: memref<1x256xf32, #tpu.memory_space<vmem>>, %arg7: memref<1x256xf32, #tpu.memory_space<vmem>>, %arg8: memref<256x512xbf16, #tpu.memory_space<vmem>>, %arg9: memref<1x512xf32, #tpu.memory_space<vmem>>, %arg10: memref<1x512xf32, #tpu.memory_space<vmem>>, %arg11: memref<1x512xf32, #tpu.memory_space<vmem>>, %arg12: memref<512x1024xbf16, #tpu.memory_space<vmem>>, %arg13: memref<1x1024xf32, #tpu.memory_space<vmem>>, %arg14: memref<1x1024xf32, #tpu.memory_space<vmem>>, %arg15: memref<1x1024xf32, #tpu.memory_space<vmem>>, %arg16: memref<1024x256xbf16, #tpu.memory_space<vmem>>, %arg17: memref<1x256xf32, #tpu.memory_space<vmem>>, %arg18: memref<8x256xf32, #tpu.memory_space<vmem>>) attributes {dimension_semantics = [#tpu.dimension_semantics<arbitrary>], iteration_bounds = array<i64: 1>, scalar_prefetch = 0 : i64, scratch_operands = 0 : i64, tpu.core_type = #tpu.core_type<tc>, window_params = [{pipeline_mode = #tpu.pipeline_mode<synchronous>, transform_indices = @transform_0, window_bounds = array<i64: 8, 32>}, {pipeline_mode = #tpu.pipeline_mode<synchronous>, transform_indices = @transform_1, window_bounds = array<i64: 32, 128>}, {pipeline_mode = #tpu.pipeline_mode<synchronous>, transform_indices = @transform_2, window_bounds = array<i64: 1, 128>}, {pipeline_mode = #tpu.pipeline_mode<synchronous>, transform_indices = @transform_3, window_bounds = array<i64: 128, 256>}, {pipeline_mode = #tpu.pipeline_mode<synchronous>, transform_indices = @transform_4, window_bounds = array<i64: 1, 256>}, {pipeline_mode = #tpu.pipeline_mode<synchronous>, transform_indices = @transform_5, window_bounds = array<i64: 1, 256>}, {pipeline_mode = #tpu.pipeline_mode<synchronous>, transform_indices = @transform_6, window_bounds = array<i64: 1, 256>}, {pipeline_mode = #tpu.pipeline_mode<synchronous>, transform_indices = @transform_7, window_bounds = array<i64: 256, 512>}, {pipeline_mode = #tpu.pipeline_mode<synchronous>, transform_indices = @transform_8, window_bounds = array<i64: 1, 512>}, {pipeline_mode = #tpu.pipeline_mode<synchronous>, transform_indices = @transform_9, window_bounds = array<i64: 1, 512>}, {pipeline_mode = #tpu.pipeline_mode<synchronous>, transform_indices = @transform_10, window_bounds = array<i64: 1, 512>}, {pipeline_mode = #tpu.pipeline_mode<synchronous>, transform_indices = @transform_11, window_bounds = array<i64: 512, 1024>}, {pipeline_mode = #tpu.pipeline_mode<synchronous>, transform_indices = @transform_12, window_bounds = array<i64: 1, 1024>}, {pipeline_mode = #tpu.pipeline_mode<synchronous>, transform_indices = @transform_13, window_bounds = array<i64: 1, 1024>}, {pipeline_mode = #tpu.pipeline_mode<synchronous>, transform_indices = @transform_14, window_bounds = array<i64: 1, 1024>}, {pipeline_mode = #tpu.pipeline_mode<synchronous>, transform_indices = @transform_15, window_bounds = array<i64: 1024, 256>}, {pipeline_mode = #tpu.pipeline_mode<synchronous>, transform_indices = @transform_16, window_bounds = array<i64: 1, 256>}, {pipeline_mode = #tpu.pipeline_mode<synchronous>, transform_indices = @transform_17, window_bounds = array<i64: 8, 256>}]} {
    %c0 = arith.constant 0 : index
    %c0_0 = arith.constant 0 : index
    %0 = vector.load %arg1[%c0, %c0_0] : memref<8x32xf32, #tpu.memory_space<vmem>>, vector<8x32xf32>
    %1 = arith.truncf %0 : vector<8x32xf32> to vector<8x32xbf16>
    %c0_1 = arith.constant 0 : index
    %c0_2 = arith.constant 0 : index
    %2 = vector.load %arg2[%c0_1, %c0_2] : memref<32x128xbf16, #tpu.memory_space<vmem>>, vector<32x128xbf16>
    %cst = arith.constant dense<0.000000e+00> : vector<8x128xf32>
    %3 = tpu.matmul %1, %2, %cst {dimension_numbers = #tpu.dot_dimension_numbers<[1], [0], [0], [1], [0, 0, 1, 1], [], []>} : vector<8x32xbf16>, vector<32x128xbf16>, vector<8x128xf32> -> vector<8x128xf32>
    %c0_3 = arith.constant 0 : index
    %c0_4 = arith.constant 0 : index
    %4 = vector.load %arg3[%c0_3, %c0_4] : memref<1x128xf32, #tpu.memory_space<vmem>>, vector<1x128xf32>
    %5 = vector.broadcast %4 : vector<1x128xf32> to vector<8x128xf32>
    %6 = arith.addf %3, %5 : vector<8x128xf32>
    %cst_5 = arith.constant 0.000000e+00 : f32
    %7 = vector.broadcast %cst_5 : f32 to vector<8x128xf32>
    %8 = arith.cmpf ogt, %6, %7 : vector<8x128xf32>
    %cst_6 = arith.constant 2.000000e-01 : f32
    %9 = vector.broadcast %cst_6 : f32 to vector<8x128xf32>
    %10 = arith.mulf %9, %6 : vector<8x128xf32>
    %11 = arith.select %8, %6, %10 : vector<8x128xi1>, vector<8x128xf32>
    %12 = arith.truncf %11 : vector<8x128xf32> to vector<8x128xbf16>
    %c0_7 = arith.constant 0 : index
    %c0_8 = arith.constant 0 : index
    %13 = vector.load %arg4[%c0_7, %c0_8] : memref<128x256xbf16, #tpu.memory_space<vmem>>, vector<128x256xbf16>
    %cst_9 = arith.constant dense<0.000000e+00> : vector<8x256xf32>
    %14 = tpu.matmul %12, %13, %cst_9 {dimension_numbers = #tpu.dot_dimension_numbers<[1], [0], [0], [1], [0, 0, 1, 1], [], []>} : vector<8x128xbf16>, vector<128x256xbf16>, vector<8x256xf32> -> vector<8x256xf32>
    %c0_10 = arith.constant 0 : index
    %c0_11 = arith.constant 0 : index
    %15 = vector.load %arg5[%c0_10, %c0_11] : memref<1x256xf32, #tpu.memory_space<vmem>>, vector<1x256xf32>
    %16 = vector.broadcast %15 : vector<1x256xf32> to vector<8x256xf32>
    %17 = arith.addf %14, %16 : vector<8x256xf32>
    %cst_12 = arith.constant dense<0.000000e+00> : vector<256xf32>
    %18 = vector.multi_reduction <add>, %17, %cst_12 [0] : vector<8x256xf32> to vector<256xf32>
    %19 = vector.shape_cast %18 : vector<256xf32> to vector<1x256xf32>
    %cst_13 = arith.constant 8.000000e+00 : f32
    %20 = vector.broadcast %cst_13 : f32 to vector<1x256xf32>
    %21 = arith.divf %19, %20 : vector<1x256xf32>
    %22 = vector.broadcast %21 : vector<1x256xf32> to vector<8x256xf32>
    %23 = arith.subf %17, %22 : vector<8x256xf32>
    %24 = vector.broadcast %21 : vector<1x256xf32> to vector<8x256xf32>
    %25 = arith.subf %17, %24 : vector<8x256xf32>
    %26 = arith.mulf %23, %25 : vector<8x256xf32>
    %cst_14 = arith.constant dense<0.000000e+00> : vector<256xf32>
    %27 = vector.multi_reduction <add>, %26, %cst_14 [0] : vector<8x256xf32> to vector<256xf32>
    %28 = vector.shape_cast %27 : vector<256xf32> to vector<1x256xf32>
    %cst_15 = arith.constant 8.000000e+00 : f32
    %29 = vector.broadcast %cst_15 : f32 to vector<1x256xf32>
    %30 = arith.divf %28, %29 : vector<1x256xf32>
    %31 = vector.broadcast %21 : vector<1x256xf32> to vector<8x256xf32>
    %32 = arith.subf %17, %31 : vector<8x256xf32>
    %cst_16 = arith.constant 8.000000e-01 : f32
    %33 = vector.broadcast %cst_16 : f32 to vector<1x256xf32>
    %34 = arith.addf %30, %33 : vector<1x256xf32>
    %35 = math.rsqrt %34 : vector<1x256xf32>
    %36 = vector.broadcast %35 : vector<1x256xf32> to vector<8x256xf32>
    %37 = arith.mulf %32, %36 : vector<8x256xf32>
    %c0_17 = arith.constant 0 : index
    %c0_18 = arith.constant 0 : index
    %38 = vector.load %arg6[%c0_17, %c0_18] : memref<1x256xf32, #tpu.memory_space<vmem>>, vector<1x256xf32>
    %39 = vector.broadcast %38 : vector<1x256xf32> to vector<8x256xf32>
    %40 = arith.mulf %37, %39 : vector<8x256xf32>
    %c0_19 = arith.constant 0 : index
    %c0_20 = arith.constant 0 : index
    %41 = vector.load %arg7[%c0_19, %c0_20] : memref<1x256xf32, #tpu.memory_space<vmem>>, vector<1x256xf32>
    %42 = vector.broadcast %41 : vector<1x256xf32> to vector<8x256xf32>
    %43 = arith.addf %40, %42 : vector<8x256xf32>
    %cst_21 = arith.constant 0.000000e+00 : f32
    %44 = vector.broadcast %cst_21 : f32 to vector<8x256xf32>
    %45 = arith.cmpf ogt, %43, %44 : vector<8x256xf32>
    %cst_22 = arith.constant 2.000000e-01 : f32
    %46 = vector.broadcast %cst_22 : f32 to vector<8x256xf32>
    %47 = arith.mulf %46, %43 : vector<8x256xf32>
    %48 = arith.select %45, %43, %47 : vector<8x256xi1>, vector<8x256xf32>
    %49 = arith.truncf %48 : vector<8x256xf32> to vector<8x256xbf16>
    %c0_23 = arith.constant 0 : index
    %c0_24 = arith.constant 0 : index
    %50 = vector.load %arg8[%c0_23, %c0_24] : memref<256x512xbf16, #tpu.memory_space<vmem>>, vector<256x512xbf16>
    %cst_25 = arith.constant dense<0.000000e+00> : vector<8x512xf32>
    %51 = tpu.matmul %49, %50, %cst_25 {dimension_numbers = #tpu.dot_dimension_numbers<[1], [0], [0], [1], [0, 0, 1, 1], [], []>} : vector<8x256xbf16>, vector<256x512xbf16>, vector<8x512xf32> -> vector<8x512xf32>
    %c0_26 = arith.constant 0 : index
    %c0_27 = arith.constant 0 : index
    %52 = vector.load %arg9[%c0_26, %c0_27] : memref<1x512xf32, #tpu.memory_space<vmem>>, vector<1x512xf32>
    %53 = vector.broadcast %52 : vector<1x512xf32> to vector<8x512xf32>
    %54 = arith.addf %51, %53 : vector<8x512xf32>
    %cst_28 = arith.constant dense<0.000000e+00> : vector<512xf32>
    %55 = vector.multi_reduction <add>, %54, %cst_28 [0] : vector<8x512xf32> to vector<512xf32>
    %56 = vector.shape_cast %55 : vector<512xf32> to vector<1x512xf32>
    %cst_29 = arith.constant 8.000000e+00 : f32
    %57 = vector.broadcast %cst_29 : f32 to vector<1x512xf32>
    %58 = arith.divf %56, %57 : vector<1x512xf32>
    %59 = vector.broadcast %58 : vector<1x512xf32> to vector<8x512xf32>
    %60 = arith.subf %54, %59 : vector<8x512xf32>
    %61 = vector.broadcast %58 : vector<1x512xf32> to vector<8x512xf32>
    %62 = arith.subf %54, %61 : vector<8x512xf32>
    %63 = arith.mulf %60, %62 : vector<8x512xf32>
    %cst_30 = arith.constant dense<0.000000e+00> : vector<512xf32>
    %64 = vector.multi_reduction <add>, %63, %cst_30 [0] : vector<8x512xf32> to vector<512xf32>
    %65 = vector.shape_cast %64 : vector<512xf32> to vector<1x512xf32>
    %cst_31 = arith.constant 8.000000e+00 : f32
    %66 = vector.broadcast %cst_31 : f32 to vector<1x512xf32>
    %67 = arith.divf %65, %66 : vector<1x512xf32>
    %68 = vector.broadcast %58 : vector<1x512xf32> to vector<8x512xf32>
    %69 = arith.subf %54, %68 : vector<8x512xf32>
    %cst_32 = arith.constant 8.000000e-01 : f32
    %70 = vector.broadcast %cst_32 : f32 to vector<1x512xf32>
    %71 = arith.addf %67, %70 : vector<1x512xf32>
    %72 = math.rsqrt %71 : vector<1x512xf32>
    %73 = vector.broadcast %72 : vector<1x512xf32> to vector<8x512xf32>
    %74 = arith.mulf %69, %73 : vector<8x512xf32>
    %c0_33 = arith.constant 0 : index
    %c0_34 = arith.constant 0 : index
    %75 = vector.load %arg10[%c0_33, %c0_34] : memref<1x512xf32, #tpu.memory_space<vmem>>, vector<1x512xf32>
    %76 = vector.broadcast %75 : vector<1x512xf32> to vector<8x512xf32>
    %77 = arith.mulf %74, %76 : vector<8x512xf32>
    %c0_35 = arith.constant 0 : index
    %c0_36 = arith.constant 0 : index
    %78 = vector.load %arg11[%c0_35, %c0_36] : memref<1x512xf32, #tpu.memory_space<vmem>>, vector<1x512xf32>
    %79 = vector.broadcast %78 : vector<1x512xf32> to vector<8x512xf32>
    %80 = arith.addf %77, %79 : vector<8x512xf32>
    %cst_37 = arith.constant 0.000000e+00 : f32
    %81 = vector.broadcast %cst_37 : f32 to vector<8x512xf32>
    %82 = arith.cmpf ogt, %80, %81 : vector<8x512xf32>
    %cst_38 = arith.constant 2.000000e-01 : f32
    %83 = vector.broadcast %cst_38 : f32 to vector<8x512xf32>
    %84 = arith.mulf %83, %80 : vector<8x512xf32>
    %85 = arith.select %82, %80, %84 : vector<8x512xi1>, vector<8x512xf32>
    %86 = arith.truncf %85 : vector<8x512xf32> to vector<8x512xbf16>
    %c0_39 = arith.constant 0 : index
    %c0_40 = arith.constant 0 : index
    %87 = vector.load %arg12[%c0_39, %c0_40] : memref<512x1024xbf16, #tpu.memory_space<vmem>>, vector<512x1024xbf16>
    %cst_41 = arith.constant dense<0.000000e+00> : vector<8x1024xf32>
    %88 = tpu.matmul %86, %87, %cst_41 {dimension_numbers = #tpu.dot_dimension_numbers<[1], [0], [0], [1], [0, 0, 1, 1], [], []>} : vector<8x512xbf16>, vector<512x1024xbf16>, vector<8x1024xf32> -> vector<8x1024xf32>
    %c0_42 = arith.constant 0 : index
    %c0_43 = arith.constant 0 : index
    %89 = vector.load %arg13[%c0_42, %c0_43] : memref<1x1024xf32, #tpu.memory_space<vmem>>, vector<1x1024xf32>
    %90 = vector.broadcast %89 : vector<1x1024xf32> to vector<8x1024xf32>
    %91 = arith.addf %88, %90 : vector<8x1024xf32>
    %cst_44 = arith.constant dense<0.000000e+00> : vector<1024xf32>
    %92 = vector.multi_reduction <add>, %91, %cst_44 [0] : vector<8x1024xf32> to vector<1024xf32>
    %93 = vector.shape_cast %92 : vector<1024xf32> to vector<1x1024xf32>
    %cst_45 = arith.constant 8.000000e+00 : f32
    %94 = vector.broadcast %cst_45 : f32 to vector<1x1024xf32>
    %95 = arith.divf %93, %94 : vector<1x1024xf32>
    %96 = vector.broadcast %95 : vector<1x1024xf32> to vector<8x1024xf32>
    %97 = arith.subf %91, %96 : vector<8x1024xf32>
    %98 = vector.broadcast %95 : vector<1x1024xf32> to vector<8x1024xf32>
    %99 = arith.subf %91, %98 : vector<8x1024xf32>
    %100 = arith.mulf %97, %99 : vector<8x1024xf32>
    %cst_46 = arith.constant dense<0.000000e+00> : vector<1024xf32>
    %101 = vector.multi_reduction <add>, %100, %cst_46 [0] : vector<8x1024xf32> to vector<1024xf32>
    %102 = vector.shape_cast %101 : vector<1024xf32> to vector<1x1024xf32>
    %cst_47 = arith.constant 8.000000e+00 : f32
    %103 = vector.broadcast %cst_47 : f32 to vector<1x1024xf32>
    %104 = arith.divf %102, %103 : vector<1x1024xf32>
    %105 = vector.broadcast %95 : vector<1x1024xf32> to vector<8x1024xf32>
    %106 = arith.subf %91, %105 : vector<8x1024xf32>
    %cst_48 = arith.constant 8.000000e-01 : f32
    %107 = vector.broadcast %cst_48 : f32 to vector<1x1024xf32>
    %108 = arith.addf %104, %107 : vector<1x1024xf32>
    %109 = math.rsqrt %108 : vector<1x1024xf32>
    %110 = vector.broadcast %109 : vector<1x1024xf32> to vector<8x1024xf32>
    %111 = arith.mulf %106, %110 : vector<8x1024xf32>
    %c0_49 = arith.constant 0 : index
    %c0_50 = arith.constant 0 : index
    %112 = vector.load %arg14[%c0_49, %c0_50] : memref<1x1024xf32, #tpu.memory_space<vmem>>, vector<1x1024xf32>
    %113 = vector.broadcast %112 : vector<1x1024xf32> to vector<8x1024xf32>
    %114 = arith.mulf %111, %113 : vector<8x1024xf32>
    %c0_51 = arith.constant 0 : index
    %c0_52 = arith.constant 0 : index
    %115 = vector.load %arg15[%c0_51, %c0_52] : memref<1x1024xf32, #tpu.memory_space<vmem>>, vector<1x1024xf32>
    %116 = vector.broadcast %115 : vector<1x1024xf32> to vector<8x1024xf32>
    %117 = arith.addf %114, %116 : vector<8x1024xf32>
    %cst_53 = arith.constant 0.000000e+00 : f32
    %118 = vector.broadcast %cst_53 : f32 to vector<8x1024xf32>
    %119 = arith.cmpf ogt, %117, %118 : vector<8x1024xf32>
    %cst_54 = arith.constant 2.000000e-01 : f32
    %120 = vector.broadcast %cst_54 : f32 to vector<8x1024xf32>
    %121 = arith.mulf %120, %117 : vector<8x1024xf32>
    %122 = arith.select %119, %117, %121 : vector<8x1024xi1>, vector<8x1024xf32>
    %123 = arith.truncf %122 : vector<8x1024xf32> to vector<8x1024xbf16>
    %c0_55 = arith.constant 0 : index
    %c0_56 = arith.constant 0 : index
    %124 = vector.load %arg16[%c0_55, %c0_56] : memref<1024x256xbf16, #tpu.memory_space<vmem>>, vector<1024x256xbf16>
    %cst_57 = arith.constant dense<0.000000e+00> : vector<8x256xf32>
    %125 = tpu.matmul %123, %124, %cst_57 {dimension_numbers = #tpu.dot_dimension_numbers<[1], [0], [0], [1], [0, 0, 1, 1], [], []>} : vector<8x1024xbf16>, vector<1024x256xbf16>, vector<8x256xf32> -> vector<8x256xf32>
    %c0_58 = arith.constant 0 : index
    %c0_59 = arith.constant 0 : index
    %126 = vector.load %arg17[%c0_58, %c0_59] : memref<1x256xf32, #tpu.memory_space<vmem>>, vector<1x256xf32>
    %127 = vector.broadcast %126 : vector<1x256xf32> to vector<8x256xf32>
    %128 = arith.addf %125, %127 : vector<8x256xf32>
    %129 = math.tanh %128 : vector<8x256xf32>
    %c0_60 = arith.constant 0 : index
    %c0_61 = arith.constant 0 : index
    %130 = vector.load %arg18[%c0_60, %c0_61] : memref<8x256xf32, #tpu.memory_space<vmem>>, vector<8x256xf32>
    tpu.vector_store %arg18[%c0_60, %c0_61], %129 {strides = array<i32>} : memref<8x256xf32, #tpu.memory_space<vmem>>, vector<8x256xf32>,
    return
  }
  func.func @transform_0(%arg0: i32) -> (i32, i32) {
    %c0_i32 = arith.constant 0 : i32
    %c0_i32_0 = arith.constant 0 : i32
    %c0_i32_1 = arith.constant 0 : i32
    return %c0_i32, %c0_i32_0 : i32, i32
  }
  func.func @transform_1(%arg0: i32) -> (i32, i32) {
    %c0_i32 = arith.constant 0 : i32
    %c0_i32_0 = arith.constant 0 : i32
    %c0_i32_1 = arith.constant 0 : i32
    return %c0_i32, %c0_i32_0 : i32, i32
  }
  func.func @transform_2(%arg0: i32) -> (i32, i32) {
    %c0_i32 = arith.constant 0 : i32
    %c0_i32_0 = arith.constant 0 : i32
    %c0_i32_1 = arith.constant 0 : i32
    return %c0_i32, %c0_i32_0 : i32, i32
  }
  func.func @transform_3(%arg0: i32) -> (i32, i32) {
    %c0_i32 = arith.constant 0 : i32
    %c0_i32_0 = arith.constant 0 : i32
    %c0_i32_1 = arith.constant 0 : i32
    return %c0_i32, %c0_i32_0 : i32, i32
  }
  func.func @transform_4(%arg0: i32) -> (i32, i32) {
    %c0_i32 = arith.constant 0 : i32
    %c0_i32_0 = arith.constant 0 : i32
    %c0_i32_1 = arith.constant 0 : i32
    return %c0_i32, %c0_i32_0 : i32, i32
  }
  func.func @transform_5(%arg0: i32) -> (i32, i32) {
    %c0_i32 = arith.constant 0 : i32
    %c0_i32_0 = arith.constant 0 : i32
    %c0_i32_1 = arith.constant 0 : i32
    return %c0_i32, %c0_i32_0 : i32, i32
  }
  func.func @transform_6(%arg0: i32) -> (i32, i32) {
    %c0_i32 = arith.constant 0 : i32
    %c0_i32_0 = arith.constant 0 : i32
    %c0_i32_1 = arith.constant 0 : i32
    return %c0_i32, %c0_i32_0 : i32, i32
  }
  func.func @transform_7(%arg0: i32) -> (i32, i32) {
    %c0_i32 = arith.constant 0 : i32
    %c0_i32_0 = arith.constant 0 : i32
    %c0_i32_1 = arith.constant 0 : i32
    return %c0_i32, %c0_i32_0 : i32, i32
  }
  func.func @transform_8(%arg0: i32) -> (i32, i32) {
    %c0_i32 = arith.constant 0 : i32
    %c0_i32_0 = arith.constant 0 : i32
    %c0_i32_1 = arith.constant 0 : i32
    return %c0_i32, %c0_i32_0 : i32, i32
  }
  func.func @transform_9(%arg0: i32) -> (i32, i32) {
    %c0_i32 = arith.constant 0 : i32
    %c0_i32_0 = arith.constant 0 : i32
    %c0_i32_1 = arith.constant 0 : i32
    return %c0_i32, %c0_i32_0 : i32, i32
  }
  func.func @transform_10(%arg0: i32) -> (i32, i32) {
    %c0_i32 = arith.constant 0 : i32
    %c0_i32_0 = arith.constant 0 : i32
    %c0_i32_1 = arith.constant 0 : i32
    return %c0_i32, %c0_i32_0 : i32, i32
  }
  func.func @transform_11(%arg0: i32) -> (i32, i32) {
    %c0_i32 = arith.constant 0 : i32
    %c0_i32_0 = arith.constant 0 : i32
    %c0_i32_1 = arith.constant 0 : i32
    return %c0_i32, %c0_i32_0 : i32, i32
  }
  func.func @transform_12(%arg0: i32) -> (i32, i32) {
    %c0_i32 = arith.constant 0 : i32
    %c0_i32_0 = arith.constant 0 : i32
    %c0_i32_1 = arith.constant 0 : i32
    return %c0_i32, %c0_i32_0 : i32, i32
  }
  func.func @transform_13(%arg0: i32) -> (i32, i32) {
    %c0_i32 = arith.constant 0 : i32
    %c0_i32_0 = arith.constant 0 : i32
    %c0_i32_1 = arith.constant 0 : i32
    return %c0_i32, %c0_i32_0 : i32, i32
  }
  func.func @transform_14(%arg0: i32) -> (i32, i32) {
    %c0_i32 = arith.constant 0 : i32
    %c0_i32_0 = arith.constant 0 : i32
    %c0_i32_1 = arith.constant 0 : i32
    return %c0_i32, %c0_i32_0 : i32, i32
  }
  func.func @transform_15(%arg0: i32) -> (i32, i32) {
    %c0_i32 = arith.constant 0 : i32
    %c0_i32_0 = arith.constant 0 : i32
    %c0_i32_1 = arith.constant 0 : i32
    return %c0_i32, %c0_i32_0 : i32, i32
  }
  func.func @transform_16(%arg0: i32) -> (i32, i32) {
    %c0_i32 = arith.constant 0 : i32
    %c0_i32_0 = arith.constant 0 : i32
    %c0_i32_1 = arith.constant 0 : i32
    return %c0_i32, %c0_i32_0 : i32, i32
  }
  func.func @transform_17(%arg0: i32) -> (i32, i32) {
    %c0_i32 = arith.constant 0 : i32
    %c0_i32_0 = arith.constant 0 : i32
    %c0_i32_1 = arith.constant 0 : i32
    return %c0_i32, %c0_i32_0 : i32, i32
  }
}

</mosaic_0001>

<bundles_post_ra>
// kernel: traingan_forward.3
= control target key start
LH: loop header
LB: loop body
LE: loop exit
PB: predicated region body
PF: predicated region fallthrough
CT: control target
= control target key end

     0   :  { %s2179_s2 = inlined_call_operand.vmem [shape: bf16[256,512], index: 2, kind: input, shape index: {}]   ;;  %s2180_s0 = inlined_call_operand.vmem [shape: f32[8,256], index: 0, kind: input, shape index: {}]   ;;  %s2181_s1 = inlined_call_operand.vmem [shape: f32[8,256], index: 1, kind: input, shape index: {}]   ;;  %s2182_s4 = inlined_call_operand.vmem [shape: bf16[512,256], index: 4, kind: input, shape index: {}]   ;;  %s2183_s6 = inlined_call_operand.vmem [shape: bf16[256,128], index: 6, kind: input, shape index: {}]   ;;  %s2184_s3 = inlined_call_operand.vmem [shape: f32[1,512], index: 3, kind: input, shape index: {}]   ;;  %s2185_s5 = inlined_call_operand.vmem [shape: f32[1,256], index: 5, kind: input, shape index: {}]   ;;  %s2186_s7 = inlined_call_operand.vmem [shape: f32[1,128], index: 7, kind: input, shape index: {}]   ;;  %s2187_s8 = inlined_call_operand.vmem [shape: f32[16,128], index: 8, kind: output, shape index: {}]  }
   0x1   :  { %v1431_v0 = vld [vmem:[%s2179_s2 + $0x4] ss:$16 sps:$4 sm:$0xff]   ;;  %v1433_v1 = vld [vmem:[%s2179_s2] ss:$16 sps:$4 sm:$0xff]   ;;  %v31_v13 = vld [vmem:[%s2180_s0 + $0x8] sm:$0xff] }
   0x2   :  { %450 = vmatprep.subr.bf16.mxu1 %v1431_v0  ;;  %v1434_v2 = vld [vmem:[%s2179_s2 + $0x24] ss:$16 sps:$4 sm:$0xff]   ;;  %v1436_v3 = vld [vmem:[%s2179_s2 + $0x20] ss:$16 sps:$4 sm:$0xff]   ;;  %v35_v14 = vld [vmem:[%s2181_s1 + $0x8] sm:$0xff] }
   0x3   :  { %451 = vmatpush1.bf16.msra.mxu1 %v1433_v1  ;;  %v1437_v4 = vld [vmem:[%s2179_s2 + $0x44] ss:$16 sps:$4 sm:$0xff]   ;;  %v1439_v5 = vld [vmem:[%s2179_s2 + $0x40] ss:$16 sps:$4 sm:$0xff]   ;;  %v1740_v16 = vpack.c.bf16 %v35_v14, %v31_v13  ;;  %v1481_v46 = vld [vmem:[%s2179_s2 + $0xc] ss:$16 sps:$4 sm:$0xff]  }
   0x4   :  { %452 = vmatprep.subr.bf16.mxu1 %v1434_v2  ;;  %v1440_v6 = vld [vmem:[%s2179_s2 + $0x64] ss:$16 sps:$4 sm:$0xff]   ;;  %v1442_v7 = vld [vmem:[%s2179_s2 + $0x60] ss:$16 sps:$4 sm:$0xff]   ;;  %v1479_v49 = vld [vmem:[%s2179_s2 + $0x8] ss:$16 sps:$4 sm:$0xff]  }
   0x5   :  { %v1443_v8 = vld [vmem:[%s2179_s2 + $0x84] ss:$16 sps:$4 sm:$0xff]   ;;  %v1445_v9 = vld [vmem:[%s2179_s2 + $0x80] ss:$16 sps:$4 sm:$0xff]   ;;  %482 = vmatprep.mubr.bf16.mxu1 %v1740_v16  ;;  %v1484_v51 = vld [vmem:[%s2179_s2 + $0x2c] ss:$16 sps:$4 sm:$0xff]  }
   0x6   :  { %v1446_v10 = vld [vmem:[%s2179_s2 + $0xa4] ss:$16 sps:$4 sm:$0xff]   ;;  %v1448_v11 = vld [vmem:[%s2179_s2 + $0xa0] ss:$16 sps:$4 sm:$0xff]   ;;  %v1482_v54 = vld [vmem:[%s2179_s2 + $0x28] ss:$16 sps:$4 sm:$0xff]  }
   0x7   :  { %453 = vmatpush1.bf16.msra.mxu1 %v1436_v3  ;;  %v1449_v12 = vld [vmem:[%s2179_s2 + $0xc4] ss:$16 sps:$4 sm:$0xff]   ;;  %v1451_v15 = vld [vmem:[%s2179_s2 + $0xc0] ss:$16 sps:$4 sm:$0xff]   ;;  %v1487_v55 = vld [vmem:[%s2179_s2 + $0x4c] ss:$16 sps:$4 sm:$0xff]  }
   0x8   :  { %454 = vmatprep.subr.bf16.mxu1 %v1437_v4  ;;  %v1452_v17 = vld [vmem:[%s2179_s2 + $0xe4] ss:$16 sps:$4 sm:$0xff]   ;;  %v1454_v18 = vld [vmem:[%s2179_s2 + $0xe0] ss:$16 sps:$4 sm:$0xff]   ;;  %v1485_v58 = vld [vmem:[%s2179_s2 + $0x48] ss:$16 sps:$4 sm:$0xff]  }
   0x9   :  { %v1455_v19 = vld [vmem:[%s2179_s2 + $0x104] ss:$16 sps:$4 sm:$0xff]   ;;  %v1457_v20 = vld [vmem:[%s2179_s2 + $0x100] ss:$16 sps:$4 sm:$0xff]   ;;  %v1490_v59 = vld [vmem:[%s2179_s2 + $0x6c] ss:$16 sps:$4 sm:$0xff]  }
   0xa   :  { %v1458_v21 = vld [vmem:[%s2179_s2 + $0x124] ss:$16 sps:$4 sm:$0xff]   ;;  %v1460_v22 = vld [vmem:[%s2179_s2 + $0x120] ss:$16 sps:$4 sm:$0xff]   ;;  %v1488_v62 = vld [vmem:[%s2179_s2 + $0x68] ss:$16 sps:$4 sm:$0xff]  }
   0xb   :  { %455 = vmatpush1.bf16.msra.mxu1 %v1439_v5  ;;  %v1461_v23 = vld [vmem:[%s2179_s2 + $0x144] ss:$16 sps:$4 sm:$0xff]   ;;  %v1463_v24 = vld [vmem:[%s2179_s2 + $0x140] ss:$16 sps:$4 sm:$0xff]   ;;  %v1493_v63 = vld [vmem:[%s2179_s2 + $0x8c] ss:$16 sps:$4 sm:$0xff]  }
   0xc   :  { %456 = vmatprep.subr.bf16.mxu1 %v1440_v6  ;;  %v1464_v25 = vld [vmem:[%s2179_s2 + $0x164] ss:$16 sps:$4 sm:$0xff]   ;;  %v1466_v26 = vld [vmem:[%s2179_s2 + $0x160] ss:$16 sps:$4 sm:$0xff]   ;;  %v1491_v2 = vld [vmem:[%s2179_s2 + $0x88] ss:$16 sps:$4 sm:$0xff]  }
   0xd   :  { %v1467_v27 = vld [vmem:[%s2179_s2 + $0x184] ss:$16 sps:$4 sm:$0xff]   ;;  %v1529_v29 = vld [vmem:[%s2182_s4] ss:$8 sps:$4 sm:$0xff]   ;;  %v1532_v33 = vld [vmem:[%s2182_s4 + $0x10] ss:$8 sps:$4 sm:$0xff]  }
   0xe   :  { %v1527_v28 = vld [vmem:[%s2182_s4 + $0x4] ss:$8 sps:$4 sm:$0xff]   ;;  %v1469_v30 = vld [vmem:[%s2179_s2 + $0x180] ss:$16 sps:$4 sm:$0xff]   ;;  %v1530_v31 = vld [vmem:[%s2182_s4 + $0x14] ss:$8 sps:$4 sm:$0xff]  }
   0xf   :  { %457 = vmatpush1.bf16.msra.mxu1 %v1442_v7  ;;  %960 = vmatprep.subr.bf16.mxu0 %v1527_v28  ;;  %v1470_v32 = vld [vmem:[%s2179_s2 + $0x1a4] ss:$16 sps:$4 sm:$0xff]   ;;  %v1472_v35 = vld [vmem:[%s2179_s2 + $0x1a0] ss:$16 sps:$4 sm:$0xff]   ;;  %v1496_v3 = vld [vmem:[%s2179_s2 + $0xac] ss:$16 sps:$4 sm:$0xff]  }
  0x10   :  { %458 = vmatprep.subr.bf16.mxu1 %v1443_v8  ;;  %961 = vmatpush1.bf16.msra.mxu0 %v1529_v29  ;;  %v1533_v34 = vld [vmem:[%s2182_s4 + $0x24] ss:$8 sps:$4 sm:$0xff]   ;;  %v1535_v37 = vld [vmem:[%s2182_s4 + $0x20] ss:$8 sps:$4 sm:$0xff]   ;;  %v1536_v38 = vld [vmem:[%s2182_s4 + $0x34] ss:$8 sps:$4 sm:$0xff]  }
  0x11   :  { %962 = vmatprep.subr.bf16.mxu0 %v1530_v31  ;;  %v1473_v36 = vld [vmem:[%s2179_s2 + $0x1c4] ss:$16 sps:$4 sm:$0xff]   ;;  %v1475_v39 = vld [vmem:[%s2179_s2 + $0x1c0] ss:$16 sps:$4 sm:$0xff]   ;;  %v1494_v6 = vld [vmem:[%s2179_s2 + $0xa8] ss:$16 sps:$4 sm:$0xff]  }
  0x12   :  { %v1476_v40 = vld [vmem:[%s2179_s2 + $0x1e4] ss:$16 sps:$4 sm:$0xff]   ;;  %v1538_v41 = vld [vmem:[%s2182_s4 + $0x30] ss:$8 sps:$4 sm:$0xff]   ;;  %v1541_v47 = vld [vmem:[%s2182_s4 + $0x40] ss:$8 sps:$4 sm:$0xff]  }
  0x13   :  { %459 = vmatpush1.bf16.msra.mxu1 %v1445_v9  ;;  %v1539_v42 = vld [vmem:[%s2182_s4 + $0x44] ss:$8 sps:$4 sm:$0xff]   ;;  %v1478_v43 = vld [vmem:[%s2179_s2 + $0x1e0] ss:$16 sps:$4 sm:$0xff]   ;;  %v1542_v48 = vld [vmem:[%s2182_s4 + $0x54] ss:$8 sps:$4 sm:$0xff]  }
  0x14   :  { %460 = vmatprep.subr.bf16.mxu1 %v1446_v10  ;;  %963 = vmatpush1.bf16.msra.mxu0 %v1532_v33  ;;  %v30_v44 = vld [vmem:[%s2180_s0] sm:$0xff]  ;;  %v1544_v52 = vld [vmem:[%s2182_s4 + $0x50] ss:$8 sps:$4 sm:$0xff]   ;;  %v1548_v57 = vld [vmem:[%s2182_s4 + $0x74] ss:$8 sps:$4 sm:$0xff]  }
  0x15   :  { %964 = vmatprep.subr.bf16.mxu0 %v1533_v34  ;;  %v34_v45 = vld [vmem:[%s2181_s1] sm:$0xff]  ;;  %v1550_v60 = vld [vmem:[%s2182_s4 + $0x70] ss:$8 sps:$4 sm:$0xff]   ;;  %v1554_v1 = vld [vmem:[%s2182_s4 + $0x94] ss:$8 sps:$4 sm:$0xff]  }
  0x16   :  { %v1842_v50 = vpack.c.bf16 %v34_v45, %v30_v44  ;;  %v1545_v53 = vld [vmem:[%s2182_s4 + $0x64] ss:$8 sps:$4 sm:$0xff]   ;;  %v1547_v56 = vld [vmem:[%s2182_s4 + $0x60] ss:$8 sps:$4 sm:$0xff]   ;;  %v1556_v4 = vld [vmem:[%s2182_s4 + $0x90] ss:$8 sps:$4 sm:$0xff]  }
  0x17   :  { %461 = vmatpush1.bf16.msra.mxu1 %v1448_v11  ;;  %v1551_v61 = vld [vmem:[%s2182_s4 + $0x84] ss:$8 sps:$4 sm:$0xff]   ;;  %v1553_v0 = vld [vmem:[%s2182_s4 + $0x80] ss:$8 sps:$4 sm:$0xff]   ;;  %v1560_v9 = vld [vmem:[%s2182_s4 + $0xb4] ss:$8 sps:$4 sm:$0xff]  }
  0x18   :  { %462 = vmatprep.subr.bf16.mxu1 %v1449_v12  ;;  %965 = vmatpush1.bf16.msra.mxu0 %v1535_v37  ;;  %v1557_v5 = vld [vmem:[%s2182_s4 + $0xa4] ss:$8 sps:$4 sm:$0xff]   ;;  %v1559_v8 = vld [vmem:[%s2182_s4 + $0xa0] ss:$8 sps:$4 sm:$0xff]   ;;  %v1562_v12 = vld [vmem:[%s2182_s4 + $0xb0] ss:$8 sps:$4 sm:$0xff]  }
  0x19   :  { %966 = vmatprep.subr.bf16.mxu0 %v1536_v38  ;;  %v1499_v7 = vld [vmem:[%s2179_s2 + $0xcc] ss:$16 sps:$4 sm:$0xff]   ;;  %v1497_v10 = vld [vmem:[%s2179_s2 + $0xc8] ss:$16 sps:$4 sm:$0xff]   ;;  %v1628_v44 = vld [vmem:[%s2183_s6 + $0x10] sm:$0xff]  }
  0x1a   :  { %v1502_v11 = vld [vmem:[%s2179_s2 + $0xec] ss:$16 sps:$4 sm:$0xff]   ;;  %v1500_v14 = vld [vmem:[%s2179_s2 + $0xe8] ss:$16 sps:$4 sm:$0xff]  }
  0x1b   :  { %463 = vmatpush1.bf16.msra.mxu1 %v1451_v15  ;;  %v1563_v13 = vld [vmem:[%s2182_s4 + $0xc4] ss:$8 sps:$4 sm:$0xff]   ;;  %v1521_v29 = vld [vmem:[%s2179_s2 + $0x1c8] ss:$16 sps:$4 sm:$0xff]  }
  0x1c   :  { %464 = vmatprep.subr.bf16.mxu1 %v1452_v17  ;;  %967 = vmatpush1.bf16.msra.mxu0 %v1538_v41  ;;  %v1505_v15 = vld [vmem:[%s2179_s2 + $0x10c] ss:$16 sps:$4 sm:$0xff]   ;;  %v1503_v17 = vld [vmem:[%s2179_s2 + $0x108] ss:$16 sps:$4 sm:$0xff]  }
  0x1d   :  { %968 = vmatprep.subr.bf16.mxu0 %v1539_v42  ;;  %v1523_v28 = vld [vmem:[%s2179_s2 + $0x1cc] ss:$16 sps:$4 sm:$0xff]   ;;  %v1524_v31 = vld [vmem:[%s2179_s2 + $0x1e8] ss:$16 sps:$4 sm:$0xff]  }
  0x1e   :  { %v1568_v33 = vld [vmem:[%s2182_s4 + $0xd0] ss:$8 sps:$4 sm:$0xff]   ;;  %v1569_v34 = vld [vmem:[%s2182_s4 + $0xe4] ss:$8 sps:$4 sm:$0xff]  }
  0x1f   :  { %465 = vmatpush1.bf16.msra.mxu1 %v1454_v18  ;;  %v1508_v18 = vld [vmem:[%s2179_s2 + $0x12c] ss:$16 sps:$4 sm:$0xff]   ;;  %v1574_v37 = vld [vmem:[%s2182_s4 + $0xf0] ss:$8 sps:$4 sm:$0xff]  }
  0x20   :  { %466 = vmatprep.subr.bf16.mxu1 %v1455_v19  ;;  %969 = vmatpush1.bf16.msra.mxu0 %v1541_v47  ;;  %v1506_v19 = vld [vmem:[%s2179_s2 + $0x128] ss:$16 sps:$4 sm:$0xff]   ;;  %v1577_v38 = vld [vmem:[%s2182_s4 + $0x104] ss:$8 sps:$4 sm:$0xff]  }
  0x21   :  { %970 = vmatprep.subr.bf16.mxu0 %v1542_v48  ;;  %v1625_v41 = vld [vmem:[%s2183_s6 + $0x48] sm:$0xff]   ;;  %v1629_v45 = vld [vmem:[%s2183_s6 + $0x58] sm:$0xff]   ;;  %v1631_v47 = vld [vmem:[%s2183_s6 + $0x60] sm:$0xff]  }
  0x22   :  { %v1626_v42 = vld [vmem:[%s2183_s6 + $0x8] sm:$0xff]   ;;  %v1632_v48 = vld [vmem:[%s2183_s6 + $0x20] sm:$0xff]  }
  0x23   :  { %467 = vmatpush1.bf16.msra.mxu1 %v1457_v20  ;;  %v1511_v20 = vld [vmem:[%s2179_s2 + $0x14c] ss:$16 sps:$4 sm:$0xff]  }
  0x24   :  { %468 = vmatprep.subr.bf16.mxu1 %v1458_v21  ;;  %971 = vmatpush1.bf16.msra.mxu0 %v1544_v52  ;;  %v1509_v21 = vld [vmem:[%s2179_s2 + $0x148] ss:$16 sps:$4 sm:$0xff]   ;;  %v2039_v52 = vld [vmem:[%s2184_s3] sm:$0xf] }
  0x25   :  { %972 = vmatprep.subr.bf16.mxu0 %v1545_v53 }
  0x27   :  { %469 = vmatpush1.bf16.msra.mxu1 %v1460_v22  ;;  %v1514_v22 = vld [vmem:[%s2179_s2 + $0x16c] ss:$16 sps:$4 sm:$0xff]  }
  0x28   :  { %470 = vmatprep.subr.bf16.mxu1 %v1461_v23  ;;  %973 = vmatpush1.bf16.msra.mxu0 %v1547_v56  ;;  %v1512_v23 = vld [vmem:[%s2179_s2 + $0x168] ss:$16 sps:$4 sm:$0xff]  }
  0x29   :  { %974 = vmatprep.subr.bf16.mxu0 %v1548_v57 }
  0x2b   :  { %471 = vmatpush1.bf16.msra.mxu1 %v1463_v24  ;;  %v1517_v24 = vld [vmem:[%s2179_s2 + $0x18c] ss:$16 sps:$4 sm:$0xff]  }
  0x2c   :  { %472 = vmatprep.subr.bf16.mxu1 %v1464_v25  ;;  %975 = vmatpush1.bf16.msra.mxu0 %v1550_v60  ;;  %v1515_v25 = vld [vmem:[%s2179_s2 + $0x188] ss:$16 sps:$4 sm:$0xff]  }
  0x2d   :  { %976 = vmatprep.subr.bf16.mxu0 %v1551_v61 }
  0x2f   :  { %473 = vmatpush1.bf16.msra.mxu1 %v1466_v26  ;;  %v1520_v26 = vld [vmem:[%s2179_s2 + $0x1ac] ss:$16 sps:$4 sm:$0xff]  }
  0x30   :  { %474 = vmatprep.subr.bf16.mxu1 %v1467_v27  ;;  %977 = vmatpush1.bf16.msra.mxu0 %v1553_v0  ;;  %v1518_v27 = vld [vmem:[%s2179_s2 + $0x1a8] ss:$16 sps:$4 sm:$0xff]  }
  0x31   :  { %978 = vmatprep.subr.bf16.mxu0 %v1554_v1 }
  0x33   :  { %475 = vmatpush1.bf16.msra.mxu1 %v1469_v30  ;;  %v1526_v30 = vld [vmem:[%s2179_s2 + $0x1ec] ss:$16 sps:$4 sm:$0xff]  }
  0x34   :  { %476 = vmatprep.subr.bf16.mxu1 %v1470_v32  ;;  %979 = vmatpush1.bf16.msra.mxu0 %v1556_v4  ;;  %v1566_v32 = vld [vmem:[%s2182_s4 + $0xd4] ss:$8 sps:$4 sm:$0xff]  }
  0x35   :  { %980 = vmatprep.subr.bf16.mxu0 %v1557_v5 }
  0x37   :  { %477 = vmatpush1.bf16.msra.mxu1 %v1472_v35  ;;  %v1571_v35 = vld [vmem:[%s2182_s4 + $0xe0] ss:$8 sps:$4 sm:$0xff]  }
  0x38   :  { %478 = vmatprep.subr.bf16.mxu1 %v1473_v36  ;;  %981 = vmatpush1.bf16.msra.mxu0 %v1559_v8  ;;  %v1572_v36 = vld [vmem:[%s2182_s4 + $0xf4] ss:$8 sps:$4 sm:$0xff]  }
  0x39   :  { %982 = vmatprep.subr.bf16.mxu0 %v1560_v9 }
  0x3b   :  { %479 = vmatpush1.bf16.msra.mxu1 %v1475_v39  ;;  %v1623_v39 = vld [vmem:[%s2183_s6 + $0x40] sm:$0xff]  }
  0x3c   :  { %480 = vmatprep.subr.bf16.mxu1 %v1476_v40  ;;  %983 = vmatpush1.bf16.msra.mxu0 %v1562_v12  ;;  %v1624_v40 = vld [vmem:[%s2183_s6] sm:$0xff]   ;;  %v1578_v12 = vld [vmem:[%s2182_s4 + $0x110] ss:$8 sps:$4 sm:$0xff]  }
  0x3d   :  { %984 = vmatprep.subr.bf16.mxu0 %v1563_v13  ;;  %v1583_v13 = vld [vmem:[%s2182_s4 + $0x124] ss:$8 sps:$4 sm:$0xff]  }
  0x3f   :  { %481 = vmatpush1.bf16.msra.mxu1 %v1478_v43  ;;  %v1627_v43 = vld [vmem:[%s2183_s6 + $0x50] sm:$0xff]  }
  0x40   :  { %493 = vmatprep.subr.bf16.mxu1 %v1481_v46  ;;  %v1630_v46 = vld [vmem:[%s2183_s6 + $0x18] sm:$0xff]  }
  0x42   :  { %483 = vmatmul.mubr.bf16.vlgmr.msra.gmra.mrb[0].mxu1 %v1842_v50 }
  0x43   :  { %494 = vmatpush1.bf16.msra.mxu1 %v1479_v49  ;;  %525 = vmatprep.mubr.bf16.mxu1 %v1740_v16  ;;  %v1565_v16 = vld [vmem:[%s2182_s4 + $0xc0] ss:$8 sps:$4 sm:$0xff]   ;;  %v110_v49 = vlaneseq }
  0x44   :  { %495 = vmatprep.subr.bf16.mxu1 %v1484_v51  ;;  %985 = vmatpush1.bf16.msra.mxu0 %v1565_v16  ;;  %v1584_v16 = vld [vmem:[%s2182_s4 + $0x130] ss:$8 sps:$4 sm:$0xff]  }
  0x45   :  { %986 = vmatprep.subr.bf16.mxu0 %v1566_v32  ;;  %v1608_v32 = vld [vmem:[%s2182_s4 + $0x1b0] ss:$8 sps:$4 sm:$0xff]  }
  0x47   :  { %496 = vmatpush1.bf16.msra.mxu1 %v1482_v54 }
  0x48   :  { %497 = vmatprep.subr.bf16.mxu1 %v1487_v55  ;;  %987 = vmatpush1.bf16.msra.mxu0 %v1568_v33  ;;  %v1613_v33 = vld [vmem:[%s2182_s4 + $0x1c4] ss:$8 sps:$4 sm:$0xff]  }
  0x49   :  { %988 = vmatprep.subr.bf16.mxu0 %v1569_v34  ;;  %v1611_v34 = vld [vmem:[%s2182_s4 + $0x1c0] ss:$8 sps:$4 sm:$0xff]  }
  0x4b   :  { %498 = vmatpush1.bf16.msra.mxu1 %v1485_v58 }
  0x4c   :  { %499 = vmatprep.subr.bf16.mxu1 %v1490_v59  ;;  %989 = vmatpush1.bf16.msra.mxu0 %v1571_v35 }
  0x4d   :  { %990 = vmatprep.subr.bf16.mxu0 %v1572_v36  ;;  %v1616_v36 = vld [vmem:[%s2182_s4 + $0x1d4] ss:$8 sps:$4 sm:$0xff]  }
  0x4f   :  { %500 = vmatpush1.bf16.msra.mxu1 %v1488_v62 }
  0x50   :  { %501 = vmatprep.subr.bf16.mxu1 %v1493_v63  ;;  %991 = vmatpush1.bf16.msra.mxu0 %v1574_v37 }
  0x51   :  { %1003 = vmatprep.subr.bf16.mxu0 %v1577_v38 }
  0x53   :  { %502 = vmatpush1.bf16.msra.mxu1 %v1491_v2 }
  0x54   :  { %503 = vmatprep.subr.bf16.mxu1 %v1496_v3 }
  0x57   :  { %504 = vmatpush1.bf16.msra.mxu1 %v1494_v6 }
  0x58   :  { %505 = vmatprep.subr.bf16.mxu1 %v1499_v7 }
  0x5b   :  { %506 = vmatpush1.bf16.msra.mxu1 %v1497_v10  ;;  %v1575_v10 = vld [vmem:[%s2182_s4 + $0x100] ss:$8 sps:$4 sm:$0xff]  }
  0x5c   :  { %507 = vmatprep.subr.bf16.mxu1 %v1502_v11  ;;  %v1580_v11 = vld [vmem:[%s2182_s4 + $0x114] ss:$8 sps:$4 sm:$0xff]  }
  0x5f   :  { %508 = vmatpush1.bf16.msra.mxu1 %v1500_v14  ;;  %v1581_v14 = vld [vmem:[%s2182_s4 + $0x120] ss:$8 sps:$4 sm:$0xff]  }
  0x60   :  { %509 = vmatprep.subr.bf16.mxu1 %v1505_v15  ;;  %v1586_v15 = vld [vmem:[%s2182_s4 + $0x134] ss:$8 sps:$4 sm:$0xff]  }
  0x63   :  { %510 = vmatpush1.bf16.msra.mxu1 %v1503_v17  ;;  %v1589_v17 = vld [vmem:[%s2182_s4 + $0x144] ss:$8 sps:$4 sm:$0xff]  }
  0x64   :  { %511 = vmatprep.subr.bf16.mxu1 %v1508_v18  ;;  %v1587_v18 = vld [vmem:[%s2182_s4 + $0x140] ss:$8 sps:$4 sm:$0xff]  }
  0x67   :  { %512 = vmatpush1.bf16.msra.mxu1 %v1506_v19  ;;  %v1592_v19 = vld [vmem:[%s2182_s4 + $0x154] ss:$8 sps:$4 sm:$0xff]  }
  0x68   :  { %513 = vmatprep.subr.bf16.mxu1 %v1511_v20  ;;  %v1590_v20 = vld [vmem:[%s2182_s4 + $0x150] ss:$8 sps:$4 sm:$0xff]  }
  0x6b   :  { %514 = vmatpush1.bf16.msra.mxu1 %v1509_v21  ;;  %v1595_v21 = vld [vmem:[%s2182_s4 + $0x164] ss:$8 sps:$4 sm:$0xff]  }
  0x6c   :  { %515 = vmatprep.subr.bf16.mxu1 %v1514_v22  ;;  %v1593_v22 = vld [vmem:[%s2182_s4 + $0x160] ss:$8 sps:$4 sm:$0xff]  }
  0x6f   :  { %516 = vmatpush1.bf16.msra.mxu1 %v1512_v23  ;;  %v1598_v23 = vld [vmem:[%s2182_s4 + $0x174] ss:$8 sps:$4 sm:$0xff]  }
  0x70   :  { %517 = vmatprep.subr.bf16.mxu1 %v1517_v24  ;;  %v1596_v24 = vld [vmem:[%s2182_s4 + $0x170] ss:$8 sps:$4 sm:$0xff]  }
  0x73   :  { %518 = vmatpush1.bf16.msra.mxu1 %v1515_v25  ;;  %v1601_v25 = vld [vmem:[%s2182_s4 + $0x184] ss:$8 sps:$4 sm:$0xff]  }
  0x74   :  { %519 = vmatprep.subr.bf16.mxu1 %v1520_v26  ;;  %v1599_v26 = vld [vmem:[%s2182_s4 + $0x180] ss:$8 sps:$4 sm:$0xff]  }
  0x77   :  { %520 = vmatpush1.bf16.msra.mxu1 %v1518_v27  ;;  %v1604_v27 = vld [vmem:[%s2182_s4 + $0x194] ss:$8 sps:$4 sm:$0xff]  }
  0x78   :  { %521 = vmatprep.subr.bf16.mxu1 %v1523_v28  ;;  %v1602_v28 = vld [vmem:[%s2182_s4 + $0x190] ss:$8 sps:$4 sm:$0xff]  }
  0x7b   :  { %522 = vmatpush1.bf16.msra.mxu1 %v1521_v29  ;;  %v1607_v29 = vld [vmem:[%s2182_s4 + $0x1a4] ss:$8 sps:$4 sm:$0xff]  }
  0x7c   :  { %523 = vmatprep.subr.bf16.mxu1 %v1526_v30  ;;  %v1605_v30 = vld [vmem:[%s2182_s4 + $0x1a0] ss:$8 sps:$4 sm:$0xff]  }
  0x7f   :  { %524 = vmatpush1.bf16.msra.mxu1 %v1524_v31  ;;  %v1610_v31 = vld [vmem:[%s2182_s4 + $0x1b4] ss:$8 sps:$4 sm:$0xff]  }
  0x80   :  { %1401 = vmatprep.subr.bf16.mxu1 %v1623_v39  ;;  %v1614_v39 = vld [vmem:[%s2182_s4 + $0x1d0] ss:$8 sps:$4 sm:$0xff]  }
  0x82   :  { %526 = vmatmul.mubr.bf16.vlgmr.msra.gmra.mrb[4].mxu1 %v1842_v50  ;;  %v2033_v50 = vshrl.u32 %v110_v49, 7 }
  0x83   :  { %1402 = vmatpush3.bf16.msra.mxu1 %v1624_v40 }
  0x84   :  { %1403 = vmatprep.subr.bf16.mxu1 %v1625_v41  ;;  %v112_v51 = vsub.s32 0, %v2033_v50  ;;  %v116_v53 = vsub.s32 1, %v2033_v50  ;;  %v120_v35 = vsub.s32 2, %v2033_v50  ;;  %v124_v37 = vsub.s32 3, %v2033_v50  ;;  %v1619_v41 = vld [vmem:[%s2182_s4 + $0x1e4] ss:$8 sps:$4 sm:$0xff]  }
  0x86   :  { %v113_v54 = vrot.slane %v2039_v52, %v112_v51  ;;  %v117_v55 = vrot.slane %v2039_v52, %v116_v53  ;;  %v121_v38 = vrot.slane %v2039_v52, %v120_v35  ;;  %v125_v40 = vrot.slane %v2039_v52, %v124_v37 }
  0x87   :  { %1404 = vmatpush3.bf16.msra.mxu1 %v1626_v42 }
  0x88   :  { %1405 = vmatprep.subr.bf16.mxu1 %v1627_v43 }
  0x8b   :  { %1406 = vmatpush3.bf16.msra.mxu1 %v1628_v44 }
  0x8c   :  { %1407 = vmatprep.subr.bf16.mxu1 %v1629_v45  ;;  %v1617_v45 = vld [vmem:[%s2182_s4 + $0x1e0] ss:$8 sps:$4 sm:$0xff]  }
  0x8f   :  { %1408 = vmatpush3.bf16.msra.mxu1 %v1630_v46 }
  0x90   :  { %1409 = vmatprep.subr.bf16.mxu1 %v1631_v47 }
  0x93   :  { %1410 = vmatpush3.bf16.msra.mxu1 %v1632_v48  ;;  %v1622_v48 = vld [vmem:[%s2182_s4 + $0x1f4] ss:$8 sps:$4 sm:$0xff]  }
 0x115   :  { %v484_v56 = vpop.f32.mrb[0].mxu1 }
 0x116   :  { %v485_v57 = vadd.f32 %v484_v56, %v113_v54  ;;  %v486_v58 = vpop.f32.mrb[1].mxu1 }
 0x117   :  { %v487_v59 = vadd.f32 %v486_v58, %v117_v55  ;;  %v488_v60 = vpop.f32.mrb[2].mxu1  ;;  %v1620_v58 = vld [vmem:[%s2182_s4 + $0x1f0] ss:$8 sps:$4 sm:$0xff]  }
 0x118   :  { %v544_v61 = vmul.f32 0.2, %v485_v57  ;;  %v489_v62 = vadd.f32 %v488_v60, %v113_v54  ;;  %v490_v63 = vpop.f32.mrb[3].mxu1  ;;  %vm536_vm0 = vcmp.gt.f32.partialorder %v485_v57, 0.0 }
 0x119   :  { %v545_v0 = vmul.f32 0.2, %v487_v59  ;;  %v491_v1 = vadd.f32 %v490_v63, %v117_v55  ;;  %vm537_vm2 = vcmp.gt.f32.partialorder %v487_v59, 0.0 }
 0x11a   :  { %vm540_vm1 = vcmp.gt.f32.partialorder %v489_v62, 0.0  ;;  %v548_v2 = vmul.f32 0.2, %v489_v62  ;;  %v552_v4 = vsel %vm536_vm0, %v485_v57, %v544_v61 }
 0x11b   :  { %v549_v3 = vmul.f32 0.2, %v491_v1  ;;  %vm541_vm3 = vcmp.gt.f32.partialorder %v491_v1, 0.0  ;;  %v553_v6 = vsel %vm537_vm2, %v487_v59, %v545_v0 }
 0x11c   :  { %v556_v5 = vsel %vm540_vm1, %v489_v62, %v548_v2  ;;  %v1633_v2 = vld [vmem:[%s2183_s6 + $0x68] sm:$0xff]  }
 0x11d   :  { %v557_v7 = vsel %vm541_vm3, %v491_v1, %v549_v3  ;;  %v560_v8 = vpack.c.bf16 %v556_v5, %v552_v4  ;;  %v1634_v3 = vld [vmem:[%s2183_s6 + $0x28] sm:$0xff]   ;;  %1411 = vmatprep.subr.bf16.mxu1 %v1633_v2  ;;  %v1635_v4 = vld [vmem:[%s2183_s6 + $0x70] sm:$0xff]  }
 0x11e   :  { %v561_v9 = vpack.c.bf16 %v557_v7, %v553_v6  ;;  %1412 = vmatpush3.bf16.msra.mxu1 %v1634_v3  ;;  %v1636_v5 = vld [vmem:[%s2183_s6 + $0x30] sm:$0xff]   ;;  %v1637_v6 = vld [vmem:[%s2183_s6 + $0x78] sm:$0xff]  }
 0x11f   :  { %1413 = vmatprep.subr.bf16.mxu1 %v1635_v4  ;;  %v1638_v7 = vld [vmem:[%s2183_s6 + $0x38] sm:$0xff]  }
 0x120   :  { %992 = vmatprep.mubr.bf16.mxu0 %v561_v9 }
 0x121   :  { %993 = vmatmul.mubr.bf16.vlgmr.msra.gmra.mrb[0].mxu0 %v560_v8  ;;  %v628_v8 = vld [vmem:[%s2185_s5] sm:$0x3] }
 0x122   :  { %1004 = vmatpush1.bf16.msra.mxu0 %v1575_v10  ;;  %1414 = vmatpush3.bf16.msra.mxu1 %v1636_v5  ;;  %v633_v9 = vrot.slane %v628_v8, %v112_v51  ;;  %v637_v10 = vrot.slane %v628_v8, %v116_v53 }
 0x123   :  { %1005 = vmatprep.subr.bf16.mxu0 %v1580_v11  ;;  %1415 = vmatprep.subr.bf16.mxu1 %v1637_v6 }
 0x126   :  { %1006 = vmatpush1.bf16.msra.mxu0 %v1578_v12  ;;  %1416 = vmatpush3.bf16.msra.mxu1 %v1638_v7 }
 0x127   :  { %1007 = vmatprep.subr.bf16.mxu0 %v1583_v13 }
 0x12a   :  { %1008 = vmatpush1.bf16.msra.mxu0 %v1581_v14 }
 0x12b   :  { %1009 = vmatprep.subr.bf16.mxu0 %v1586_v15 }
 0x12e   :  { %1010 = vmatpush1.bf16.msra.mxu0 %v1584_v16 }
 0x12f   :  { %1011 = vmatprep.subr.bf16.mxu0 %v1589_v17 }
 0x132   :  { %1012 = vmatpush1.bf16.msra.mxu0 %v1587_v18 }
 0x133   :  { %1013 = vmatprep.subr.bf16.mxu0 %v1592_v19 }
 0x136   :  { %1014 = vmatpush1.bf16.msra.mxu0 %v1590_v20 }
 0x137   :  { %1015 = vmatprep.subr.bf16.mxu0 %v1595_v21 }
 0x13a   :  { %1016 = vmatpush1.bf16.msra.mxu0 %v1593_v22 }
 0x13b   :  { %1017 = vmatprep.subr.bf16.mxu0 %v1598_v23 }
 0x13e   :  { %1018 = vmatpush1.bf16.msra.mxu0 %v1596_v24 }
 0x13f   :  { %1019 = vmatprep.subr.bf16.mxu0 %v1601_v25 }
 0x142   :  { %1020 = vmatpush1.bf16.msra.mxu0 %v1599_v26 }
 0x143   :  { %1021 = vmatprep.subr.bf16.mxu0 %v1604_v27  ;;  %v1382_v27 = vld [vmem:[%s2186_s7] ss:$0 sm:$0xff] }
 0x146   :  { %1022 = vmatpush1.bf16.msra.mxu0 %v1602_v28 }
 0x147   :  { %1023 = vmatprep.subr.bf16.mxu0 %v1607_v29 }
 0x14a   :  { %1024 = vmatpush1.bf16.msra.mxu0 %v1605_v30 }
 0x14b   :  { %1025 = vmatprep.subr.bf16.mxu0 %v1610_v31 }
 0x14e   :  { %1026 = vmatpush1.bf16.msra.mxu0 %v1608_v32 }
 0x14f   :  { %1027 = vmatprep.subr.bf16.mxu0 %v1613_v33 }
 0x152   :  { %1028 = vmatpush1.bf16.msra.mxu0 %v1611_v34 }
 0x153   :  { %1029 = vmatprep.subr.bf16.mxu0 %v1616_v36 }
 0x155   :  { %v527_v42 = vpop.f32.mrb[4].mxu1 }
 0x156   :  { %v528_v43 = vadd.f32 %v527_v42, %v121_v38  ;;  %v529_v44 = vpop.f32.mrb[5].mxu1  ;;  %1030 = vmatpush1.bf16.msra.mxu0 %v1614_v39 }
 0x157   :  { %v530_v46 = vadd.f32 %v529_v44, %v125_v40  ;;  %v531_v47 = vpop.f32.mrb[6].mxu1  ;;  %1031 = vmatprep.subr.bf16.mxu0 %v1619_v41 }
 0x158   :  { %v546_v49 = vmul.f32 0.2, %v528_v43  ;;  %v532_v52 = vadd.f32 %v531_v47, %v121_v38  ;;  %v533_v54 = vpop.f32.mrb[7].mxu1  ;;  %vm538_vm4 = vcmp.gt.f32.partialorder %v528_v43, 0.0 }
 0x159   :  { %v547_v55 = vmul.f32 0.2, %v530_v46  ;;  %v534_v56 = vadd.f32 %v533_v54, %v125_v40  ;;  %vm539_vm5 = vcmp.gt.f32.partialorder %v530_v46, 0.0 }
 0x15a   :  { %vm542_vm6 = vcmp.gt.f32.partialorder %v532_v52, 0.0  ;;  %v550_v57 = vmul.f32 0.2, %v532_v52  ;;  %1032 = vmatpush1.bf16.msra.mxu0 %v1617_v45  ;;  %v554_v60 = vsel %vm538_vm4, %v528_v43, %v546_v49 }
 0x15b   :  { %vm543_vm7 = vcmp.gt.f32.partialorder %v534_v56, 0.0  ;;  %v551_v59 = vmul.f32 0.2, %v534_v56  ;;  %1033 = vmatprep.subr.bf16.mxu0 %v1622_v48  ;;  %v555_v63 = vsel %vm539_vm5, %v530_v46, %v547_v55 }
 0x15c   :  { %v558_v61 = vsel %vm542_vm6, %v532_v52, %v550_v57 }
 0x15d   :  { %v562_v62 = vpack.c.bf16 %v558_v61, %v554_v60  ;;  %v559_v0 = vsel %vm543_vm7, %v534_v56, %v551_v59 }
 0x15e   :  { %1034 = vmatpush1.bf16.msra.mxu0 %v1620_v58  ;;  %v563_v1 = vpack.c.bf16 %v559_v0, %v555_v63 }
 0x160   :  { %1035 = vmatprep.mubr.bf16.mxu0 %v563_v1 }
 0x161   :  { %1036 = vmatmul.mubr.bf16.vlgmr.msra.gmra.mrb[0].mxu0 %v562_v62 }
 0x234   :  { %v1037_v11 = vpop.f32.mrb[0].mxu0 }
 0x235   :  { %v1423_v12 = vadd.f32 %v1037_v11, %v633_v9  ;;  %v1039_v13 = vpop.f32.mrb[1].mxu0 }
 0x236   :  { %v1424_v14 = vadd.f32 %v1039_v13, %v637_v10  ;;  %v1041_v15 = vpop.f32.mrb[2].mxu0 }
 0x237   :  { %v1050_v16 = vmul.f32 0.2, %v1423_v12  ;;  %v1425_v17 = vadd.f32 %v1041_v15, %v633_v9  ;;  %v1043_v18 = vpop.f32.mrb[3].mxu0  ;;  %vm1046_vm8 = vcmp.gt.f32.partialorder %v1423_v12, 0.0 }
 0x238   :  { %v1051_v19 = vmul.f32 0.2, %v1424_v14  ;;  %v1426_v20 = vadd.f32 %v1043_v18, %v637_v10  ;;  %vm1047_vm9 = vcmp.gt.f32.partialorder %v1424_v14, 0.0 }
 0x239   :  { %vm1048_vm10 = vcmp.gt.f32.partialorder %v1425_v17, 0.0  ;;  %v1052_v21 = vmul.f32 0.2, %v1425_v17  ;;  %v1054_v51 = vsel %vm1046_vm8, %v1423_v12, %v1050_v16 }
 0x23a   :  { %vm1049_vm11 = vcmp.gt.f32.partialorder %v1426_v20, 0.0  ;;  %v1053_v22 = vmul.f32 0.2, %v1426_v20  ;;  %v1055_v53 = vsel %vm1047_vm9, %v1424_v14, %v1051_v19 }
 0x23b   :  { %v1056_v23 = vsel %vm1048_vm10, %v1425_v17, %v1052_v21 }
 0x23c   :  { %v1058_v50 = vpack.c.bf16 %v1056_v23, %v1054_v51  ;;  %v1057_v24 = vsel %vm1049_vm11, %v1426_v20, %v1053_v22 }
 0x23d   :  { %v1059_v25 = vpack.c.bf16 %v1057_v24, %v1055_v53 }
 0x23f   :  { %1227 = vmatprep.mubr.bf16.mxu1 %v1059_v25 }
 0x240   :  { %1228 = vmatmul.mubr.bf16.vlgmr.msra.gmra.mrb[8].mxu1 %v1058_v50 }
 0x313   :  { %v1417_v26 = vpop.f32.mrb[8].mxu1 }
 0x314   :  { %v1418_v28 = vpop.f32.mrb[9].mxu1 }
 0x315   :  { %v1419_v29 = vadd.f32 %v1418_v28, %v1417_v26  ;;  %v1420_v30 = vpop.f32.mrb[10].mxu1 }
 0x316   :  { %v1421_v31 = vpop.f32.mrb[11].mxu1 }
 0x317   :  { %v1230_v32 = vadd.f32 %v1419_v29, %v1382_v27  ;;  %v1422_v33 = vadd.f32 %v1421_v31, %v1420_v30 }
 0x319   :  { %v1399_v34 = vmul.f32 -1.442695, %v1230_v32  ;;  %v1233_v35 = vadd.f32 %v1422_v33, %v1382_v27 }
 0x31b   :  { %1639 = vpow2.f32 %v1399_v34  ;;  %v1400_v36 = vmul.f32 -1.442695, %v1233_v35 }
 0x31d   :  { %1641 = vpow2.f32 %v1400_v36 }
 0x325   :  { %v1640_v37 = vpop.eup %1639 }
 0x326   :  { %v1242_v38 = vadd.f32 1.0, %v1640_v37 }
 0x327   :  { %v1642_v39 = vpop.eup %1641 }
 0x328   :  { %1643 = vrcp.f32 %v1242_v38  ;;  %v1243_v40 = vadd.f32 1.0, %v1642_v39 }
 0x32a   :  { %1645 = vrcp.f32 %v1243_v40 }
 0x332   :  { %v1644_v41 = vpop.eup %1643 }
 0x333   :  { %1248 = vst [vmem:[%s2187_s8] sm:$0xff] %v1644_v41 }
 0x334   :  { %v1646_v42 = vpop.eup %1645 }
 0x335   :  { %1249 = vst [vmem:[%s2187_s8 + $0x8] sm:$0xff] %v1646_v42 }

// kernel: traingan_forward.2
= control target key start
LH: loop header
LB: loop body
LE: loop exit
PB: predicated region body
PF: predicated region fallthrough
CT: control target
= control target key end

     0   :  { %s5833_s0 = inlined_call_operand.vmem [shape: f32[8,32], index: 0, kind: input, shape index: {}]   ;;  %s5834_s1 = inlined_call_operand.vmem [shape: bf16[32,128], index: 1, kind: input, shape index: {}]   ;;  %s5835_s2 = inlined_call_operand.vmem [shape: f32[1,128], index: 2, kind: input, shape index: {}]   ;;  %s5836_s3 = inlined_call_operand.hbm [shape: bf16[128,256], index: 3, kind: input, shape index: {}]   ;;  %s5837_s4 = inlined_call_operand.vmem [shape: f32[1,256], index: 4, kind: input, shape index: {}]   ;;  %s5838_s5 = inlined_call_operand.hbm [shape: f32[1,256], index: 5, kind: input, shape index: {}]   ;;  %s5839_s6 = inlined_call_operand.hbm [shape: f32[1,256], index: 6, kind: input, shape index: {}]   ;;  %s5840_s7 = inlined_call_operand.hbm [shape: bf16[256,512], index: 7, kind: input, shape index: {}]   ;;  %s5841_s8 = inlined_call_operand.vmem [shape: f32[1,512], index: 8, kind: input, shape index: {}]   ;;  %s5842_s9 = inlined_call_operand.hbm [shape: f32[1,512], index: 9, kind: input, shape index: {}]   ;;  %s5843_s10 = inlined_call_operand.hbm [shape: f32[1,512], index: 10, kind: input, shape index: {}]   ;;  %s5844_s11 = inlined_call_operand.hbm [shape: bf16[512,1024], index: 11, kind: input, shape index: {}]   ;;  %s5845_s12 = inlined_call_operand.vmem [shape: f32[1,1024], index: 12, kind: input, shape index: {}]   ;;  %s5846_s13 = inlined_call_operand.hbm [shape: f32[1,1024], index: 13, kind: input, shape index: {}]   ;;  %s5847_s14 = inlined_call_operand.hbm [shape: f32[1,1024], index: 14, kind: input, shape index: {}]   ;;  %s5848_s15 = inlined_call_operand.hbm [shape: bf16[1024,256], index: 15, kind: input, shape index: {}]   ;;  %s5849_s16 = inlined_call_operand.vmem [shape: f32[1,256], index: 16, kind: input, shape index: {}]   ;;  %s5850_s17 = inlined_call_operand.vmem [shape: f32[8,256], index: 17, kind: output, shape index: {}]  }
   0x1   :  { %5852 = sst [smem:[#allocation24_spill]] %s5833_s0 }
   0x2   :  { %5853 = sst [smem:[#allocation25_spill]] %s5834_s1 }
   0x3   :  { %22 = vsyncpa [#allocation3], 0 }
   0x4   :  { %23 = vsyncpa [#allocation5], 0 }
   0x5   :  { %24 = vsyncpa [#allocation8], 0 }
   0x6   :  { %25 = vsyncpa [#allocation11], 0 }
   0x7   :  { %26 = vsyncpa [#allocation14], 0 }
   0x8   :  { %27 = vsyncpa [#allocation17], 0  ;;  %s5370_s24 = smov [#allocation4]   ;;  %s5371_s26 = smov [#allocation7]  }
   0x9   :  { %s54_s25 = sshll.u32 %s5370_s24, 4  ;;  %s73_s27 = sshll.u32 %s5371_s26, 4  ;;  %s55_s25 = int_to_ptr.vmem [resolvable:$true] %s54_s25  ;;  %s5479_s27 = int_to_ptr.vmem [resolvable:$true] %s73_s27 }
   0xa   :  { %s5138_s0 = scalar_lea.hbm %s5838_s5, 32 }
   0xb   :  { %p5139_p0 = scmp.ne.s32.totalorder %s5838_s5, %s5138_s0  ;;  %p5142_p1 = scmp.lt.u32.totalorder %s5138_s0, %s5838_s5 }
   0xd   :  { %p5144_p2 = pnand %p5142_p1, %p5139_p0 }
   0xf   :  { %5147 = shalt.err (!%p5144_p2)
}
  0x10   :  { %s5148_s20 = scalar_lea.vmem %s55_s25, 32  ;;  %p5153_p4 = scmp.lt.s32.totalorder %s55_s25, %s55_s25 }
  0x11   :  { %p5149_p3 = scmp.ne.s32.totalorder %s55_s25, %s5148_s20  ;;  %p5154_p5 = scmp.lt.s32.totalorder %s5148_s20, %s5148_s20 }
  0x13   :  { %p5155_p6 = por %p5154_p5, %p5153_p4 }
  0x15   :  { %p5156_p7 = pnand %p5155_p6, %p5149_p3 }
  0x17   :  { %5159 = shalt.err (!%p5156_p7)
}
  0x18   :  { %57 = dma.hbm_to_vmem [thread:$0]  %s5838_s5, 32, %s55_s25, [#allocation5]  }
  0x19   :  { %s5160_s26 = scalar_lea.hbm %s5840_s7, 8192 }
  0x1a   :  { %p5161_p8 = scmp.ne.s32.totalorder %s5840_s7, %s5160_s26  ;;  %p5164_p9 = scmp.lt.u32.totalorder %s5160_s26, %s5840_s7 }
  0x1c   :  { %p5166_p10 = pnand %p5164_p9, %p5161_p8 }
  0x1e   :  { %5169 = shalt.err (!%p5166_p10)
}
  0x1f   :  { %s5170_s18 = scalar_lea.vmem %s5479_s27, 8192  ;;  %p5175_p12 = scmp.lt.s32.totalorder %s5479_s27, %s5479_s27 }
  0x20   :  { %p5171_p11 = scmp.ne.s32.totalorder %s5479_s27, %s5170_s18  ;;  %p5176_p13 = scmp.lt.s32.totalorder %s5170_s18, %s5170_s18 }
  0x22   :  { %p5177_p0 = por %p5176_p13, %p5175_p12 }
  0x24   :  { %p5178_p1 = pnand %p5177_p0, %p5171_p11 }
  0x26   :  { %5181 = shalt.err (!%p5178_p1)
}
  0x27   :  { %s5372_s5 = smov 256   ;;  %s5373_s25 = smov 16  }
  0x28   :  { %79 = dma.hbm_to_vmem [thread:$0]  %s5840_s7, 8192, %s5479_s27, [#allocation8], %s5372_s5, %s5372_s5, %s5373_s25  }
  0x29   :  { %s5374_s20 = smov [#allocation10]   ;;  %s5375_s22 = smov [#allocation13]  }
  0x2a   :  { %s98_s21 = sshll.u32 %s5374_s20, 4  ;;  %s122_s23 = sshll.u32 %s5375_s22, 4  ;;  %s99_s21 = int_to_ptr.vmem [resolvable:$true] %s98_s21  ;;  %s123_s23 = int_to_ptr.vmem [resolvable:$true] %s122_s23 }
  0x2b   :  { %s5182_s28 = scalar_lea.hbm %s5843_s10, 64 }
  0x2c   :  { %p5183_p2 = scmp.ne.s32.totalorder %s5843_s10, %s5182_s28  ;;  %p5186_p3 = scmp.lt.u32.totalorder %s5182_s28, %s5843_s10 }
  0x2e   :  { %p5188_p4 = pnand %p5186_p3, %p5183_p2 }
  0x30   :  { %5191 = shalt.err (!%p5188_p4)
}
  0x31   :  { %s5192_s7 = scalar_lea.vmem %s99_s21, 64  ;;  %p5197_p6 = scmp.lt.s32.totalorder %s99_s21, %s99_s21 }
  0x32   :  { %p5193_p5 = scmp.ne.s32.totalorder %s99_s21, %s5192_s7  ;;  %p5198_p7 = scmp.lt.s32.totalorder %s5192_s7, %s5192_s7 }
  0x34   :  { %p5199_p8 = por %p5198_p7, %p5197_p6 }
  0x36   :  { %p5200_p9 = pnand %p5199_p8, %p5193_p5 }
  0x38   :  { %5203 = shalt.err (!%p5200_p9)
}
  0x39   :  { %101 = dma.hbm_to_vmem [thread:$0]  %s5843_s10, 64, %s99_s21, [#allocation11]  }
  0x3a   :  { %s5204_s1 = scalar_lea.hbm %s5846_s13, 128 }
  0x3b   :  { %p5205_p10 = scmp.ne.s32.totalorder %s5846_s13, %s5204_s1  ;;  %p5208_p11 = scmp.lt.u32.totalorder %s5204_s1, %s5846_s13 }
  0x3d   :  { %p5210_p12 = pnand %p5208_p11, %p5205_p10 }
  0x3f   :  { %5213 = shalt.err (!%p5210_p12)
}
  0x40   :  { %s5214_s28 = scalar_lea.vmem %s123_s23, 128  ;;  %p5219_p0 = scmp.lt.s32.totalorder %s123_s23, %s123_s23 }
  0x41   :  { %p5215_p13 = scmp.ne.s32.totalorder %s123_s23, %s5214_s28  ;;  %p5220_p1 = scmp.lt.s32.totalorder %s5214_s28, %s5214_s28 }
  0x43   :  { %p5221_p2 = por %p5220_p1, %p5219_p0 }
  0x45   :  { %p5222_p3 = pnand %p5221_p2, %p5215_p13 }
  0x47   :  { %5225 = shalt.err (!%p5222_p3)
}
  0x48   :  { %125 = dma.hbm_to_vmem [thread:$0]  %s5846_s13, 128, %s123_s23, [#allocation14]  }
  0x49   :  { %s5376_s29 = smov [#allocation2]   ;;  %s5226_s7 = scalar_lea.hbm %s5836_s3, 2048 }
  0x4a   :  { %s39_s0 = sshll.u32 %s5376_s29, 4  ;;  %p5227_p4 = scmp.ne.s32.totalorder %s5836_s3, %s5226_s7  ;;  %s40_s0 = int_to_ptr.vmem [resolvable:$true] %s39_s0 }
  0x4b   :  { %p5230_p5 = scmp.lt.u32.totalorder %s5226_s7, %s5836_s3 }
  0x4d   :  { %p5232_p6 = pnand %p5230_p5, %p5227_p4 }
  0x4f   :  { %5235 = shalt.err (!%p5232_p6)
}
  0x50   :  { %s5236_s1 = scalar_lea.vmem %s40_s0, 2048  ;;  %p5241_p8 = scmp.lt.s32.totalorder %s40_s0, %s40_s0 }
  0x51   :  { %p5237_p7 = scmp.ne.s32.totalorder %s40_s0, %s5236_s1  ;;  %p5242_p9 = scmp.lt.s32.totalorder %s5236_s1, %s5236_s1 }
  0x53   :  { %p5243_p10 = por %p5242_p9, %p5241_p8 }
  0x55   :  { %p5244_p11 = pnand %p5243_p10, %p5237_p7 }
  0x57   :  { %5247 = shalt.err (!%p5244_p11)
}
  0x58   :  { %s5377_s13 = smov 128   ;;  %s5378_s23 = smov 8  }
  0x59   :  { %45 = dma.hbm_to_vmem [thread:$0]  %s5836_s3, 2048, %s40_s0, [#allocation3], %s5377_s13, %s5377_s13, %s5378_s23  }
  0x5a   :  { %s5379_s24 = smov [#allocation6]   ;;  %s5380_s28 = smov [#allocation9]  }
  0x5b   :  { %s64_s26 = sshll.u32 %s5379_s24, 4  ;;  %s88_s10 = sshll.u32 %s5380_s28, 4  ;;  %s65_s26 = int_to_ptr.vmem [resolvable:$true] %s64_s26  ;;  %s89_s10 = int_to_ptr.vmem [resolvable:$true] %s88_s10 }
  0x5c   :  { %s5248_s30 = scalar_lea.hbm %s5839_s6, 32 }
  0x5d   :  { %p5249_p12 = scmp.ne.s32.totalorder %s5839_s6, %s5248_s30  ;;  %p5252_p13 = scmp.lt.u32.totalorder %s5248_s30, %s5839_s6 }
  0x5f   :  { %p5254_p0 = pnand %p5252_p13, %p5249_p12 }
  0x61   :  { %5257 = shalt.err (!%p5254_p0)
}
  0x62   :  { %s5258_s3 = scalar_lea.vmem %s65_s26, 32  ;;  %p5263_p2 = scmp.lt.s32.totalorder %s65_s26, %s65_s26 }
  0x63   :  { %p5259_p1 = scmp.ne.s32.totalorder %s65_s26, %s5258_s3  ;;  %p5264_p3 = scmp.lt.s32.totalorder %s5258_s3, %s5258_s3 }
  0x65   :  { %p5265_p4 = por %p5264_p3, %p5263_p2 }
  0x67   :  { %p5266_p5 = pnand %p5265_p4, %p5259_p1 }
  0x69   :  { %5269 = shalt.err (!%p5266_p5)
}
  0x6a   :  { %67 = dma.hbm_to_vmem [thread:$0]  %s5839_s6, 32, %s65_s26, [#allocation5]  }
  0x6b   :  { %s5270_s20 = scalar_lea.hbm %s5842_s9, 64 }
  0x6c   :  { %p5271_p6 = scmp.ne.s32.totalorder %s5842_s9, %s5270_s20  ;;  %p5274_p7 = scmp.lt.u32.totalorder %s5270_s20, %s5842_s9 }
  0x6e   :  { %p5276_p8 = pnand %p5274_p7, %p5271_p6 }
  0x70   :  { %5279 = shalt.err (!%p5276_p8)
}
  0x71   :  { %s5280_s29 = scalar_lea.vmem %s89_s10, 64  ;;  %p5285_p10 = scmp.lt.s32.totalorder %s89_s10, %s89_s10 }
  0x72   :  { %p5281_p9 = scmp.ne.s32.totalorder %s89_s10, %s5280_s29  ;;  %p5286_p11 = scmp.lt.s32.totalorder %s5280_s29, %s5280_s29 }
  0x74   :  { %p5287_p12 = por %p5286_p11, %p5285_p10 }
  0x76   :  { %p5288_p13 = pnand %p5287_p12, %p5281_p9 }
  0x78   :  { %5291 = shalt.err (!%p5288_p13)
}
  0x79   :  { %91 = dma.hbm_to_vmem [thread:$0]  %s5842_s9, 64, %s89_s10, [#allocation8]  }
  0x7a   :  { %s5381_s30 = smov [#allocation12]   ;;  %s5292_s5 = scalar_lea.hbm %s5844_s11, 32768 }
  0x7b   :  { %s107_s18 = sshll.u32 %s5381_s30, 4  ;;  %p5293_p0 = scmp.ne.s32.totalorder %s5844_s11, %s5292_s5  ;;  %s108_s18 = int_to_ptr.vmem [resolvable:$true] %s107_s18 }
  0x7c   :  { %p5296_p1 = scmp.lt.u32.totalorder %s5292_s5, %s5844_s11 }
  0x7e   :  { %p5298_p2 = pnand %p5296_p1, %p5293_p0 }
  0x80   :  { %5301 = shalt.err (!%p5298_p2)
}
  0x81   :  { %s5302_s1 = scalar_lea.vmem %s108_s18, 32768  ;;  %p5307_p4 = scmp.lt.s32.totalorder %s108_s18, %s108_s18 }
  0x82   :  { %p5303_p3 = scmp.ne.s32.totalorder %s108_s18, %s5302_s1  ;;  %p5308_p5 = scmp.lt.s32.totalorder %s5302_s1, %s5302_s1 }
  0x84   :  { %p5309_p6 = por %p5308_p5, %p5307_p4 }
  0x86   :  { %p5310_p7 = pnand %p5309_p6, %p5303_p3 }
  0x88   :  { %5313 = shalt.err (!%p5310_p7)
}
  0x89   :  { %s5382_s9 = smov 512   ;;  %s5383_s10 = smov 32  }
  0x8a   :  { %113 = dma.hbm_to_vmem [thread:$0]  %s5844_s11, 32768, %s108_s18, [#allocation11], %s5382_s9, %s5382_s9, %s5383_s10  }
  0x8b   :  { %s5384_s24 = smov [#allocation15]   ;;  %s5385_s21 = smov [#allocation16]  }
  0x8c   :  { %s132_s28 = sshll.u32 %s5384_s24, 4  ;;  %s141_s29 = sshll.u32 %s5385_s21, 4  ;;  %s133_s28 = int_to_ptr.vmem [resolvable:$true] %s132_s28  ;;  %s5585_s29 = int_to_ptr.vmem [resolvable:$true] %s141_s29 }
  0x8d   :  { %s5314_s30 = scalar_lea.hbm %s5847_s14, 128 }
  0x8e   :  { %p5315_p8 = scmp.ne.s32.totalorder %s5847_s14, %s5314_s30  ;;  %p5318_p9 = scmp.lt.u32.totalorder %s5314_s30, %s5847_s14 }
  0x90   :  { %p5320_p10 = pnand %p5318_p9, %p5315_p8 }
  0x92   :  { %5323 = shalt.err (!%p5320_p10)
}
  0x93   :  { %s5324_s11 = scalar_lea.vmem %s133_s28, 128  ;;  %p5329_p12 = scmp.lt.s32.totalorder %s133_s28, %s133_s28 }
  0x94   :  { %p5325_p11 = scmp.ne.s32.totalorder %s133_s28, %s5324_s11  ;;  %p5330_p13 = scmp.lt.s32.totalorder %s5324_s11, %s5324_s11 }
  0x96   :  { %p5331_p0 = por %p5330_p13, %p5329_p12 }
  0x98   :  { %p5332_p1 = pnand %p5331_p0, %p5325_p11 }
  0x9a   :  { %5335 = shalt.err (!%p5332_p1)
}
  0x9b   :  { %135 = dma.hbm_to_vmem [thread:$0]  %s5847_s14, 128, %s133_s28, [#allocation14]  }
  0x9c   :  { %s5336_s1 = scalar_lea.hbm %s5848_s15, 16384 }
  0x9d   :  { %p5337_p2 = scmp.ne.s32.totalorder %s5848_s15, %s5336_s1  ;;  %p5340_p3 = scmp.lt.u32.totalorder %s5336_s1, %s5848_s15 }
  0x9f   :  { %p5342_p4 = pnand %p5340_p3, %p5337_p2 }
  0xa1   :  { %5345 = shalt.err (!%p5342_p4)
}
  0xa2   :  { %s5346_s24 = scalar_lea.vmem %s5585_s29, 16384  ;;  %p5351_p6 = scmp.lt.s32.totalorder %s5585_s29, %s5585_s29 }
  0xa3   :  { %p5347_p5 = scmp.ne.s32.totalorder %s5585_s29, %s5346_s24  ;;  %p5352_p7 = scmp.lt.s32.totalorder %s5346_s24, %s5346_s24 }
  0xa5   :  { %p5353_p8 = por %p5352_p7, %p5351_p6 }
  0xa7   :  { %p5354_p9 = pnand %p5353_p8, %p5347_p5 }
  0xa9   :  { %5357 = shalt.err (!%p5354_p9)
}
  0xaa   :  { %147 = dma.hbm_to_vmem [thread:$0]  %s5848_s15, 16384, %s5585_s29, [#allocation17], %s5377_s13, %s5377_s13, %s5378_s23  }
  0xab   :  { %5358 = dma.done.wait [#allocation3], 2048  }
  0xac   :  { %5359 = vsyncadd [#allocation3], 4294965248 }
  0xad   :  { %5360 = dma.done.wait [#allocation5], 64  }
  0xae   :  { %5361 = vsyncadd [#allocation5], 4294967232 }
  0xaf   :  { %5362 = dma.done.wait [#allocation8], 8256  }
  0xb0   :  { %5363 = vsyncadd [#allocation8], 4294959040 }
  0xb1   :  { %5364 = dma.done.wait [#allocation11], 32832  }
  0xb2   :  { %5365 = vsyncadd [#allocation11], 4294934464 }
  0xb3   :  { %5366 = dma.done.wait [#allocation14], 256  }
  0xb4   :  { %5367 = vsyncadd [#allocation14], 4294967040 }
  0xb5   :  { %5368 = dma.done.wait [#allocation17], 16384  }
  0xb6   :  { %5369 = vsyncadd [#allocation17], 4294950912  ;;  %v5386_v0 = vmov 0.0   ;;  %vm5387_vm0 = vmmov 0   ;;  %s5854_s26 = sld [smem:[#allocation25_spill]]  ;;  %s5855_s30 = sld [smem:[#allocation24_spill]] }
  0xb7   :  { %4729 = vmatprep.subr.bf16.mxu0 %v5386_v0  ;;  %4733 = vmatprep.mubr.msk.bf16.mxu0 %vm5387_vm0, %v5386_v0  ;;  %v4794_v4 = vld [vmem:[#allocation2 + $0x4] ss:$8 sps:$4 sm:$0xff]   ;;  %v4796_v5 = vld [vmem:[#allocation2] ss:$8 sps:$4 sm:$0xff]   ;;  %v4797_v6 = vld [vmem:[#allocation2 + $0x14] ss:$8 sps:$4 sm:$0xff]  }
  0xb8   :  { %362 = vmatprep.subr.bf16.mxu1 %v4794_v4  ;;  %vm206_vm1 = vcmask 261120   ;;  %v4799_v8 = vld [vmem:[#allocation2 + $0x10] ss:$8 sps:$4 sm:$0xff]   ;;  %v4800_v9 = vld [vmem:[#allocation2 + $0x24] ss:$8 sps:$4 sm:$0xff]   ;;  %v5388_v21 = vmov 0  }
  0xb9   :  { %363 = vmatpush1.bf16.msra.mxu1 %v4796_v5  ;;  %v4802_v10 = vld [vmem:[#allocation2 + $0x20] ss:$8 sps:$4 sm:$0xff]   ;;  %v4803_v11 = vld [vmem:[#allocation2 + $0x34] ss:$8 sps:$4 sm:$0xff]   ;;  %v4805_v12 = vld [vmem:[#allocation2 + $0x30] ss:$8 sps:$4 sm:$0xff]   ;;  %394 = vmatprep.mubr.bf16.mxu1 %v5388_v21 }
  0xba   :  { %364 = vmatprep.subr.bf16.mxu1 %v4797_v6  ;;  %v4806_v13 = vld [vmem:[#allocation2 + $0x44] ss:$8 sps:$4 sm:$0xff]   ;;  %v4808_v14 = vld [vmem:[#allocation2 + $0x40] ss:$8 sps:$4 sm:$0xff]   ;;  %v4809_v15 = vld [vmem:[#allocation2 + $0x54] ss:$8 sps:$4 sm:$0xff]  }
  0xbb   :  { %v4811_v16 = vld [vmem:[#allocation2 + $0x50] ss:$8 sps:$4 sm:$0xff]   ;;  %v4812_v17 = vld [vmem:[#allocation2 + $0x64] ss:$8 sps:$4 sm:$0xff]   ;;  %v4814_v18 = vld [vmem:[#allocation2 + $0x60] ss:$8 sps:$4 sm:$0xff]  }
  0xbc   :  { %v4792_v1 = vld [vmem:[%s5854_s26] sm:$0xff]   ;;  %v4793_v2 = vld [vmem:[%s5854_s26 + $0x8] sm:$0xff]  }
  0xbd   :  { %4730 = vmatpush3.bf16.msra.mxu0 %v4792_v1  ;;  %v181_v3 = vld [vmem:[%s5855_s30] sm:$0xff]  ;;  %365 = vmatpush1.bf16.msra.mxu1 %v4799_v8  ;;  %v4815_v19 = vld [vmem:[#allocation2 + $0x74] ss:$8 sps:$4 sm:$0xff]   ;;  %v4817_v20 = vld [vmem:[#allocation2 + $0x70] ss:$8 sps:$4 sm:$0xff]  }
  0xbe   :  { %4731 = vmatprep.subr.bf16.mxu0 %v5386_v0  ;;  %v182_v7 = vpack.c.bf16 %v181_v3, %v181_v3  ;;  %366 = vmatprep.subr.bf16.mxu1 %v4800_v9  ;;  %v4820_v22 = vld [vmem:[#allocation7 + $0x4] ss:$16 sps:$4 sm:$0xff]   ;;  %v4818_v31 = vld [vmem:[#allocation7] ss:$16 sps:$4 sm:$0xff]   ;;  %v4868_v63 = vld [vmem:[#allocation7 + $0xc] ss:$16 sps:$4 sm:$0xff]   ;;  %v272_v0 = vlaneseq }
  0xbf   :  { %v4258_v23 = vld [vmem:[%s5835_s2] ss:$0 sm:$0xff]  ;;  %v4821_v34 = vld [vmem:[#allocation7 + $0x20] ss:$16 sps:$4 sm:$0xff]  }
  0xc0   :  { %v4823_v33 = vld [vmem:[#allocation7 + $0x24] ss:$16 sps:$4 sm:$0xff]   ;;  %v4824_v36 = vld [vmem:[#allocation7 + $0x40] ss:$16 sps:$4 sm:$0xff]   ;;  %v5631_v1 = vshrl.u32 %v272_v0, 7 }
  0xc1   :  { %4732 = vmatpush3.bf16.msra.mxu0 %v4793_v2  ;;  %367 = vmatpush1.bf16.msra.mxu1 %v4802_v10  ;;  %v4826_v35 = vld [vmem:[#allocation7 + $0x44] ss:$16 sps:$4 sm:$0xff]   ;;  %v4827_v38 = vld [vmem:[#allocation7 + $0x60] ss:$16 sps:$4 sm:$0xff]  }
  0xc2   :  { %368 = vmatprep.subr.bf16.mxu1 %v4803_v11  ;;  %v4829_v37 = vld [vmem:[#allocation7 + $0x64] ss:$16 sps:$4 sm:$0xff]   ;;  %v4830_v40 = vld [vmem:[#allocation7 + $0x80] ss:$16 sps:$4 sm:$0xff]   ;;  %v5634_v2 = vsub.s32 0, %v5631_v1  ;;  %v5640_v4 = vsub.s32 1, %v5631_v1 }
  0xc3   :  { %v4832_v39 = vld [vmem:[#allocation7 + $0x84] ss:$16 sps:$4 sm:$0xff]   ;;  %v4833_v42 = vld [vmem:[#allocation7 + $0xa0] ss:$16 sps:$4 sm:$0xff]  }
  0xc4   :  { %4734 = vmatmul.mubr.msk.bf16.vlgmr.msra.gmra.mrb[0].mxu0 %vm206_vm1, %v182_v7  ;;  %v4835_v41 = vld [vmem:[#allocation7 + $0xa4] ss:$16 sps:$4 sm:$0xff]   ;;  %v4836_v44 = vld [vmem:[#allocation7 + $0xc0] ss:$16 sps:$4 sm:$0xff]  }
  0xc5   :  { %369 = vmatpush1.bf16.msra.mxu1 %v4805_v12  ;;  %v4838_v43 = vld [vmem:[#allocation7 + $0xc4] ss:$16 sps:$4 sm:$0xff]   ;;  %v4839_v46 = vld [vmem:[#allocation7 + $0xe0] ss:$16 sps:$4 sm:$0xff]  }
  0xc6   :  { %370 = vmatprep.subr.bf16.mxu1 %v4806_v13  ;;  %v4841_v45 = vld [vmem:[#allocation7 + $0xe4] ss:$16 sps:$4 sm:$0xff]   ;;  %v4842_v48 = vld [vmem:[#allocation7 + $0x100] ss:$16 sps:$4 sm:$0xff]  }
  0xc7   :  { %v4844_v47 = vld [vmem:[#allocation7 + $0x104] ss:$16 sps:$4 sm:$0xff]   ;;  %v4845_v50 = vld [vmem:[#allocation7 + $0x120] ss:$16 sps:$4 sm:$0xff]  }
  0xc8   :  { %v4847_v49 = vld [vmem:[#allocation7 + $0x124] ss:$16 sps:$4 sm:$0xff]   ;;  %v4848_v52 = vld [vmem:[#allocation7 + $0x140] ss:$16 sps:$4 sm:$0xff]  }
  0xc9   :  { %371 = vmatpush1.bf16.msra.mxu1 %v4808_v14  ;;  %v4850_v51 = vld [vmem:[#allocation7 + $0x144] ss:$16 sps:$4 sm:$0xff]   ;;  %v4851_v54 = vld [vmem:[#allocation7 + $0x160] ss:$16 sps:$4 sm:$0xff]  }
  0xca   :  { %372 = vmatprep.subr.bf16.mxu1 %v4809_v15  ;;  %v4853_v53 = vld [vmem:[#allocation7 + $0x164] ss:$16 sps:$4 sm:$0xff]   ;;  %v4854_v56 = vld [vmem:[#allocation7 + $0x180] ss:$16 sps:$4 sm:$0xff]  }
  0xcb   :  { %v4856_v55 = vld [vmem:[#allocation7 + $0x184] ss:$16 sps:$4 sm:$0xff]   ;;  %v4857_v58 = vld [vmem:[#allocation7 + $0x1a0] ss:$16 sps:$4 sm:$0xff]  }
  0xcc   :  { %v4859_v57 = vld [vmem:[#allocation7 + $0x1a4] ss:$16 sps:$4 sm:$0xff]   ;;  %v4860_v60 = vld [vmem:[#allocation7 + $0x1c0] ss:$16 sps:$4 sm:$0xff]  }
  0xcd   :  { %373 = vmatpush1.bf16.msra.mxu1 %v4811_v16  ;;  %v4862_v59 = vld [vmem:[#allocation7 + $0x1c4] ss:$16 sps:$4 sm:$0xff]   ;;  %v4863_v62 = vld [vmem:[#allocation7 + $0x1e0] ss:$16 sps:$4 sm:$0xff]  }
  0xce   :  { %374 = vmatprep.subr.bf16.mxu1 %v4812_v17  ;;  %v4865_v61 = vld [vmem:[#allocation7 + $0x1e4] ss:$16 sps:$4 sm:$0xff]  }
  0xcf   :  { %v270_v3 = vld [vmem:[%s5837_s4] sm:$0x3] }
  0xd0   :  { %v275_v5 = vrot.slane %v270_v3, %v5634_v2  ;;  %v279_v6 = vrot.slane %v270_v3, %v5640_v4 }
  0xd1   :  { %375 = vmatpush1.bf16.msra.mxu1 %v4814_v18 }
  0xd2   :  { %376 = vmatprep.subr.bf16.mxu1 %v4815_v19 }
  0xd5   :  { %377 = vmatpush1.bf16.msra.mxu1 %v4817_v20 }
  0xd6   :  { %884 = vmatprep.subr.bf16.mxu1 %v4820_v22 }
 0x197   :  { %v244_v24 = vpop.f32.mrb[0].mxu0 }
 0x198   :  { %v245_v25 = vadd.f32 %v4258_v23, %v244_v24  ;;  %v4735_v26 = vpop.f32.mrb[1].mxu0 }
 0x199   :  { %v247_v27 = vpop.f32.mrb[2].mxu0 }
 0x19a   :  { %vm250_vm2 = vcmp.gt.f32.partialorder %v245_v25, 0.0  ;;  %v251_v28 = vmul.f32 0.2, %v245_v25  ;;  %v4736_v29 = vpop.f32.mrb[3].mxu0 }
 0x19c   :  { %v252_v30 = vsel %vm250_vm2, %v245_v25, %v251_v28 }
 0x19d   :  { %v253_v32 = vpack.c.bf16 %v252_v30, %v252_v30 }
 0x19f   :  { %395 = vmatmul.mubr.bf16.vlgmr.msra.gmra.mrb[0].mxu1 %v253_v32 }
 0x1a0   :  { %885 = vmatpush1.bf16.msra.mxu1 %v4818_v31 }
 0x1a1   :  { %886 = vmatprep.subr.bf16.mxu1 %v4823_v33 }
 0x1a4   :  { %887 = vmatpush1.bf16.msra.mxu1 %v4821_v34 }
 0x1a5   :  { %888 = vmatprep.subr.bf16.mxu1 %v4826_v35 }
 0x1a8   :  { %889 = vmatpush1.bf16.msra.mxu1 %v4824_v36 }
 0x1a9   :  { %890 = vmatprep.subr.bf16.mxu1 %v4829_v37 }
 0x1ac   :  { %891 = vmatpush1.bf16.msra.mxu1 %v4827_v38 }
 0x1ad   :  { %892 = vmatprep.subr.bf16.mxu1 %v4832_v39 }
 0x1b0   :  { %893 = vmatpush1.bf16.msra.mxu1 %v4830_v40 }
 0x1b1   :  { %894 = vmatprep.subr.bf16.mxu1 %v4835_v41 }
 0x1b4   :  { %895 = vmatpush1.bf16.msra.mxu1 %v4833_v42 }
 0x1b5   :  { %896 = vmatprep.subr.bf16.mxu1 %v4838_v43 }
 0x1b8   :  { %897 = vmatpush1.bf16.msra.mxu1 %v4836_v44 }
 0x1b9   :  { %898 = vmatprep.subr.bf16.mxu1 %v4841_v45 }
 0x1bc   :  { %899 = vmatpush1.bf16.msra.mxu1 %v4839_v46 }
 0x1bd   :  { %900 = vmatprep.subr.bf16.mxu1 %v4844_v47  ;;  %v442_v47 = vld [vmem:[#allocation4] sm:$0x3] }
 0x1c0   :  { %901 = vmatpush1.bf16.msra.mxu1 %v4842_v48  ;;  %v456_v48 = vld [vmem:[#allocation6] sm:$0x3] }
 0x1c1   :  { %902 = vmatprep.subr.bf16.mxu1 %v4847_v49  ;;  %v447_v49 = vrot.slane %v442_v47, %v5634_v2 }
 0x1c4   :  { %903 = vmatpush1.bf16.msra.mxu1 %v4845_v50 }
 0x1c5   :  { %904 = vmatprep.subr.bf16.mxu1 %v4850_v51  ;;  %v451_v51 = vrot.slane %v442_v47, %v5640_v4 }
 0x1c8   :  { %905 = vmatpush1.bf16.msra.mxu1 %v4848_v52 }
 0x1c9   :  { %906 = vmatprep.subr.bf16.mxu1 %v4853_v53 }
 0x1cc   :  { %907 = vmatpush1.bf16.msra.mxu1 %v4851_v54  ;;  %v461_v54 = vrot.slane %v456_v48, %v5634_v2 }
 0x1cd   :  { %908 = vmatprep.subr.bf16.mxu1 %v4856_v55 }
 0x1d0   :  { %909 = vmatpush1.bf16.msra.mxu1 %v4854_v56  ;;  %v465_v56 = vrot.slane %v456_v48, %v5640_v4 }
 0x1d1   :  { %910 = vmatprep.subr.bf16.mxu1 %v4859_v57 }
 0x1d4   :  { %911 = vmatpush1.bf16.msra.mxu1 %v4857_v58 }
 0x1d5   :  { %912 = vmatprep.subr.bf16.mxu1 %v4862_v59 }
 0x1d8   :  { %913 = vmatpush1.bf16.msra.mxu1 %v4860_v60 }
 0x1d9   :  { %914 = vmatprep.subr.bf16.mxu1 %v4865_v61 }
 0x1dc   :  { %915 = vmatpush1.bf16.msra.mxu1 %v4863_v62 }
 0x1dd   :  { %925 = vmatprep.subr.bf16.mxu1 %v4868_v63 }
 0x272   :  { %v396_v7 = vpop.f32.mrb[0].mxu1 }
 0x273   :  { %v397_v8 = vadd.f32 %v396_v7, %v275_v5  ;;  %v398_v9 = vpop.f32.mrb[1].mxu1  ;;  %v4866_v5 = vld [vmem:[#allocation7 + $0x8] ss:$16 sps:$4 sm:$0xff]   ;;  %v4871_v7 = vld [vmem:[#allocation7 + $0x2c] ss:$16 sps:$4 sm:$0xff]  }
 0x274   :  { %v399_v10 = vadd.f32 %v398_v9, %v279_v6  ;;  %v400_v11 = vpop.f32.mrb[2].mxu1  ;;  %v4874_v9 = vld [vmem:[#allocation7 + $0x4c] ss:$16 sps:$4 sm:$0xff]  }
 0x275   :  { %v403_v12 = vrot.slane %v397_v8, 4  ;;  %v401_v13 = vpop.f32.mrb[3].mxu1  ;;  %v4877_v11 = vld [vmem:[#allocation7 + $0x6c] ss:$16 sps:$4 sm:$0xff]  }
 0x276   :  { %v409_v14 = vrot.slane %v399_v10, 4  ;;  %v4880_v13 = vld [vmem:[#allocation7 + $0x8c] ss:$16 sps:$4 sm:$0xff]  }
 0x277   :  { %v404_v15 = vadd.f32 %v403_v12, %v397_v8  ;;  %v4875_v12 = vld [vmem:[#allocation7 + $0x68] ss:$16 sps:$4 sm:$0xff]  }
 0x278   :  { %v410_v16 = vadd.f32 %v409_v14, %v399_v10  ;;  %v4878_v14 = vld [vmem:[#allocation7 + $0x88] ss:$16 sps:$4 sm:$0xff]  }
 0x279   :  { %v405_v17 = vrot.slane %v404_v15, 2 }
 0x27a   :  { %v411_v18 = vrot.slane %v410_v16, 2 }
 0x27b   :  { %v406_v19 = vadd.f32 %v405_v17, %v404_v15  ;;  %v4883_v15 = vld [vmem:[#allocation7 + $0xac] ss:$16 sps:$4 sm:$0xff]  }
 0x27c   :  { %v412_v20 = vadd.f32 %v411_v18, %v410_v16  ;;  %v4881_v16 = vld [vmem:[#allocation7 + $0xa8] ss:$16 sps:$4 sm:$0xff]   ;;  %v4886_v17 = vld [vmem:[#allocation7 + $0xcc] ss:$16 sps:$4 sm:$0xff]  }
 0x27d   :  { %v407_v21 = vrot.slane %v406_v19, 1  ;;  %v4884_v18 = vld [vmem:[#allocation7 + $0xc8] ss:$16 sps:$4 sm:$0xff]  }
 0x27e   :  { %v413_v22 = vrot.slane %v412_v20, 1 }
 0x27f   :  { %v408_v23 = vadd.f32 %v407_v21, %v406_v19  ;;  %v4889_v19 = vld [vmem:[#allocation7 + $0xec] ss:$16 sps:$4 sm:$0xff]  }
 0x280   :  { %v414_v24 = vadd.f32 %v413_v22, %v412_v20  ;;  %v4887_v20 = vld [vmem:[#allocation7 + $0xe8] ss:$16 sps:$4 sm:$0xff]   ;;  %v4892_v21 = vld [vmem:[#allocation7 + $0x10c] ss:$16 sps:$4 sm:$0xff]  }
 0x281   :  { %v416_v25 = vmul.f32 0.125, %v408_v23  ;;  %v4890_v22 = vld [vmem:[#allocation7 + $0x108] ss:$16 sps:$4 sm:$0xff]   ;;  %v4895_v23 = vld [vmem:[#allocation7 + $0x12c] ss:$16 sps:$4 sm:$0xff]  }
 0x282   :  { %v417_v26 = vmul.f32 0.125, %v414_v24  ;;  %v4893_v24 = vld [vmem:[#allocation7 + $0x128] ss:$16 sps:$4 sm:$0xff]  }
 0x283   :  { %v418_v27 = vsub.f32 %v397_v8, %v416_v25  ;;  %v4869_v8 = vld [vmem:[#allocation7 + $0x28] ss:$16 sps:$4 sm:$0xff]   ;;  %v4898_v25 = vld [vmem:[#allocation7 + $0x14c] ss:$16 sps:$4 sm:$0xff]  }
 0x284   :  { %v419_v28 = vsub.f32 %v399_v10, %v417_v26  ;;  %v4872_v10 = vld [vmem:[#allocation7 + $0x48] ss:$16 sps:$4 sm:$0xff]  }
 0x285   :  { %v420_v29 = vmul.f32 %v418_v27, %v418_v27  ;;  %v4896_v26 = vld [vmem:[#allocation7 + $0x148] ss:$16 sps:$4 sm:$0xff]  }
 0x286   :  { %v421_v30 = vmul.f32 %v419_v28, %v419_v28 }
 0x287   :  { %v422_v31 = vrot.slane %v420_v29, 4 }
 0x288   :  { %v428_v32 = vrot.slane %v421_v30, 4 }
 0x289   :  { %v423_v33 = vadd.f32 %v422_v31, %v420_v29  ;;  %v4904_v29 = vld [vmem:[#allocation7 + $0x18c] ss:$16 sps:$4 sm:$0xff]  }
 0x28a   :  { %v429_v34 = vadd.f32 %v428_v32, %v421_v30  ;;  %v4902_v30 = vld [vmem:[#allocation7 + $0x188] ss:$16 sps:$4 sm:$0xff]   ;;  %v4907_v31 = vld [vmem:[#allocation7 + $0x1ac] ss:$16 sps:$4 sm:$0xff]  }
 0x28b   :  { %v424_v35 = vrot.slane %v423_v33, 2  ;;  %v4905_v32 = vld [vmem:[#allocation7 + $0x1a8] ss:$16 sps:$4 sm:$0xff]  }
 0x28c   :  { %v430_v36 = vrot.slane %v429_v34, 2 }
 0x28d   :  { %v425_v37 = vadd.f32 %v424_v35, %v423_v33  ;;  %v4910_v33 = vld [vmem:[#allocation7 + $0x1cc] ss:$16 sps:$4 sm:$0xff]  }
 0x28e   :  { %v431_v38 = vadd.f32 %v430_v36, %v429_v34  ;;  %v4908_v34 = vld [vmem:[#allocation7 + $0x1c8] ss:$16 sps:$4 sm:$0xff]   ;;  %v4913_v35 = vld [vmem:[#allocation7 + $0x1ec] ss:$16 sps:$4 sm:$0xff]  }
 0x28f   :  { %v426_v39 = vrot.slane %v425_v37, 1  ;;  %v1110_v36 = vld [vmem:[#allocation12] sm:$0xff] }
 0x290   :  { %v432_v40 = vrot.slane %v431_v38, 1 }
 0x291   :  { %v427_v41 = vadd.f32 %v426_v39, %v425_v37  ;;  %v1114_v37 = vld [vmem:[#allocation12 + $0x20] sm:$0xff] }
 0x292   :  { %v433_v42 = vadd.f32 %v432_v40, %v431_v38  ;;  %v4911_v38 = vld [vmem:[#allocation7 + $0x1e8] ss:$16 sps:$4 sm:$0xff]   ;;  %v4343_v39 = vcombine.high %v1110_v36, %v1114_v37  ;;  %v4342_v40 = vcombine.low %v1110_v36, %v1114_v37 }
 0x293   :  { %v434_v43 = vmul.f32 0.125, %v427_v41  ;;  %v1118_v41 = vld [vmem:[#allocation12 + $0x40] sm:$0xff] }
 0x294   :  { %v435_v44 = vmul.f32 0.125, %v433_v42  ;;  %v1122_v42 = vld [vmem:[#allocation12 + $0x60] sm:$0xff] }
 0x295   :  { %v436_v45 = vadd.f32 0.8, %v434_v43  ;;  %v4351_v43 = vcombine.high %v1118_v41, %v1122_v42  ;;  %v1230_v36 = vld [vmem:[#allocation12 + $0x3c0] sm:$0xff] }
 0x296   :  { %v437_v46 = vadd.f32 0.8, %v435_v44  ;;  %v4350_v44 = vcombine.low %v1118_v41, %v1122_v42  ;;  %v1234_v37 = vld [vmem:[#allocation12 + $0x3e0] sm:$0xff] }
 0x297   :  { %5106 = vrsqrt.f32 %v436_v45  ;;  %v1126_v45 = vld [vmem:[#allocation12 + $0x80] sm:$0xff] }
 0x298   :  { %5108 = vrsqrt.f32 %v437_v46  ;;  %v1130_v46 = vld [vmem:[#allocation12 + $0xa0] sm:$0xff] }
 0x299   :  { %v4359_v47 = vcombine.high %v1126_v45, %v1130_v46  ;;  %v4358_v48 = vcombine.low %v1126_v45, %v1130_v46  ;;  %v1242_v41 = vld [vmem:[#allocation12 + $0x420] sm:$0xff]  ;;  %v5654_v45 = vld [vmem:[#allocation12 + $0x28] sm:$0xff] }
 0x2a1   :  { %v5107_v50 = vpop.eup %5106 }
 0x2a2   :  { %v5109_v52 = vpop.eup %5108  ;;  %v440_v53 = vmul.f32 %v5107_v50, %v418_v27  ;;  %v4901_v27 = vld [vmem:[#allocation7 + $0x16c] ss:$16 sps:$4 sm:$0xff]  }
 0x2a3   :  { %v441_v55 = vmul.f32 %v5109_v52, %v419_v28  ;;  %v4899_v28 = vld [vmem:[#allocation7 + $0x168] ss:$16 sps:$4 sm:$0xff]  }
 0x2a4   :  { %v454_v57 = vmul.f32 %v447_v49, %v440_v53  ;;  %v1134_v49 = vld [vmem:[#allocation12 + $0xc0] sm:$0xff] }
 0x2a5   :  { %v455_v58 = vmul.f32 %v451_v51, %v441_v55  ;;  %v1138_v50 = vld [vmem:[#allocation12 + $0xe0] sm:$0xff] }
 0x2a6   :  { %v468_v59 = vadd.f32 %v461_v54, %v454_v57  ;;  %v4367_v51 = vcombine.high %v1134_v49, %v1138_v50  ;;  %v4366_v52 = vcombine.low %v1134_v49, %v1138_v50  ;;  %v1142_v53 = vld [vmem:[#allocation12 + $0x100] sm:$0xff] }
 0x2a7   :  { %v469_v60 = vadd.f32 %v465_v56, %v455_v58  ;;  %v1146_v54 = vld [vmem:[#allocation12 + $0x120] sm:$0xff] }
 0x2a8   :  { %vm470_vm3 = vcmp.gt.f32.partialorder %v468_v59, 0.0  ;;  %v472_v61 = vmul.f32 0.2, %v468_v59  ;;  %v4375_v55 = vcombine.high %v1142_v53, %v1146_v54  ;;  %v4374_v56 = vcombine.low %v1142_v53, %v1146_v54  ;;  %v1150_v57 = vld [vmem:[#allocation12 + $0x140] sm:$0xff] }
 0x2a9   :  { %vm471_vm4 = vcmp.gt.f32.partialorder %v469_v60, 0.0  ;;  %v473_v62 = vmul.f32 0.2, %v469_v60  ;;  %v1154_v58 = vld [vmem:[#allocation12 + $0x160] sm:$0xff] }
 0x2aa   :  { %v474_v63 = vsel %vm470_vm3, %v468_v59, %v472_v61  ;;  %v4383_v59 = vcombine.high %v1150_v57, %v1154_v58  ;;  %v1158_v61 = vld [vmem:[#allocation12 + $0x180] sm:$0xff] }
 0x2ab   :  { %v475_v0 = vsel %vm471_vm4, %v469_v60, %v473_v62  ;;  %v5648_v6 = vpack.c.bf16 %v474_v63, %v474_v63  ;;  %v4382_v60 = vcombine.low %v1150_v57, %v1154_v58  ;;  %v1162_v62 = vld [vmem:[#allocation12 + $0x1a0] sm:$0xff] }
 0x2ac   :  { %v477_v3 = vpack.c.bf16 %v475_v0, %v475_v0  ;;  %v4391_v63 = vcombine.high %v1158_v61, %v1162_v62  ;;  %v4390_v0 = vcombine.low %v1158_v61, %v1162_v62  ;;  %v1250_v49 = vld [vmem:[#allocation12 + $0x460] sm:$0xff] }
 0x2ad   :  { %v1258_v53 = vld [vmem:[#allocation12 + $0x4a0] sm:$0xff] }
 0x2ae   :  { %916 = vmatprep.mubr.bf16.mxu1 %v477_v3  ;;  %v1266_v57 = vld [vmem:[#allocation12 + $0x4e0] sm:$0xff] }
 0x2af   :  { %917 = vmatmul.mubr.bf16.vlgmr.msra.gmra.mrb[4].mxu1 %v5648_v6  ;;  %v1274_v61 = vld [vmem:[#allocation12 + $0x520] sm:$0xff] }
 0x2b0   :  { %926 = vmatpush1.bf16.msra.mxu1 %v4866_v5  ;;  %957 = vmatprep.mubr.bf16.mxu1 %v477_v3  ;;  %v1166_v3 = vld [vmem:[#allocation12 + $0x1c0] sm:$0xff] }
 0x2b1   :  { %927 = vmatprep.subr.bf16.mxu1 %v4871_v7  ;;  %v1170_v5 = vld [vmem:[#allocation12 + $0x1e0] sm:$0xff] }
 0x2b2   :  { %v4398_v7 = vcombine.low %v1166_v3, %v1170_v5 }
 0x2b4   :  { %928 = vmatpush1.bf16.msra.mxu1 %v4869_v8  ;;  %v1174_v8 = vld [vmem:[#allocation12 + $0x200] sm:$0xff] }
 0x2b5   :  { %929 = vmatprep.subr.bf16.mxu1 %v4874_v9  ;;  %v1178_v9 = vld [vmem:[#allocation12 + $0x220] sm:$0xff] }
 0x2b8   :  { %930 = vmatpush1.bf16.msra.mxu1 %v4872_v10  ;;  %v4407_v10 = vcombine.high %v1174_v8, %v1178_v9 }
 0x2b9   :  { %931 = vmatprep.subr.bf16.mxu1 %v4877_v11  ;;  %v4406_v11 = vcombine.low %v1174_v8, %v1178_v9  ;;  %v1290_v8 = vld [vmem:[#allocation12 + $0x5a0] sm:$0xff] }
 0x2bc   :  { %932 = vmatpush1.bf16.msra.mxu1 %v4875_v12  ;;  %v1182_v12 = vld [vmem:[#allocation12 + $0x240] sm:$0xff] }
 0x2bd   :  { %933 = vmatprep.subr.bf16.mxu1 %v4880_v13  ;;  %v1186_v13 = vld [vmem:[#allocation12 + $0x260] sm:$0xff] }
 0x2c0   :  { %934 = vmatpush1.bf16.msra.mxu1 %v4878_v14  ;;  %v4415_v14 = vcombine.high %v1182_v12, %v1186_v13 }
 0x2c1   :  { %935 = vmatprep.subr.bf16.mxu1 %v4883_v15  ;;  %v4414_v15 = vcombine.low %v1182_v12, %v1186_v13  ;;  %v1298_v12 = vld [vmem:[#allocation12 + $0x5e0] sm:$0xff] }
 0x2c4   :  { %936 = vmatpush1.bf16.msra.mxu1 %v4881_v16  ;;  %v1190_v16 = vld [vmem:[#allocation12 + $0x280] sm:$0xff] }
 0x2c5   :  { %937 = vmatprep.subr.bf16.mxu1 %v4886_v17  ;;  %v1194_v17 = vld [vmem:[#allocation12 + $0x2a0] sm:$0xff] }
 0x2c8   :  { %938 = vmatpush1.bf16.msra.mxu1 %v4884_v18  ;;  %v4423_v18 = vcombine.high %v1190_v16, %v1194_v17 }
 0x2c9   :  { %939 = vmatprep.subr.bf16.mxu1 %v4889_v19  ;;  %v4422_v19 = vcombine.low %v1190_v16, %v1194_v17  ;;  %v1306_v16 = vld [vmem:[#allocation12 + $0x620] sm:$0xff] }
 0x2cc   :  { %940 = vmatpush1.bf16.msra.mxu1 %v4887_v20  ;;  %v1198_v20 = vld [vmem:[#allocation12 + $0x2c0] sm:$0xff] }
 0x2cd   :  { %941 = vmatprep.subr.bf16.mxu1 %v4892_v21  ;;  %v1202_v21 = vld [vmem:[#allocation12 + $0x2e0] sm:$0xff] }
 0x2d0   :  { %942 = vmatpush1.bf16.msra.mxu1 %v4890_v22  ;;  %v4431_v22 = vcombine.high %v1198_v20, %v1202_v21 }
 0x2d1   :  { %943 = vmatprep.subr.bf16.mxu1 %v4895_v23  ;;  %v4430_v23 = vcombine.low %v1198_v20, %v1202_v21  ;;  %v1314_v20 = vld [vmem:[#allocation12 + $0x660] sm:$0xff] }
 0x2d4   :  { %944 = vmatpush1.bf16.msra.mxu1 %v4893_v24  ;;  %v1206_v24 = vld [vmem:[#allocation12 + $0x300] sm:$0xff] }
 0x2d5   :  { %945 = vmatprep.subr.bf16.mxu1 %v4898_v25  ;;  %v1210_v25 = vld [vmem:[#allocation12 + $0x320] sm:$0xff] }
 0x2d8   :  { %946 = vmatpush1.bf16.msra.mxu1 %v4896_v26  ;;  %v4439_v26 = vcombine.high %v1206_v24, %v1210_v25 }
 0x2d9   :  { %947 = vmatprep.subr.bf16.mxu1 %v4901_v27  ;;  %v4438_v27 = vcombine.low %v1206_v24, %v1210_v25  ;;  %v1322_v24 = vld [vmem:[#allocation12 + $0x6a0] sm:$0xff] }
 0x2dc   :  { %948 = vmatpush1.bf16.msra.mxu1 %v4899_v28  ;;  %v1214_v28 = vld [vmem:[#allocation12 + $0x340] sm:$0xff] }
 0x2dd   :  { %949 = vmatprep.subr.bf16.mxu1 %v4904_v29  ;;  %v1218_v29 = vld [vmem:[#allocation12 + $0x360] sm:$0xff] }
 0x2e0   :  { %950 = vmatpush1.bf16.msra.mxu1 %v4902_v30  ;;  %v4447_v30 = vcombine.high %v1214_v28, %v1218_v29 }
 0x2e1   :  { %951 = vmatprep.subr.bf16.mxu1 %v4907_v31  ;;  %v4446_v31 = vcombine.low %v1214_v28, %v1218_v29  ;;  %v1330_v28 = vld [vmem:[#allocation12 + $0x6e0] sm:$0xff] }
 0x2e4   :  { %952 = vmatpush1.bf16.msra.mxu1 %v4905_v32  ;;  %v1222_v32 = vld [vmem:[#allocation12 + $0x380] sm:$0xff] }
 0x2e5   :  { %953 = vmatprep.subr.bf16.mxu1 %v4910_v33  ;;  %v1226_v33 = vld [vmem:[#allocation12 + $0x3a0] sm:$0xff] }
 0x2e8   :  { %954 = vmatpush1.bf16.msra.mxu1 %v4908_v34  ;;  %v4455_v34 = vcombine.high %v1222_v32, %v1226_v33 }
 0x2e9   :  { %955 = vmatprep.subr.bf16.mxu1 %v4913_v35  ;;  %v4454_v35 = vcombine.low %v1222_v32, %v1226_v33  ;;  %v1338_v32 = vld [vmem:[#allocation12 + $0x720] sm:$0xff] }
 0x2ec   :  { %956 = vmatpush1.bf16.msra.mxu1 %v4911_v38  ;;  %v1238_v38 = vld [vmem:[#allocation12 + $0x400] sm:$0xff] }
 0x2ed   :  { %2688 = vmatprep.subr.bf16.mxu1 %v4343_v39  ;;  %v4462_v39 = vcombine.low %v1230_v36, %v1234_v37  ;;  %v4470_v42 = vcombine.low %v1238_v38, %v1242_v41 }
 0x2ef   :  { %958 = vmatmul.mubr.bf16.vlgmr.msra.gmra.mrb[8].mxu1 %v5648_v6  ;;  %v4399_v6 = vcombine.high %v1166_v3, %v1170_v5  ;;  %v1282_v3 = vld [vmem:[#allocation12 + $0x560] sm:$0xff] }
 0x2f0   :  { %2689 = vmatpush1.bf16.msra.mxu1 %v4342_v40  ;;  %v4463_v40 = vcombine.high %v1230_v36, %v1234_v37  ;;  %v1346_v36 = vld [vmem:[#allocation12 + $0x760] sm:$0xff] }
 0x2f1   :  { %2690 = vmatprep.subr.bf16.mxu1 %v4351_v43  ;;  %v4471_v43 = vcombine.high %v1238_v38, %v1242_v41 }
 0x2f3   :  { %2729 = vmatprep.subr.bf16.mxu0 %v4471_v43  ;;  %v1358_v43 = vld [vmem:[#allocation12 + $0x7c0] sm:$0xff] }
 0x2f4   :  { %2691 = vmatpush1.bf16.msra.mxu1 %v4350_v44  ;;  %2730 = vmatpush1.bf16.msra.mxu0 %v4470_v42  ;;  %v5652_v44 = vld [vmem:[#allocation12 + $0x8] sm:$0xff] }
 0x2f5   :  { %2692 = vmatprep.subr.bf16.mxu1 %v4359_v47  ;;  %v4345_v46 = vcombine.high %v5652_v44, %v5654_v45  ;;  %v4344_v47 = vcombine.low %v5652_v44, %v5654_v45 }
 0x2f8   :  { %2693 = vmatpush1.bf16.msra.mxu1 %v4358_v48  ;;  %v1246_v48 = vld [vmem:[#allocation12 + $0x440] sm:$0xff] }
 0x2f9   :  { %2694 = vmatprep.subr.bf16.mxu1 %v4367_v51  ;;  %v4479_v50 = vcombine.high %v1246_v48, %v1250_v49  ;;  %v4478_v51 = vcombine.low %v1246_v48, %v1250_v49 }
 0x2fb   :  { %2731 = vmatprep.subr.bf16.mxu0 %v4479_v50  ;;  %v5660_v50 = vld [vmem:[#allocation12 + $0x10] sm:$0xff] }
 0x2fc   :  { %2695 = vmatpush1.bf16.msra.mxu1 %v4366_v52  ;;  %2732 = vmatpush1.bf16.msra.mxu0 %v4478_v51  ;;  %v1254_v52 = vld [vmem:[#allocation12 + $0x480] sm:$0xff]  ;;  %v5662_v51 = vld [vmem:[#allocation12 + $0x30] sm:$0xff] }
 0x2fd   :  { %2696 = vmatprep.subr.bf16.mxu1 %v4375_v55  ;;  %v4487_v54 = vcombine.high %v1254_v52, %v1258_v53  ;;  %v4486_v55 = vcombine.low %v1254_v52, %v1258_v53  ;;  %v5667_v52 = vld [vmem:[%s5841_s8] sm:$0xf]  ;;  %v4347_v53 = vcombine.high %v5660_v50, %v5662_v51 }
 0x2ff   :  { %2733 = vmatprep.subr.bf16.mxu0 %v4487_v54  ;;  %v4346_v54 = vcombine.low %v5660_v50, %v5662_v51 }
 0x300   :  { %2697 = vmatpush1.bf16.msra.mxu1 %v4374_v56  ;;  %2734 = vmatpush1.bf16.msra.mxu0 %v4486_v55  ;;  %v1262_v56 = vld [vmem:[#allocation12 + $0x4c0] sm:$0xff]  ;;  %v547_v55 = vrot.slane %v5667_v52, %v5634_v2 }
 0x301   :  { %2698 = vmatprep.subr.bf16.mxu1 %v4383_v59  ;;  %v4495_v58 = vcombine.high %v1262_v56, %v1266_v57  ;;  %v4494_v59 = vcombine.low %v1262_v56, %v1266_v57  ;;  %v551_v56 = vrot.slane %v5667_v52, %v5640_v4 }
 0x303   :  { %2735 = vmatprep.subr.bf16.mxu0 %v4495_v58 }
 0x304   :  { %2699 = vmatpush1.bf16.msra.mxu1 %v4382_v60  ;;  %2736 = vmatpush1.bf16.msra.mxu0 %v4494_v59  ;;  %v1270_v60 = vld [vmem:[#allocation12 + $0x500] sm:$0xff] }
 0x305   :  { %2700 = vmatprep.subr.bf16.mxu1 %v4391_v63  ;;  %v4503_v62 = vcombine.high %v1270_v60, %v1274_v61  ;;  %v4502_v63 = vcombine.low %v1270_v60, %v1274_v61 }
 0x307   :  { %2737 = vmatprep.subr.bf16.mxu0 %v4503_v62 }
 0x308   :  { %2701 = vmatpush1.bf16.msra.mxu1 %v4390_v0  ;;  %2738 = vmatpush1.bf16.msra.mxu0 %v4502_v63  ;;  %v1278_v0 = vld [vmem:[#allocation12 + $0x540] sm:$0xff] }
 0x309   :  { %2702 = vmatprep.subr.bf16.mxu1 %v4399_v6  ;;  %v4511_v5 = vcombine.high %v1278_v0, %v1282_v3  ;;  %v4510_v6 = vcombine.low %v1278_v0, %v1282_v3 }
 0x30b   :  { %2739 = vmatprep.subr.bf16.mxu0 %v4511_v5 }
 0x30c   :  { %2703 = vmatpush1.bf16.msra.mxu1 %v4398_v7  ;;  %2740 = vmatpush1.bf16.msra.mxu0 %v4510_v6  ;;  %v1286_v7 = vld [vmem:[#allocation12 + $0x580] sm:$0xff] }
 0x30d   :  { %2704 = vmatprep.subr.bf16.mxu1 %v4407_v10  ;;  %v4519_v9 = vcombine.high %v1286_v7, %v1290_v8  ;;  %v4518_v10 = vcombine.low %v1286_v7, %v1290_v8 }
 0x30f   :  { %2741 = vmatprep.subr.bf16.mxu0 %v4519_v9 }
 0x310   :  { %2705 = vmatpush1.bf16.msra.mxu1 %v4406_v11  ;;  %2742 = vmatpush1.bf16.msra.mxu0 %v4518_v10  ;;  %v1294_v11 = vld [vmem:[#allocation12 + $0x5c0] sm:$0xff] }
 0x311   :  { %2706 = vmatprep.subr.bf16.mxu1 %v4415_v14  ;;  %v4527_v13 = vcombine.high %v1294_v11, %v1298_v12  ;;  %v4526_v14 = vcombine.low %v1294_v11, %v1298_v12 }
 0x313   :  { %2743 = vmatprep.subr.bf16.mxu0 %v4527_v13 }
 0x314   :  { %2707 = vmatpush1.bf16.msra.mxu1 %v4414_v15  ;;  %2744 = vmatpush1.bf16.msra.mxu0 %v4526_v14  ;;  %v1302_v15 = vld [vmem:[#allocation12 + $0x600] sm:$0xff] }
 0x315   :  { %2708 = vmatprep.subr.bf16.mxu1 %v4423_v18  ;;  %v4535_v17 = vcombine.high %v1302_v15, %v1306_v16  ;;  %v4534_v18 = vcombine.low %v1302_v15, %v1306_v16 }
 0x317   :  { %2745 = vmatprep.subr.bf16.mxu0 %v4535_v17 }
 0x318   :  { %2709 = vmatpush1.bf16.msra.mxu1 %v4422_v19  ;;  %2746 = vmatpush1.bf16.msra.mxu0 %v4534_v18  ;;  %v1310_v19 = vld [vmem:[#allocation12 + $0x640] sm:$0xff] }
 0x319   :  { %2710 = vmatprep.subr.bf16.mxu1 %v4431_v22  ;;  %v4543_v21 = vcombine.high %v1310_v19, %v1314_v20  ;;  %v4542_v22 = vcombine.low %v1310_v19, %v1314_v20 }
 0x31b   :  { %2747 = vmatprep.subr.bf16.mxu0 %v4543_v21 }
 0x31c   :  { %2711 = vmatpush1.bf16.msra.mxu1 %v4430_v23  ;;  %2748 = vmatpush1.bf16.msra.mxu0 %v4542_v22  ;;  %v1318_v23 = vld [vmem:[#allocation12 + $0x680] sm:$0xff] }
 0x31d   :  { %2712 = vmatprep.subr.bf16.mxu1 %v4439_v26  ;;  %v4551_v25 = vcombine.high %v1318_v23, %v1322_v24  ;;  %v4550_v26 = vcombine.low %v1318_v23, %v1322_v24 }
 0x31f   :  { %2749 = vmatprep.subr.bf16.mxu0 %v4551_v25 }
 0x320   :  { %2713 = vmatpush1.bf16.msra.mxu1 %v4438_v27  ;;  %2750 = vmatpush1.bf16.msra.mxu0 %v4550_v26  ;;  %v1326_v27 = vld [vmem:[#allocation12 + $0x6c0] sm:$0xff] }
 0x321   :  { %2714 = vmatprep.subr.bf16.mxu1 %v4447_v30  ;;  %v4559_v29 = vcombine.high %v1326_v27, %v1330_v28  ;;  %v4558_v30 = vcombine.low %v1326_v27, %v1330_v28 }
 0x323   :  { %2751 = vmatprep.subr.bf16.mxu0 %v4559_v29 }
 0x324   :  { %2715 = vmatpush1.bf16.msra.mxu1 %v4446_v31  ;;  %2752 = vmatpush1.bf16.msra.mxu0 %v4558_v30  ;;  %v1334_v31 = vld [vmem:[#allocation12 + $0x700] sm:$0xff] }
 0x325   :  { %2716 = vmatprep.subr.bf16.mxu1 %v4455_v34  ;;  %v4567_v33 = vcombine.high %v1334_v31, %v1338_v32  ;;  %v4566_v34 = vcombine.low %v1334_v31, %v1338_v32 }
 0x327   :  { %2753 = vmatprep.subr.bf16.mxu0 %v4567_v33 }
 0x328   :  { %2717 = vmatpush1.bf16.msra.mxu1 %v4454_v35  ;;  %2754 = vmatpush1.bf16.msra.mxu0 %v4566_v34  ;;  %v1342_v35 = vld [vmem:[#allocation12 + $0x740] sm:$0xff] }
 0x329   :  { %2718 = vmatprep.subr.bf16.mxu1 %v4463_v40  ;;  %v4575_v37 = vcombine.high %v1342_v35, %v1346_v36  ;;  %v4574_v38 = vcombine.low %v1342_v35, %v1346_v36  ;;  %v1354_v40 = vld [vmem:[#allocation12 + $0x7a0] sm:$0xff]  ;;  %v5677_v36 = vld [vmem:[#allocation9] sm:$0xf] }
 0x32b   :  { %2755 = vmatprep.subr.bf16.mxu0 %v4575_v37  ;;  %v5679_v37 = vld [vmem:[#allocation10] sm:$0xf] }
 0x32c   :  { %2719 = vmatpush1.bf16.msra.mxu1 %v4462_v39  ;;  %2756 = vmatpush1.bf16.msra.mxu0 %v4574_v38  ;;  %v1350_v39 = vld [vmem:[#allocation12 + $0x780] sm:$0xff]  ;;  %v1047_v38 = vrot.slane %v5677_v36, %v5634_v2 }
 0x32d   :  { %2770 = vmatprep.subr.bf16.mxu1 %v4345_v46  ;;  %v4583_v41 = vcombine.high %v1350_v39, %v1354_v40  ;;  %v4582_v42 = vcombine.low %v1350_v39, %v1354_v40  ;;  %v1362_v46 = vld [vmem:[#allocation12 + $0x7e0] sm:$0xff]  ;;  %v1051_v40 = vrot.slane %v5677_v36, %v5640_v4 }
 0x32e   :  { %v4590_v48 = vcombine.low %v1358_v43, %v1362_v46  ;;  %v4591_v49 = vcombine.high %v1358_v43, %v1362_v46  ;;  %v1073_v43 = vrot.slane %v5679_v37, %v5634_v2 }
 0x32f   :  { %2757 = vmatprep.subr.bf16.mxu0 %v4583_v41 }
 0x330   :  { %2758 = vmatpush1.bf16.msra.mxu0 %v4582_v42 }
 0x331   :  { %2759 = vmatprep.subr.bf16.mxu0 %v4591_v49 }
 0x334   :  { %2760 = vmatpush1.bf16.msra.mxu0 %v4590_v48  ;;  %v1077_v48 = vrot.slane %v5679_v37, %v5640_v4 }
 0x335   :  { %2852 = vmatprep.subr.bf16.mxu0 %v4347_v53 }
 0x382   :  { %v918_v57 = vpop.f32.mrb[4].mxu1 }
 0x383   :  { %v919_v58 = vadd.f32 %v918_v57, %v547_v55  ;;  %v920_v59 = vpop.f32.mrb[5].mxu1 }
 0x384   :  { %v921_v60 = vadd.f32 %v920_v59, %v551_v56  ;;  %v922_v61 = vpop.f32.mrb[6].mxu1 }
 0x385   :  { %v966_v62 = vrot.slane %v919_v58, 4  ;;  %v923_v63 = vpop.f32.mrb[7].mxu1  ;;  %v1123_v61 = vld [vmem:[#allocation12 + $0x68] sm:$0xff] }
 0x386   :  { %v972_v0 = vrot.slane %v921_v60, 4  ;;  %v5690_v63 = vsub.s32 2, %v5631_v1 }
 0x387   :  { %v967_v3 = vadd.f32 %v966_v62, %v919_v58 }
 0x388   :  { %v973_v5 = vadd.f32 %v972_v0, %v921_v60 }
 0x389   :  { %v968_v6 = vrot.slane %v967_v3, 2 }
 0x38a   :  { %v974_v7 = vrot.slane %v973_v5, 2 }
 0x38b   :  { %v969_v8 = vadd.f32 %v968_v6, %v967_v3  ;;  %v5695_v3 = vsub.s32 3, %v5631_v1 }
 0x38c   :  { %v975_v9 = vadd.f32 %v974_v7, %v973_v5  ;;  %v1127_v7 = vld [vmem:[#allocation12 + $0x88] sm:$0xff] }
 0x38d   :  { %v970_v10 = vrot.slane %v969_v8, 1 }
 0x38e   :  { %v976_v11 = vrot.slane %v975_v9, 1 }
 0x38f   :  { %v971_v12 = vadd.f32 %v970_v10, %v969_v8  ;;  %v1131_v8 = vld [vmem:[#allocation12 + $0xa8] sm:$0xff]  ;;  %v559_v10 = vrot.slane %v5667_v52, %v5695_v3 }
 0x390   :  { %v977_v13 = vadd.f32 %v976_v11, %v975_v9  ;;  %v555_v9 = vrot.slane %v5667_v52, %v5690_v63 }
 0x391   :  { %v990_v14 = vmul.f32 0.125, %v971_v12  ;;  %v4361_v12 = vcombine.high %v1127_v7, %v1131_v8 }
 0x392   :  { %v991_v15 = vmul.f32 0.125, %v977_v13 }
 0x393   :  { %v994_v16 = vsub.f32 %v919_v58, %v990_v14  ;;  %v1135_v14 = vld [vmem:[#allocation12 + $0xc8] sm:$0xff] }
 0x394   :  { %v995_v17 = vsub.f32 %v921_v60, %v991_v15  ;;  %v1119_v60 = vld [vmem:[#allocation12 + $0x48] sm:$0xff] }
 0x395   :  { %v998_v18 = vmul.f32 %v994_v16, %v994_v16  ;;  %v4353_v6 = vcombine.high %v1119_v60, %v1123_v61  ;;  %v4352_v11 = vcombine.low %v1119_v60, %v1123_v61  ;;  %v1139_v15 = vld [vmem:[#allocation12 + $0xe8] sm:$0xff] }
 0x396   :  { %v999_v19 = vmul.f32 %v995_v17, %v995_v17  ;;  %v4369_v45 = vcombine.high %v1135_v14, %v1139_v15 }
 0x397   :  { %v1002_v20 = vrot.slane %v998_v18, 4 }
 0x398   :  { %v1008_v21 = vrot.slane %v999_v19, 4 }
 0x399   :  { %v1003_v22 = vadd.f32 %v1002_v20, %v998_v18  ;;  %v4360_v20 = vcombine.low %v1127_v7, %v1131_v8 }
 0x39a   :  { %v1009_v23 = vadd.f32 %v1008_v21, %v999_v19 }
 0x39b   :  { %v1004_v24 = vrot.slane %v1003_v22, 2 }
 0x39c   :  { %v1010_v25 = vrot.slane %v1009_v23, 2 }
 0x39d   :  { %v1005_v26 = vadd.f32 %v1004_v24, %v1003_v22  ;;  %v1143_v22 = vld [vmem:[#allocation12 + $0x108] sm:$0xff] }
 0x39e   :  { %v1011_v27 = vadd.f32 %v1010_v25, %v1009_v23  ;;  %v1147_v23 = vld [vmem:[#allocation12 + $0x128] sm:$0xff]  ;;  %v4368_v25 = vcombine.low %v1135_v14, %v1139_v15 }
 0x39f   :  { %v1006_v28 = vrot.slane %v1005_v26, 1  ;;  %v1187_v14 = vld [vmem:[#allocation12 + $0x268] sm:$0xff] }
 0x3a0   :  { %v1012_v29 = vrot.slane %v1011_v27, 1 }
 0x3a1   :  { %v1007_v30 = vadd.f32 %v1006_v28, %v1005_v26 }
 0x3a2   :  { %v1013_v31 = vadd.f32 %v1012_v29, %v1011_v27  ;;  %v4377_v27 = vcombine.high %v1143_v22, %v1147_v23  ;;  %v1151_v29 = vld [vmem:[#allocation12 + $0x148] sm:$0xff] }
 0x3a3   :  { %v1026_v32 = vmul.f32 0.125, %v1007_v30  ;;  %v1155_v30 = vld [vmem:[#allocation12 + $0x168] sm:$0xff] }
 0x3a4   :  { %v1027_v33 = vmul.f32 0.125, %v1013_v31 }
 0x3a5   :  { %v1030_v34 = vadd.f32 0.8, %v1026_v32 }
 0x3a6   :  { %v1031_v35 = vadd.f32 0.8, %v1027_v33  ;;  %v4376_v33 = vcombine.low %v1143_v22, %v1147_v23 }
 0x3a7   :  { %5110 = vrsqrt.f32 %v1030_v34 }
 0x3a8   :  { %5112 = vrsqrt.f32 %v1031_v35  ;;  %v4385_v35 = vcombine.high %v1151_v29, %v1155_v30 }
 0x3b1   :  { %v5111_v39 = vpop.eup %5110 }
 0x3b2   :  { %v5113_v41 = vpop.eup %5112  ;;  %v1038_v42 = vmul.f32 %v5111_v39, %v994_v16  ;;  %v1159_v39 = vld [vmem:[#allocation12 + $0x188] sm:$0xff] }
 0x3b3   :  { %v1039_v46 = vmul.f32 %v5113_v41, %v995_v17 }
 0x3b4   :  { %v1064_v49 = vmul.f32 %v1047_v38, %v1038_v42 }
 0x3b5   :  { %v1065_v53 = vmul.f32 %v1051_v40, %v1039_v46  ;;  %v1163_v40 = vld [vmem:[#allocation12 + $0x1a8] sm:$0xff] }
 0x3b6   :  { %v1090_v55 = vadd.f32 %v1073_v43, %v1064_v49  ;;  %v4384_v43 = vcombine.low %v1151_v29, %v1155_v30 }
 0x3b7   :  { %v1091_v56 = vadd.f32 %v1077_v48, %v1065_v53  ;;  %v4393_v48 = vcombine.high %v1159_v39, %v1163_v40  ;;  %v1167_v53 = vld [vmem:[#allocation12 + $0x1c8] sm:$0xff] }
 0x3b8   :  { %vm1094_vm5 = vcmp.gt.f32.partialorder %v1090_v55, 0.0  ;;  %v1098_v57 = vmul.f32 0.2, %v1090_v55 }
 0x3b9   :  { %vm1095_vm6 = vcmp.gt.f32.partialorder %v1091_v56, 0.0  ;;  %v1099_v58 = vmul.f32 0.2, %v1091_v56 }
 0x3ba   :  { %v1102_v59 = vsel %vm1094_vm5, %v1090_v55, %v1098_v57  ;;  %v1171_v55 = vld [vmem:[#allocation12 + $0x1e8] sm:$0xff] }
 0x3bb   :  { %v1103_v62 = vsel %vm1095_vm6, %v1091_v56, %v1099_v58  ;;  %v5697_v5 = vpack.c.bf16 %v1102_v59, %v1102_v59  ;;  %v4392_v58 = vcombine.low %v1159_v39, %v1163_v40  ;;  %v4401_v60 = vcombine.high %v1167_v53, %v1171_v55  ;;  %v1215_v39 = vld [vmem:[#allocation12 + $0x348] sm:$0xff] }
 0x3bc   :  { %v5692_v0 = vpack.c.bf16 %v1103_v62, %v1103_v62  ;;  %v1175_v62 = vld [vmem:[#allocation12 + $0x208] sm:$0xff] }
 0x3bd   :  { %v1219_v40 = vld [vmem:[#allocation12 + $0x368] sm:$0xff] }
 0x3be   :  { %2720 = vmatprep.mubr.bf16.mxu1 %v5692_v0 }
 0x3bf   :  { %2721 = vmatmul.mubr.bf16.vlgmr.msra.gmra.mrb[12].mxu1 %v5697_v5 }
 0x3c0   :  { %2771 = vmatpush1.bf16.msra.mxu1 %v4344_v47  ;;  %2802 = vmatprep.mubr.bf16.mxu1 %v5692_v0 }
 0x3c1   :  { %2772 = vmatprep.subr.bf16.mxu1 %v4353_v6  ;;  %v1179_v6 = vld [vmem:[#allocation12 + $0x228] sm:$0xff] }
 0x3c2   :  { %v959_v13 = vpop.f32.mrb[8].mxu1 }
 0x3c3   :  { %v960_v16 = vadd.f32 %v959_v13, %v555_v9  ;;  %v961_v17 = vpop.f32.mrb[9].mxu1  ;;  %v4400_v9 = vcombine.low %v1167_v53, %v1171_v55  ;;  %v1183_v13 = vld [vmem:[#allocation12 + $0x248] sm:$0xff]  ;;  %v1059_v55 = vrot.slane %v5677_v36, %v5695_v3 }
 0x3c4   :  { %v962_v18 = vadd.f32 %v961_v17, %v559_v10  ;;  %v963_v19 = vpop.f32.mrb[10].mxu1  ;;  %2773 = vmatpush1.bf16.msra.mxu1 %v4352_v11  ;;  %v4409_v11 = vcombine.high %v1175_v62, %v1179_v6  ;;  %v4408_v17 = vcombine.low %v1175_v62, %v1179_v6  ;;  %v4416_v22 = vcombine.low %v1183_v13, %v1187_v14  ;;  %v1231_v62 = vld [vmem:[#allocation12 + $0x3c8] sm:$0xff] }
 0x3c5   :  { %v978_v21 = vrot.slane %v960_v16, 4  ;;  %v964_v44 = vpop.f32.mrb[11].mxu1  ;;  %2774 = vmatprep.subr.bf16.mxu1 %v4361_v12  ;;  %v4417_v19 = vcombine.high %v1183_v13, %v1187_v14  ;;  %v1235_v6 = vld [vmem:[#allocation12 + $0x3e8] sm:$0xff] }
 0x3c6   :  { %v984_v47 = vrot.slane %v962_v18, 4  ;;  %v1195_v44 = vld [vmem:[#allocation12 + $0x2a8] sm:$0xff] }
 0x3c7   :  { %v979_v52 = vadd.f32 %v978_v21, %v960_v16  ;;  %v1191_v21 = vld [vmem:[#allocation12 + $0x288] sm:$0xff] }
 0x3c8   :  { %v985_v24 = vadd.f32 %v984_v47, %v962_v18  ;;  %2775 = vmatpush1.bf16.msra.mxu1 %v4360_v20  ;;  %v4424_v29 = vcombine.low %v1191_v21, %v1195_v44  ;;  %v1239_v13 = vld [vmem:[#allocation12 + $0x408] sm:$0xff] }
 0x3c9   :  { %v980_v26 = vrot.slane %v979_v52, 2  ;;  %2776 = vmatprep.subr.bf16.mxu1 %v4369_v45  ;;  %v1243_v14 = vld [vmem:[#allocation12 + $0x428] sm:$0xff] }
 0x3ca   :  { %v986_v28 = vrot.slane %v985_v24, 2 }
 0x3cb   :  { %v981_v31 = vadd.f32 %v980_v26, %v979_v52  ;;  %v4425_v52 = vcombine.high %v1191_v21, %v1195_v44  ;;  %v1203_v26 = vld [vmem:[#allocation12 + $0x2e8] sm:$0xff] }
 0x3cc   :  { %v987_v32 = vadd.f32 %v986_v28, %v985_v24  ;;  %2777 = vmatpush1.bf16.msra.mxu1 %v4368_v25  ;;  %v1199_v25 = vld [vmem:[#allocation12 + $0x2c8] sm:$0xff] }
 0x3cd   :  { %v982_v34 = vrot.slane %v981_v31, 1  ;;  %2778 = vmatprep.subr.bf16.mxu1 %v4377_v27  ;;  %v1247_v21 = vld [vmem:[#allocation12 + $0x448] sm:$0xff] }
 0x3ce   :  { %v988_v38 = vrot.slane %v987_v32, 1  ;;  %v1251_v44 = vld [vmem:[#allocation12 + $0x468] sm:$0xff] }
 0x3cf   :  { %v983_v41 = vadd.f32 %v982_v34, %v981_v31  ;;  %v4433_v31 = vcombine.high %v1199_v25, %v1203_v26  ;;  %v1211_v34 = vld [vmem:[#allocation12 + $0x328] sm:$0xff] }
 0x3d0   :  { %v989_v42 = vadd.f32 %v988_v38, %v987_v32  ;;  %2779 = vmatpush1.bf16.msra.mxu1 %v4376_v33  ;;  %v1207_v33 = vld [vmem:[#allocation12 + $0x308] sm:$0xff] }
 0x3d1   :  { %v992_v46 = vmul.f32 0.125, %v983_v41  ;;  %2780 = vmatprep.subr.bf16.mxu1 %v4385_v35  ;;  %v4432_v35 = vcombine.low %v1199_v25, %v1203_v26  ;;  %v4441_v38 = vcombine.high %v1207_v33, %v1211_v34  ;;  %v4440_v41 = vcombine.low %v1207_v33, %v1211_v34  ;;  %v1132_v25 = vld [vmem:[#allocation12 + $0xb0] sm:$0xff]  ;;  %v1255_v26 = vld [vmem:[#allocation12 + $0x488] sm:$0xff] }
 0x3d2   :  { %v993_v49 = vmul.f32 0.125, %v989_v42  ;;  %v4449_v42 = vcombine.high %v1215_v39, %v1219_v40  ;;  %v1140_v33 = vld [vmem:[#allocation12 + $0xf0] sm:$0xff]  ;;  %v1263_v34 = vld [vmem:[#allocation12 + $0x4c8] sm:$0xff] }
 0x3d3   :  { %v5709_v56 = vsub.f32 %v960_v16, %v992_v46  ;;  %v1227_v46 = vld [vmem:[#allocation12 + $0x3a8] sm:$0xff] }
 0x3d4   :  { %v5711_v57 = vsub.f32 %v962_v18, %v993_v49  ;;  %2781 = vmatpush1.bf16.msra.mxu1 %v4384_v43  ;;  %v1223_v43 = vld [vmem:[#allocation12 + $0x388] sm:$0xff]  ;;  %v4448_v49 = vcombine.low %v1215_v39, %v1219_v40  ;;  %v1144_v39 = vld [vmem:[#allocation12 + $0x110] sm:$0xff] }
 0x3d5   :  { %v1000_v59 = vmul.f32 %v5709_v56, %v5709_v56  ;;  %2782 = vmatprep.subr.bf16.mxu1 %v4393_v48  ;;  %v1055_v48 = vrot.slane %v5677_v36, %v5690_v63  ;;  %v4465_v36 = vcombine.high %v1231_v62, %v1235_v6  ;;  %v1148_v40 = vld [vmem:[#allocation12 + $0x130] sm:$0xff] }
 0x3d6   :  { %v1001_v61 = vmul.f32 %v5711_v57, %v5711_v57 }
 0x3d7   :  { %v1014_v7 = vrot.slane %v1000_v59, 4 }
 0x3d8   :  { %v1020_v8 = vrot.slane %v1001_v61, 4  ;;  %2783 = vmatpush1.bf16.msra.mxu1 %v4392_v58  ;;  %v4457_v58 = vcombine.high %v1223_v43, %v1227_v46 }
 0x3d9   :  { %v1015_v10 = vadd.f32 %v1014_v7, %v1000_v59  ;;  %2784 = vmatprep.subr.bf16.mxu1 %v4401_v60 }
 0x3da   :  { %v1021_v12 = vadd.f32 %v1020_v8, %v1001_v61  ;;  %v1081_v61 = vrot.slane %v5679_v37, %v5690_v63  ;;  %v1085_v8 = vrot.slane %v5679_v37, %v5695_v3  ;;  %v1120_v37 = vld [vmem:[#allocation12 + $0x50] sm:$0xff] }
 0x3db   :  { %v1016_v15 = vrot.slane %v1015_v10, 2 }
 0x3dc   :  { %v1022_v16 = vrot.slane %v1021_v12, 2  ;;  %2785 = vmatpush1.bf16.msra.mxu1 %v4400_v9 }
 0x3dd   :  { %v1017_v18 = vadd.f32 %v1016_v15, %v1015_v10  ;;  %2786 = vmatprep.subr.bf16.mxu1 %v4409_v11  ;;  %v4456_v10 = vcombine.low %v1223_v43, %v1227_v46  ;;  %v4464_v15 = vcombine.low %v1231_v62, %v1235_v6 }
 0x3de   :  { %v1023_v20 = vadd.f32 %v1022_v16, %v1021_v12 }
 0x3df   :  { %v1018_v45 = vrot.slane %v1017_v18, 1 }
 0x3e0   :  { %v1024_v47 = vrot.slane %v1023_v20, 1  ;;  %2787 = vmatpush1.bf16.msra.mxu1 %v4408_v17  ;;  %v4473_v17 = vcombine.high %v1239_v13, %v1243_v14 }
 0x3e1   :  { %v1019_v23 = vadd.f32 %v1018_v45, %v1017_v18  ;;  %2788 = vmatprep.subr.bf16.mxu1 %v4417_v19 }
 0x3e2   :  { %v1025_v24 = vadd.f32 %v1024_v47, %v1023_v20  ;;  %v1124_v20 = vld [vmem:[#allocation12 + $0x70] sm:$0xff]  ;;  %v4472_v47 = vcombine.low %v1239_v13, %v1243_v14 }
 0x3e3   :  { %v1028_v27 = vmul.f32 0.125, %v1019_v23  ;;  %v1128_v23 = vld [vmem:[#allocation12 + $0x90] sm:$0xff] }
 0x3e4   :  { %v1029_v28 = vmul.f32 0.125, %v1025_v24  ;;  %2789 = vmatpush1.bf16.msra.mxu1 %v4416_v22  ;;  %v4481_v24 = vcombine.high %v1247_v21, %v1251_v44  ;;  %v1168_v14 = vld [vmem:[#allocation12 + $0x1d0] sm:$0xff] }
 0x3e5   :  { %v1032_v30 = vadd.f32 0.8, %v1028_v27  ;;  %2790 = vmatprep.subr.bf16.mxu1 %v4425_v52  ;;  %v4355_v52 = vcombine.high %v1120_v37, %v1124_v20  ;;  %v1259_v27 = vld [vmem:[#allocation12 + $0x4a8] sm:$0xff] }
 0x3e6   :  { %v1033_v32 = vadd.f32 0.8, %v1029_v28  ;;  %v4354_v28 = vcombine.low %v1120_v37, %v1124_v20  ;;  %v4488_v50 = vcombine.low %v1255_v26, %v1259_v27  ;;  %v1180_v20 = vld [vmem:[#allocation12 + $0x230] sm:$0xff] }
 0x3e7   :  { %5114 = vrsqrt.f32 %v1032_v30  ;;  %v4363_v30 = vcombine.high %v1128_v23, %v1132_v25 }
 0x3e8   :  { %5116 = vrsqrt.f32 %v1033_v32  ;;  %2791 = vmatpush1.bf16.msra.mxu1 %v4424_v29  ;;  %v4480_v29 = vcombine.low %v1247_v21, %v1251_v44  ;;  %v1136_v32 = vld [vmem:[#allocation12 + $0xd0] sm:$0xff]  ;;  %v1303_v21 = vld [vmem:[#allocation12 + $0x608] sm:$0xff] }
 0x3e9   :  { %2792 = vmatprep.subr.bf16.mxu1 %v4433_v31  ;;  %v4489_v31 = vcombine.high %v1255_v26, %v1259_v27  ;;  %v4371_v51 = vcombine.high %v1136_v32, %v1140_v33  ;;  %v4370_v43 = vcombine.low %v1136_v32, %v1140_v33  ;;  %v1307_v44 = vld [vmem:[#allocation12 + $0x628] sm:$0xff]  ;;  %v1188_v26 = vld [vmem:[#allocation12 + $0x270] sm:$0xff] }
 0x3ea   :  { %v1311_v27 = vld [vmem:[#allocation12 + $0x648] sm:$0xff]  ;;  %v1192_v33 = vld [vmem:[#allocation12 + $0x290] sm:$0xff] }
 0x3ec   :  { %2793 = vmatpush1.bf16.msra.mxu1 %v4432_v35  ;;  %v1267_v35 = vld [vmem:[#allocation12 + $0x4e8] sm:$0xff] }
 0x3ed   :  { %2794 = vmatprep.subr.bf16.mxu1 %v4441_v38  ;;  %v4362_v38 = vcombine.low %v1128_v23, %v1132_v25  ;;  %v4496_v46 = vcombine.low %v1263_v34, %v1267_v35  ;;  %v1184_v25 = vld [vmem:[#allocation12 + $0x250] sm:$0xff] }
 0x3f0   :  { %2795 = vmatpush1.bf16.msra.mxu1 %v4440_v41  ;;  %v1271_v41 = vld [vmem:[#allocation12 + $0x508] sm:$0xff] }
 0x3f1   :  { %v5115_v53 = vpop.eup %5114  ;;  %2796 = vmatprep.subr.bf16.mxu1 %v4449_v42  ;;  %v1275_v42 = vld [vmem:[#allocation12 + $0x528] sm:$0xff] }
 0x3f2   :  { %v5117_v59 = vpop.eup %5116  ;;  %v1040_v60 = vmul.f32 %v5115_v53, %v5709_v56  ;;  %v1152_v53 = vld [vmem:[#allocation12 + $0x150] sm:$0xff] }
 0x3f3   :  { %v1041_v7 = vmul.f32 %v5117_v59, %v5711_v57  ;;  %v1283_v59 = vld [vmem:[#allocation12 + $0x568] sm:$0xff] }
 0x3f4   :  { %v1066_v9 = vmul.f32 %v1055_v48, %v1040_v60  ;;  %2797 = vmatpush1.bf16.msra.mxu1 %v4448_v49  ;;  %v4379_v48 = vcombine.high %v1144_v39, %v1148_v40  ;;  %v4505_v49 = vcombine.high %v1271_v41, %v1275_v42  ;;  %v4378_v60 = vcombine.low %v1144_v39, %v1148_v40  ;;  %v1200_v40 = vld [vmem:[#allocation12 + $0x2d0] sm:$0xff] }
 0x3f5   :  { %v1067_v11 = vmul.f32 %v1059_v55, %v1041_v7  ;;  %2798 = vmatprep.subr.bf16.mxu1 %v4457_v58  ;;  %v1156_v55 = vld [vmem:[#allocation12 + $0x170] sm:$0xff]  ;;  %v1279_v58 = vld [vmem:[#allocation12 + $0x548] sm:$0xff] }
 0x3f6   :  { %v1092_v12 = vadd.f32 %v1081_v61, %v1066_v9  ;;  %v4504_v61 = vcombine.low %v1271_v41, %v1275_v42  ;;  %v4387_v62 = vcombine.high %v1152_v53, %v1156_v55  ;;  %v4513_v6 = vcombine.high %v1279_v58, %v1283_v59  ;;  %v1160_v7 = vld [vmem:[#allocation12 + $0x190] sm:$0xff]  ;;  %v1287_v9 = vld [vmem:[#allocation12 + $0x588] sm:$0xff] }
 0x3f7   :  { %v1093_v56 = vadd.f32 %v1085_v8, %v1067_v11  ;;  %v1164_v8 = vld [vmem:[#allocation12 + $0x1b0] sm:$0xff]  ;;  %v4386_v11 = vcombine.low %v1152_v53, %v1156_v55  ;;  %v1327_v42 = vld [vmem:[#allocation12 + $0x6c8] sm:$0xff] }
 0x3f8   :  { %2799 = vmatpush1.bf16.msra.mxu1 %v4456_v10  ;;  %vm1096_vm7 = vcmp.gt.f32.partialorder %v1092_v12, 0.0  ;;  %v1100_v16 = vmul.f32 0.2, %v1092_v12  ;;  %v1291_v10 = vld [vmem:[#allocation12 + $0x5a8] sm:$0xff]  ;;  %v1204_v41 = vld [vmem:[#allocation12 + $0x2f0] sm:$0xff] }
 0x3f9   :  { %2800 = vmatprep.subr.bf16.mxu1 %v4465_v36  ;;  %vm1097_vm8 = vcmp.gt.f32.partialorder %v1093_v56, 0.0  ;;  %v1101_v57 = vmul.f32 0.2, %v1093_v56  ;;  %v4512_v36 = vcombine.low %v1279_v58, %v1283_v59  ;;  %v4521_v13 = vcombine.high %v1287_v9, %v1291_v10  ;;  %v1208_v55 = vld [vmem:[#allocation12 + $0x310] sm:$0xff]  ;;  %v1335_v59 = vld [vmem:[#allocation12 + $0x708] sm:$0xff] }
 0x3fa   :  { %v1104_v18 = vsel %vm1096_vm7, %v1092_v12, %v1100_v16  ;;  %v4395_v12 = vcombine.high %v1160_v7, %v1164_v8  ;;  %v1299_v16 = vld [vmem:[#allocation12 + $0x5e8] sm:$0xff]  ;;  %v1212_v58 = vld [vmem:[#allocation12 + $0x330] sm:$0xff] }
 0x3fb   :  { %v1105_v19 = vsel %vm1097_vm8, %v1093_v56, %v1101_v57  ;;  %v5729_v22 = vpack.c.bf16 %v1104_v18, %v1104_v18  ;;  %v1172_v56 = vld [vmem:[#allocation12 + $0x1f0] sm:$0xff]  ;;  %v4394_v57 = vcombine.low %v1160_v7, %v1164_v8 }
 0x3fc   :  { %2801 = vmatpush1.bf16.msra.mxu1 %v4464_v15  ;;  %v5727_v45 = vpack.c.bf16 %v1105_v19, %v1105_v19  ;;  %v1295_v15 = vld [vmem:[#allocation12 + $0x5c8] sm:$0xff]  ;;  %v4403_v18 = vcombine.high %v1168_v14, %v1172_v56  ;;  %v1176_v19 = vld [vmem:[#allocation12 + $0x210] sm:$0xff] }
 0x3fd   :  { %2811 = vmatprep.subr.bf16.mxu1 %v4473_v17  ;;  %v4520_v17 = vcombine.low %v1287_v9, %v1291_v10  ;;  %v4529_v37 = vcombine.high %v1295_v15, %v1299_v16  ;;  %v4528_v23 = vcombine.low %v1295_v15, %v1299_v16  ;;  %v1216_v8 = vld [vmem:[#allocation12 + $0x350] sm:$0xff]  ;;  %v1343_v10 = vld [vmem:[#allocation12 + $0x748] sm:$0xff] }
 0x3fe   :  { %2761 = vmatprep.mubr.bf16.mxu0 %v5727_v45  ;;  %v1220_v9 = vld [vmem:[#allocation12 + $0x370] sm:$0xff]  ;;  %v1351_v16 = vld [vmem:[#allocation12 + $0x788] sm:$0xff] }
 0x3ff   :  { %2762 = vmatmul.mubr.bf16.vlgmr.msra.gmra.mrb[4].mxu0 %v5729_v22  ;;  %2803 = vmatmul.mubr.bf16.vlgmr.msra.gmra.mrb[16].mxu1 %v5697_v5  ;;  %v1228_v15 = vld [vmem:[#allocation12 + $0x3b0] sm:$0xff] }
 0x400   :  { %2853 = vmatpush1.bf16.msra.mxu0 %v4346_v54  ;;  %2812 = vmatpush1.bf16.msra.mxu1 %v4472_v47  ;;  %v4497_v54 = vcombine.high %v1263_v34, %v1267_v35  ;;  %v4402_v47 = vcombine.low %v1168_v14, %v1172_v56  ;;  %v1196_v34 = vld [vmem:[#allocation12 + $0x2b0] sm:$0xff]  ;;  %v1319_v35 = vld [vmem:[#allocation12 + $0x688] sm:$0xff] }
 0x401   :  { %2843 = vmatprep.mubr.bf16.mxu1 %v5727_v45  ;;  %2884 = vmatprep.mubr.bf16.mxu0 %v5692_v0  ;;  %v1224_v56 = vld [vmem:[#allocation12 + $0x390] sm:$0xff] }
 0x402   :  { %2854 = vmatprep.subr.bf16.mxu0 %v4355_v52  ;;  %2813 = vmatprep.subr.bf16.mxu1 %v4481_v24  ;;  %v4411_v52 = vcombine.high %v1176_v19, %v1180_v20  ;;  %v4537_v24 = vcombine.high %v1303_v21, %v1307_v44 }
 0x404   :  { %2855 = vmatpush1.bf16.msra.mxu0 %v4354_v28  ;;  %2814 = vmatpush1.bf16.msra.mxu1 %v4480_v29  ;;  %v1315_v28 = vld [vmem:[#allocation12 + $0x668] sm:$0xff]  ;;  %v4410_v29 = vcombine.low %v1176_v19, %v1180_v20  ;;  %v1232_v20 = vld [vmem:[#allocation12 + $0x3d0] sm:$0xff] }
 0x405   :  { %2856 = vmatprep.subr.bf16.mxu0 %v4363_v30  ;;  %2815 = vmatprep.subr.bf16.mxu1 %v4489_v31  ;;  %v4536_v30 = vcombine.low %v1303_v21, %v1307_v44  ;;  %v4419_v31 = vcombine.high %v1184_v25, %v1188_v26  ;;  %v4545_v32 = vcombine.high %v1311_v27, %v1315_v28  ;;  %v1236_v21 = vld [vmem:[#allocation12 + $0x3f0] sm:$0xff]  ;;  %v1359_v44 = vld [vmem:[#allocation12 + $0x7c8] sm:$0xff] }
 0x408   :  { %2857 = vmatpush1.bf16.msra.mxu0 %v4362_v38  ;;  %2816 = vmatpush1.bf16.msra.mxu1 %v4488_v50  ;;  %v1323_v38 = vld [vmem:[#allocation12 + $0x6a8] sm:$0xff]  ;;  %v4418_v50 = vcombine.low %v1184_v25, %v1188_v26  ;;  %v1240_v26 = vld [vmem:[#allocation12 + $0x410] sm:$0xff] }
 0x409   :  { %2858 = vmatprep.subr.bf16.mxu0 %v4371_v51  ;;  %2817 = vmatprep.subr.bf16.mxu1 %v4497_v54  ;;  %v4544_v51 = vcombine.low %v1311_v27, %v1315_v28  ;;  %v4427_v54 = vcombine.high %v1192_v33, %v1196_v34  ;;  %v4553_v39 = vcombine.high %v1319_v35, %v1323_v38  ;;  %v1244_v27 = vld [vmem:[#allocation12 + $0x430] sm:$0xff]  ;;  %v1113_v28 = vld [vmem:[#allocation12 + $0x18] sm:$0xff] }
 0x40c   :  { %2859 = vmatpush1.bf16.msra.mxu0 %v4370_v43  ;;  %2818 = vmatpush1.bf16.msra.mxu1 %v4496_v46  ;;  %v1331_v43 = vld [vmem:[#allocation12 + $0x6e8] sm:$0xff]  ;;  %v4426_v46 = vcombine.low %v1192_v33, %v1196_v34  ;;  %v1248_v34 = vld [vmem:[#allocation12 + $0x450] sm:$0xff] }
 0x40d   :  { %2860 = vmatprep.subr.bf16.mxu0 %v4379_v48  ;;  %2819 = vmatprep.subr.bf16.mxu1 %v4505_v49  ;;  %v4552_v48 = vcombine.low %v1319_v35, %v1323_v38  ;;  %v4435_v49 = vcombine.high %v1200_v40, %v1204_v41  ;;  %v4561_v53 = vcombine.high %v1327_v42, %v1331_v43  ;;  %v1252_v35 = vld [vmem:[#allocation12 + $0x470] sm:$0xff]  ;;  %v1121_v38 = vld [vmem:[#allocation12 + $0x58] sm:$0xff] }
 0x410   :  { %2861 = vmatpush1.bf16.msra.mxu0 %v4378_v60  ;;  %2820 = vmatpush1.bf16.msra.mxu1 %v4504_v61  ;;  %v1339_v60 = vld [vmem:[#allocation12 + $0x728] sm:$0xff]  ;;  %v4434_v61 = vcombine.low %v1200_v40, %v1204_v41  ;;  %v1256_v41 = vld [vmem:[#allocation12 + $0x490] sm:$0xff] }
 0x411   :  { %2862 = vmatprep.subr.bf16.mxu0 %v4387_v62  ;;  %2821 = vmatprep.subr.bf16.mxu1 %v4513_v6  ;;  %v4560_v62 = vcombine.low %v1327_v42, %v1331_v43  ;;  %v4443_v6 = vcombine.high %v1208_v55, %v1212_v58  ;;  %v4569_v7 = vcombine.high %v1335_v59, %v1339_v60  ;;  %v1260_v42 = vld [vmem:[#allocation12 + $0x4b0] sm:$0xff]  ;;  %v1129_v43 = vld [vmem:[#allocation12 + $0x98] sm:$0xff] }
 0x414   :  { %2863 = vmatpush1.bf16.msra.mxu0 %v4386_v11  ;;  %2822 = vmatpush1.bf16.msra.mxu1 %v4512_v36  ;;  %v1347_v11 = vld [vmem:[#allocation12 + $0x768] sm:$0xff]  ;;  %v4442_v36 = vcombine.low %v1208_v55, %v1212_v58  ;;  %v1264_v58 = vld [vmem:[#allocation12 + $0x4d0] sm:$0xff] }
 0x415   :  { %2864 = vmatprep.subr.bf16.mxu0 %v4395_v12  ;;  %2823 = vmatprep.subr.bf16.mxu1 %v4521_v13  ;;  %v4568_v12 = vcombine.low %v1335_v59, %v1339_v60  ;;  %v4451_v13 = vcombine.high %v1216_v8, %v1220_v9  ;;  %v4577_v14 = vcombine.high %v1343_v10, %v1347_v11  ;;  %v1268_v59 = vld [vmem:[#allocation12 + $0x4f0] sm:$0xff]  ;;  %v1137_v60 = vld [vmem:[#allocation12 + $0xd8] sm:$0xff] }
 0x418   :  { %2865 = vmatpush1.bf16.msra.mxu0 %v4394_v57  ;;  %2824 = vmatpush1.bf16.msra.mxu1 %v4520_v17  ;;  %v1355_v57 = vld [vmem:[#allocation12 + $0x7a8] sm:$0xff]  ;;  %v4450_v17 = vcombine.low %v1216_v8, %v1220_v9  ;;  %v1272_v9 = vld [vmem:[#allocation12 + $0x510] sm:$0xff] }
 0x419   :  { %2866 = vmatprep.subr.bf16.mxu0 %v4403_v18  ;;  %2825 = vmatprep.subr.bf16.mxu1 %v4529_v37  ;;  %v4576_v18 = vcombine.low %v1343_v10, %v1347_v11  ;;  %v4459_v37 = vcombine.high %v1224_v56, %v1228_v15  ;;  %v4585_v19 = vcombine.high %v1351_v16, %v1355_v57  ;;  %v1276_v10 = vld [vmem:[#allocation12 + $0x530] sm:$0xff]  ;;  %v1149_v11 = vld [vmem:[#allocation12 + $0x138] sm:$0xff] }
 0x41c   :  { %2867 = vmatpush1.bf16.msra.mxu0 %v4402_v47  ;;  %2826 = vmatpush1.bf16.msra.mxu1 %v4528_v23  ;;  %v1363_v47 = vld [vmem:[#allocation12 + $0x7e8] sm:$0xff]  ;;  %v4458_v23 = vcombine.low %v1224_v56, %v1228_v15  ;;  %v1280_v56 = vld [vmem:[#allocation12 + $0x550] sm:$0xff] }
 0x41d   :  { %2868 = vmatprep.subr.bf16.mxu0 %v4411_v52  ;;  %2827 = vmatprep.subr.bf16.mxu1 %v4537_v24  ;;  %v4584_v52 = vcombine.low %v1351_v16, %v1355_v57  ;;  %v4467_v24 = vcombine.high %v1232_v20, %v1236_v21  ;;  %v4593_v25 = vcombine.high %v1359_v44, %v1363_v47  ;;  %v1284_v15 = vld [vmem:[#allocation12 + $0x570] sm:$0xff]  ;;  %v1153_v16 = vld [vmem:[#allocation12 + $0x158] sm:$0xff] }
 0x41e   :  { %v1157_v57 = vld [vmem:[#allocation12 + $0x178] sm:$0xff] }
 0x420   :  { %2869 = vmatpush1.bf16.msra.mxu0 %v4410_v29  ;;  %2828 = vmatpush1.bf16.msra.mxu1 %v4536_v30  ;;  %v1117_v29 = vld [vmem:[#allocation12 + $0x38] sm:$0xff]  ;;  %v4466_v30 = vcombine.low %v1232_v20, %v1236_v21  ;;  %v1288_v20 = vld [vmem:[#allocation12 + $0x590] sm:$0xff] }
 0x421   :  { %2870 = vmatprep.subr.bf16.mxu0 %v4419_v31  ;;  %2829 = vmatprep.subr.bf16.mxu1 %v4545_v32  ;;  %v4592_v31 = vcombine.low %v1359_v44, %v1363_v47  ;;  %v4475_v32 = vcombine.high %v1240_v26, %v1244_v27  ;;  %v4349_v33 = vcombine.high %v1113_v28, %v1117_v29  ;;  %v1292_v21 = vld [vmem:[#allocation12 + $0x5b0] sm:$0xff]  ;;  %v1161_v44 = vld [vmem:[#allocation12 + $0x198] sm:$0xff] }
 0x422   :  { %v1165_v47 = vld [vmem:[#allocation12 + $0x1b8] sm:$0xff] }
 0x424   :  { %2871 = vmatpush1.bf16.msra.mxu0 %v4418_v50  ;;  %2830 = vmatpush1.bf16.msra.mxu1 %v4544_v51  ;;  %v1125_v50 = vld [vmem:[#allocation12 + $0x78] sm:$0xff]  ;;  %v4474_v51 = vcombine.low %v1240_v26, %v1244_v27  ;;  %v1296_v26 = vld [vmem:[#allocation12 + $0x5d0] sm:$0xff] }
 0x425   :  { %2872 = vmatprep.subr.bf16.mxu0 %v4427_v54  ;;  %2831 = vmatprep.subr.bf16.mxu1 %v4553_v39  ;;  %v4348_v54 = vcombine.low %v1113_v28, %v1117_v29  ;;  %v4483_v39 = vcombine.high %v1248_v34, %v1252_v35  ;;  %v4357_v40 = vcombine.high %v1121_v38, %v1125_v50  ;;  %v1300_v27 = vld [vmem:[#allocation12 + $0x5f0] sm:$0xff]  ;;  %v1169_v28 = vld [vmem:[#allocation12 + $0x1d8] sm:$0xff] }
 0x426   :  { %v1173_v29 = vld [vmem:[#allocation12 + $0x1f8] sm:$0xff] }
 0x428   :  { %2873 = vmatpush1.bf16.msra.mxu0 %v4426_v46  ;;  %2832 = vmatpush1.bf16.msra.mxu1 %v4552_v48  ;;  %v1133_v46 = vld [vmem:[#allocation12 + $0xb8] sm:$0xff]  ;;  %v4482_v48 = vcombine.low %v1248_v34, %v1252_v35  ;;  %v1304_v34 = vld [vmem:[#allocation12 + $0x610] sm:$0xff] }
 0x429   :  { %2874 = vmatprep.subr.bf16.mxu0 %v4435_v49  ;;  %2833 = vmatprep.subr.bf16.mxu1 %v4561_v53  ;;  %v4356_v49 = vcombine.low %v1121_v38, %v1125_v50  ;;  %v4491_v53 = vcombine.high %v1256_v41, %v1260_v42  ;;  %v4365_v55 = vcombine.high %v1129_v43, %v1133_v46  ;;  %v1308_v35 = vld [vmem:[#allocation12 + $0x630] sm:$0xff]  ;;  %v1177_v38 = vld [vmem:[#allocation12 + $0x218] sm:$0xff] }
 0x42a   :  { %v1181_v50 = vld [vmem:[#allocation12 + $0x238] sm:$0xff] }
 0x42c   :  { %2875 = vmatpush1.bf16.msra.mxu0 %v4434_v61  ;;  %2834 = vmatpush1.bf16.msra.mxu1 %v4560_v62  ;;  %v1141_v61 = vld [vmem:[#allocation12 + $0xf8] sm:$0xff]  ;;  %v4490_v62 = vcombine.low %v1256_v41, %v1260_v42  ;;  %v1312_v41 = vld [vmem:[#allocation12 + $0x650] sm:$0xff] }
 0x42d   :  { %2876 = vmatprep.subr.bf16.mxu0 %v4443_v6  ;;  %2835 = vmatprep.subr.bf16.mxu1 %v4569_v7  ;;  %v4364_v6 = vcombine.low %v1129_v43, %v1133_v46  ;;  %v4499_v7 = vcombine.high %v1264_v58, %v1268_v59  ;;  %v4373_v8 = vcombine.high %v1137_v60, %v1141_v61  ;;  %v1316_v42 = vld [vmem:[#allocation12 + $0x670] sm:$0xff]  ;;  %v1185_v43 = vld [vmem:[#allocation12 + $0x258] sm:$0xff] }
 0x42e   :  { %v1189_v46 = vld [vmem:[#allocation12 + $0x278] sm:$0xff] }
 0x430   :  { %2877 = vmatpush1.bf16.msra.mxu0 %v4442_v36  ;;  %2836 = vmatpush1.bf16.msra.mxu1 %v4568_v12  ;;  %v4498_v36 = vcombine.low %v1264_v58, %v1268_v59  ;;  %v4372_v12 = vcombine.low %v1137_v60, %v1141_v61  ;;  %v1320_v58 = vld [vmem:[#allocation12 + $0x690] sm:$0xff]  ;;  %v1193_v60 = vld [vmem:[#allocation12 + $0x298] sm:$0xff] }
 0x431   :  { %2878 = vmatprep.subr.bf16.mxu0 %v4451_v13  ;;  %2837 = vmatprep.subr.bf16.mxu1 %v4577_v14  ;;  %v4507_v13 = vcombine.high %v1272_v9, %v1276_v10  ;;  %v1324_v59 = vld [vmem:[#allocation12 + $0x6b0] sm:$0xff]  ;;  %v1197_v61 = vld [vmem:[#allocation12 + $0x2b8] sm:$0xff] }
 0x434   :  { %2879 = vmatpush1.bf16.msra.mxu0 %v4450_v17  ;;  %2838 = vmatpush1.bf16.msra.mxu1 %v4576_v18  ;;  %v4506_v17 = vcombine.low %v1272_v9, %v1276_v10  ;;  %v1328_v9 = vld [vmem:[#allocation12 + $0x6d0] sm:$0xff] }
 0x435   :  { %2880 = vmatprep.subr.bf16.mxu0 %v4459_v37  ;;  %2839 = vmatprep.subr.bf16.mxu1 %v4585_v19  ;;  %v4515_v37 = vcombine.high %v1280_v56, %v1284_v15  ;;  %v4389_v19 = vcombine.high %v1153_v16, %v1157_v57  ;;  %v1332_v10 = vld [vmem:[#allocation12 + $0x6f0] sm:$0xff] }
 0x438   :  { %2881 = vmatpush1.bf16.msra.mxu0 %v4458_v23  ;;  %2840 = vmatpush1.bf16.msra.mxu1 %v4584_v52  ;;  %v4514_v23 = vcombine.low %v1280_v56, %v1284_v15  ;;  %v4388_v52 = vcombine.low %v1153_v16, %v1157_v57  ;;  %v1336_v56 = vld [vmem:[#allocation12 + $0x710] sm:$0xff]  ;;  %v1209_v16 = vld [vmem:[#allocation12 + $0x318] sm:$0xff] }
 0x439   :  { %2882 = vmatprep.subr.bf16.mxu0 %v4467_v24  ;;  %2841 = vmatprep.subr.bf16.mxu1 %v4593_v25  ;;  %v4523_v24 = vcombine.high %v1288_v20, %v1292_v21  ;;  %v4397_v25 = vcombine.high %v1161_v44, %v1165_v47  ;;  %v1340_v15 = vld [vmem:[#allocation12 + $0x730] sm:$0xff]  ;;  %v1213_v57 = vld [vmem:[#allocation12 + $0x338] sm:$0xff] }
 0x43c   :  { %2883 = vmatpush1.bf16.msra.mxu0 %v4466_v30  ;;  %2842 = vmatpush1.bf16.msra.mxu1 %v4592_v31  ;;  %v4522_v30 = vcombine.low %v1288_v20, %v1292_v21  ;;  %v4396_v31 = vcombine.low %v1161_v44, %v1165_v47  ;;  %v1344_v20 = vld [vmem:[#allocation12 + $0x750] sm:$0xff]  ;;  %v1217_v44 = vld [vmem:[#allocation12 + $0x358] sm:$0xff] }
 0x43d   :  { %2893 = vmatprep.subr.bf16.mxu0 %v4475_v32  ;;  %2934 = vmatprep.subr.bf16.mxu1 %v4349_v33  ;;  %v4531_v32 = vcombine.high %v1296_v26, %v1300_v27  ;;  %v4405_v33 = vcombine.high %v1169_v28, %v1173_v29  ;;  %v1348_v21 = vld [vmem:[#allocation12 + $0x770] sm:$0xff]  ;;  %v1221_v47 = vld [vmem:[#allocation12 + $0x378] sm:$0xff] }
 0x43f   :  { %2885 = vmatmul.mubr.bf16.vlgmr.msra.gmra.mrb[8].mxu0 %v5697_v5  ;;  %2844 = vmatmul.mubr.bf16.vlgmr.msra.gmra.mrb[16].mxu1 %v5729_v22 }
 0x440   :  { %2894 = vmatpush1.bf16.msra.mxu0 %v4474_v51  ;;  %2925 = vmatprep.mubr.bf16.mxu0 %v5727_v45  ;;  %v4530_v51 = vcombine.low %v1296_v26, %v1300_v27  ;;  %v1352_v26 = vld [vmem:[#allocation12 + $0x790] sm:$0xff] }
 0x441   :  { %2935 = vmatpush1.bf16.msra.mxu1 %v4348_v54  ;;  %2966 = vmatprep.mubr.bf16.mxu1 %v5692_v0  ;;  %v1145_v0 = vld [vmem:[#allocation12 + $0x118] sm:$0xff]  ;;  %v4404_v54 = vcombine.low %v1169_v28, %v1173_v29  ;;  %v1356_v27 = vld [vmem:[#allocation12 + $0x7b0] sm:$0xff] }
 0x442   :  { %2895 = vmatprep.subr.bf16.mxu0 %v4483_v39  ;;  %2936 = vmatprep.subr.bf16.mxu1 %v4357_v40  ;;  %v4381_v14 = vcombine.high %v1145_v0, %v1149_v11  ;;  %v4380_v18 = vcombine.low %v1145_v0, %v1149_v11  ;;  %v4539_v39 = vcombine.high %v1304_v34, %v1308_v35  ;;  %v1201_v0 = vld [vmem:[#allocation12 + $0x2d8] sm:$0xff] }
 0x443   :  { %v4413_v40 = vcombine.high %v1177_v38, %v1181_v50  ;;  %v1205_v11 = vld [vmem:[#allocation12 + $0x2f8] sm:$0xff] }
 0x444   :  { %2896 = vmatpush1.bf16.msra.mxu0 %v4482_v48  ;;  %v4538_v48 = vcombine.low %v1304_v34, %v1308_v35  ;;  %v1225_v28 = vld [vmem:[#allocation12 + $0x398] sm:$0xff]  ;;  %v1360_v34 = vld [vmem:[#allocation12 + $0x7d0] sm:$0xff] }
 0x445   :  { %2937 = vmatpush1.bf16.msra.mxu1 %v4356_v49  ;;  %2897 = vmatprep.subr.bf16.mxu0 %v4491_v53  ;;  %v4412_v49 = vcombine.low %v1177_v38, %v1181_v50  ;;  %v4547_v53 = vcombine.high %v1312_v41, %v1316_v42  ;;  %v1229_v29 = vld [vmem:[#allocation12 + $0x3b8] sm:$0xff]  ;;  %v1364_v35 = vld [vmem:[#allocation12 + $0x7f0] sm:$0xff] }
 0x446   :  { %2938 = vmatprep.subr.bf16.mxu1 %v4365_v55  ;;  %v4421_v55 = vcombine.high %v1185_v43, %v1189_v46  ;;  %v1233_v38 = vld [vmem:[#allocation12 + $0x3d8] sm:$0xff] }
 0x447   :  { %v1237_v50 = vld [vmem:[#allocation12 + $0x3f8] sm:$0xff] }
 0x448   :  { %2898 = vmatpush1.bf16.msra.mxu0 %v4490_v62  ;;  %v4546_v62 = vcombine.low %v1312_v41, %v1316_v42  ;;  %v1241_v41 = vld [vmem:[#allocation12 + $0x418] sm:$0xff] }
 0x449   :  { %2939 = vmatpush1.bf16.msra.mxu1 %v4364_v6  ;;  %2899 = vmatprep.subr.bf16.mxu0 %v4499_v7  ;;  %v4420_v6 = vcombine.low %v1185_v43, %v1189_v46  ;;  %v4555_v7 = vcombine.high %v1320_v58, %v1324_v59  ;;  %v1245_v42 = vld [vmem:[#allocation12 + $0x438] sm:$0xff]  ;;  %v4594_v43 = vcombine.low %v1360_v34, %v1364_v35 }
 0x44a   :  { %2940 = vmatprep.subr.bf16.mxu1 %v4373_v8  ;;  %v4429_v8 = vcombine.high %v1193_v60, %v1197_v61  ;;  %v4468_v46 = vcombine.low %v1233_v38, %v1237_v50 }
 0x44c   :  { %2900 = vmatpush1.bf16.msra.mxu0 %v4498_v36  ;;  %v4554_v36 = vcombine.low %v1320_v58, %v1324_v59  ;;  %v4914_v58 = vld [vmem:[#allocation16] ss:$8 sps:$4 sm:$0xff]   ;;  %v4476_v59 = vcombine.low %v1241_v41, %v1245_v42 }
 0x44d   :  { %2941 = vmatpush1.bf16.msra.mxu1 %v4372_v12  ;;  %2901 = vmatprep.subr.bf16.mxu0 %v4507_v13  ;;  %v4428_v12 = vcombine.low %v1193_v60, %v1197_v61  ;;  %v4563_v13 = vcombine.high %v1328_v9, %v1332_v10  ;;  %v4919_v61 = vld [vmem:[#allocation16 + $0x14] ss:$8 sps:$4 sm:$0xff]  }
 0x44e   :  { %2942 = vmatprep.subr.bf16.mxu1 %v4381_v14  ;;  %v4437_v14 = vcombine.high %v1201_v0, %v1205_v11 }
 0x450   :  { %2902 = vmatpush1.bf16.msra.mxu0 %v4506_v17  ;;  %v4562_v17 = vcombine.low %v1328_v9, %v1332_v10  ;;  %v4922_v9 = vld [vmem:[#allocation16 + $0x24] ss:$8 sps:$4 sm:$0xff]  }
 0x451   :  { %2943 = vmatpush1.bf16.msra.mxu1 %v4380_v18  ;;  %2903 = vmatprep.subr.bf16.mxu0 %v4515_v37  ;;  %v4436_v18 = vcombine.low %v1201_v0, %v1205_v11  ;;  %v4571_v37 = vcombine.high %v1336_v56, %v1340_v15  ;;  %v1265_v0 = vld [vmem:[#allocation12 + $0x4d8] sm:$0xff] }
 0x452   :  { %2944 = vmatprep.subr.bf16.mxu1 %v4389_v19  ;;  %v4445_v19 = vcombine.high %v1209_v16, %v1213_v57  ;;  %v1269_v11 = vld [vmem:[#allocation12 + $0x4f8] sm:$0xff] }
 0x454   :  { %2904 = vmatpush1.bf16.msra.mxu0 %v4514_v23  ;;  %v4570_v23 = vcombine.low %v1336_v56, %v1340_v15  ;;  %v1277_v56 = vld [vmem:[#allocation12 + $0x538] sm:$0xff]  ;;  %v4923_v15 = vld [vmem:[#allocation16 + $0x30] ss:$8 sps:$4 sm:$0xff]  }
 0x455   :  { %2945 = vmatpush1.bf16.msra.mxu1 %v4388_v52  ;;  %2905 = vmatprep.subr.bf16.mxu0 %v4523_v24  ;;  %v4444_v52 = vcombine.low %v1209_v16, %v1213_v57  ;;  %v4579_v24 = vcombine.high %v1344_v20, %v1348_v21  ;;  %v4928_v16 = vld [vmem:[#allocation16 + $0x44] ss:$8 sps:$4 sm:$0xff]  }
 0x456   :  { %2946 = vmatprep.subr.bf16.mxu1 %v4397_v25  ;;  %v4453_v25 = vcombine.high %v1217_v44, %v1221_v47 }
 0x458   :  { %2906 = vmatpush1.bf16.msra.mxu0 %v4522_v30  ;;  %v4578_v30 = vcombine.low %v1344_v20, %v1348_v21  ;;  %v4931_v20 = vld [vmem:[#allocation16 + $0x54] ss:$8 sps:$4 sm:$0xff]  }
 0x459   :  { %2947 = vmatpush1.bf16.msra.mxu1 %v4396_v31  ;;  %2907 = vmatprep.subr.bf16.mxu0 %v4531_v32  ;;  %v4452_v31 = vcombine.low %v1217_v44, %v1221_v47  ;;  %v4587_v32 = vcombine.high %v1352_v26, %v1356_v27  ;;  %v1289_v44 = vld [vmem:[#allocation12 + $0x598] sm:$0xff] }
 0x45a   :  { %2948 = vmatprep.subr.bf16.mxu1 %v4405_v33  ;;  %v4461_v33 = vcombine.high %v1225_v28, %v1229_v29  ;;  %v1293_v47 = vld [vmem:[#allocation12 + $0x5b8] sm:$0xff] }
 0x45c   :  { %2908 = vmatpush1.bf16.msra.mxu0 %v4530_v51  ;;  %v4586_v51 = vcombine.low %v1352_v26, %v1356_v27  ;;  %v4525_v26 = vcombine.high %v1289_v44, %v1293_v47 }
 0x45d   :  { %2949 = vmatpush1.bf16.msra.mxu1 %v4404_v54  ;;  %2909 = vmatprep.subr.bf16.mxu0 %v4539_v39  ;;  %v4460_v54 = vcombine.low %v1225_v28, %v1229_v29  ;;  %v4595_v39 = vcombine.high %v1360_v34, %v1364_v35  ;;  %v1297_v28 = vld [vmem:[#allocation12 + $0x5d8] sm:$0xff]  ;;  %v4937_v34 = vld [vmem:[#allocation16 + $0x74] ss:$8 sps:$4 sm:$0xff]  }
 0x45e   :  { %2950 = vmatprep.subr.bf16.mxu1 %v4413_v40  ;;  %v4469_v40 = vcombine.high %v1233_v38, %v1237_v50  ;;  %v1301_v29 = vld [vmem:[#allocation12 + $0x5f8] sm:$0xff] }
 0x45f   :  { %v4533_v35 = vcombine.high %v1297_v28, %v1301_v29  ;;  %v1305_v38 = vld [vmem:[#allocation12 + $0x618] sm:$0xff] }
 0x460   :  { %2910 = vmatpush1.bf16.msra.mxu0 %v4538_v48  ;;  %v4916_v48 = vld [vmem:[#allocation16 + $0x4] ss:$8 sps:$4 sm:$0xff]  }
 0x461   :  { %2951 = vmatpush1.bf16.msra.mxu1 %v4412_v49  ;;  %2911 = vmatprep.subr.bf16.mxu0 %v4547_v53  ;;  %v4477_v49 = vcombine.high %v1241_v41, %v1245_v42  ;;  %v1249_v53 = vld [vmem:[#allocation12 + $0x458] sm:$0xff] }
 0x462   :  { %2952 = vmatprep.subr.bf16.mxu1 %v4421_v55  ;;  %v1253_v55 = vld [vmem:[#allocation12 + $0x478] sm:$0xff] }
 0x463   :  { %v4485_v60 = vcombine.high %v1249_v53, %v1253_v55  ;;  %v1309_v50 = vld [vmem:[#allocation12 + $0x638] sm:$0xff] }
 0x464   :  { %2912 = vmatpush1.bf16.msra.mxu0 %v4546_v62  ;;  %v1257_v62 = vld [vmem:[#allocation12 + $0x498] sm:$0xff] }
 0x465   :  { %2953 = vmatpush1.bf16.msra.mxu1 %v4420_v6  ;;  %2913 = vmatprep.subr.bf16.mxu0 %v4555_v7  ;;  %v1261_v6 = vld [vmem:[#allocation12 + $0x4b8] sm:$0xff]  ;;  %v4917_v7 = vld [vmem:[#allocation16 + $0x10] ss:$8 sps:$4 sm:$0xff]  }
 0x466   :  { %2954 = vmatprep.subr.bf16.mxu1 %v4429_v8  ;;  %v4484_v8 = vcombine.low %v1249_v53, %v1253_v55  ;;  %v4493_v10 = vcombine.high %v1257_v62, %v1261_v6  ;;  %v1313_v41 = vld [vmem:[#allocation12 + $0x658] sm:$0xff] }
 0x467   :  { %v1317_v42 = vld [vmem:[#allocation12 + $0x678] sm:$0xff] }
 0x468   :  { %2914 = vmatpush1.bf16.msra.mxu0 %v4554_v36  ;;  %v4920_v36 = vld [vmem:[#allocation16 + $0x20] ss:$8 sps:$4 sm:$0xff]  }
 0x469   :  { %2955 = vmatpush1.bf16.msra.mxu1 %v4428_v12  ;;  %2915 = vmatprep.subr.bf16.mxu0 %v4563_v13  ;;  %v4492_v12 = vcombine.low %v1257_v62, %v1261_v6  ;;  %v4925_v13 = vld [vmem:[#allocation16 + $0x34] ss:$8 sps:$4 sm:$0xff]   ;;  %v1321_v53 = vld [vmem:[#allocation12 + $0x698] sm:$0xff] }
 0x46a   :  { %2956 = vmatprep.subr.bf16.mxu1 %v4437_v14  ;;  %v1273_v14 = vld [vmem:[#allocation12 + $0x518] sm:$0xff] }
 0x46b   :  { %v4509_v57 = vcombine.high %v1273_v14, %v1277_v56  ;;  %v1325_v55 = vld [vmem:[#allocation12 + $0x6b8] sm:$0xff] }
 0x46c   :  { %2916 = vmatpush1.bf16.msra.mxu0 %v4562_v17  ;;  %v1281_v17 = vld [vmem:[#allocation12 + $0x558] sm:$0xff] }
 0x46d   :  { %2957 = vmatpush1.bf16.msra.mxu1 %v4436_v18  ;;  %2917 = vmatprep.subr.bf16.mxu0 %v4571_v37  ;;  %v1285_v18 = vld [vmem:[#allocation12 + $0x578] sm:$0xff] }
 0x46e   :  { %2958 = vmatprep.subr.bf16.mxu1 %v4445_v19  ;;  %v4926_v37 = vld [vmem:[#allocation16 + $0x40] ss:$8 sps:$4 sm:$0xff]   ;;  %v4508_v19 = vcombine.low %v1273_v14, %v1277_v56  ;;  %v4517_v21 = vcombine.high %v1281_v17, %v1285_v18 }
 0x46f   :  { %v1329_v62 = vld [vmem:[#allocation12 + $0x6d8] sm:$0xff] }
 0x470   :  { %2918 = vmatpush1.bf16.msra.mxu0 %v4570_v23  ;;  %v4929_v23 = vld [vmem:[#allocation16 + $0x50] ss:$8 sps:$4 sm:$0xff]   ;;  %v1333_v6 = vld [vmem:[#allocation12 + $0x6f8] sm:$0xff] }
 0x471   :  { %2959 = vmatpush1.bf16.msra.mxu1 %v4444_v52  ;;  %2919 = vmatprep.subr.bf16.mxu0 %v4579_v24  ;;  %v4516_v52 = vcombine.low %v1281_v17, %v1285_v18  ;;  %v4934_v24 = vld [vmem:[#allocation16 + $0x64] ss:$8 sps:$4 sm:$0xff]  }
 0x472   :  { %2960 = vmatprep.subr.bf16.mxu1 %v4453_v25  ;;  %v1345_v14 = vld [vmem:[#allocation12 + $0x758] sm:$0xff] }
 0x473   :  { %v1349_v56 = vld [vmem:[#allocation12 + $0x778] sm:$0xff] }
 0x474   :  { %2920 = vmatpush1.bf16.msra.mxu0 %v4578_v30  ;;  %v1353_v17 = vld [vmem:[#allocation12 + $0x798] sm:$0xff] }
 0x475   :  { %2961 = vmatpush1.bf16.msra.mxu1 %v4452_v31  ;;  %2921 = vmatprep.subr.bf16.mxu0 %v4587_v32  ;;  %v4932_v31 = vld [vmem:[#allocation16 + $0x60] ss:$8 sps:$4 sm:$0xff]  }
 0x476   :  { %2962 = vmatprep.subr.bf16.mxu1 %v4461_v33  ;;  %v4524_v33 = vcombine.low %v1289_v44, %v1293_v47  ;;  %v1357_v18 = vld [vmem:[#allocation12 + $0x7b8] sm:$0xff] }
 0x477   :  { %v1361_v44 = vld [vmem:[#allocation12 + $0x7d8] sm:$0xff] }
 0x478   :  { %2922 = vmatpush1.bf16.msra.mxu0 %v4586_v51  ;;  %v4935_v51 = vld [vmem:[#allocation16 + $0x70] ss:$8 sps:$4 sm:$0xff]   ;;  %v1365_v47 = vld [vmem:[#allocation12 + $0x7f8] sm:$0xff] }
 0x479   :  { %2963 = vmatpush1.bf16.msra.mxu1 %v4460_v54  ;;  %2923 = vmatprep.subr.bf16.mxu0 %v4595_v39  ;;  %v4532_v54 = vcombine.low %v1297_v28, %v1301_v29  ;;  %v4940_v39 = vld [vmem:[#allocation16 + $0x84] ss:$8 sps:$4 sm:$0xff]   ;;  %v4959_v28 = vld [vmem:[#allocation16 + $0xf0] ss:$8 sps:$4 sm:$0xff]   ;;  %v4596_v29 = vcombine.low %v1361_v44, %v1365_v47 }
 0x47a   :  { %2964 = vmatprep.subr.bf16.mxu1 %v4469_v40  ;;  %v4541_v40 = vcombine.high %v1305_v38, %v1309_v50 }
 0x47c   :  { %2924 = vmatpush1.bf16.msra.mxu0 %v4594_v43  ;;  %v4938_v43 = vld [vmem:[#allocation16 + $0x80] ss:$8 sps:$4 sm:$0xff]  }
 0x47d   :  { %2965 = vmatpush1.bf16.msra.mxu1 %v4468_v46  ;;  %4080 = vmatprep.subr.bf16.mxu0 %v4916_v48  ;;  %v4540_v46 = vcombine.low %v1305_v38, %v1309_v50  ;;  %v4943_v48 = vld [vmem:[#allocation16 + $0x94] ss:$8 sps:$4 sm:$0xff]  }
 0x47e   :  { %2975 = vmatprep.subr.bf16.mxu1 %v4477_v49  ;;  %v4549_v49 = vcombine.high %v1313_v41, %v1317_v42 }
 0x47f   :  { %2926 = vmatmul.mubr.bf16.vlgmr.msra.gmra.mrb[8].mxu0 %v5729_v22 }
 0x480   :  { %2967 = vmatmul.mubr.bf16.vlgmr.msra.gmra.mrb[20].mxu1 %v5697_v5  ;;  %4081 = vmatpush1.bf16.msra.mxu0 %v4914_v58  ;;  %v4501_v5 = vcombine.high %v1265_v0, %v1269_v11  ;;  %v4941_v58 = vld [vmem:[#allocation16 + $0x90] ss:$8 sps:$4 sm:$0xff]  }
 0x481   :  { %2976 = vmatpush1.bf16.msra.mxu1 %v4476_v59  ;;  %3007 = vmatprep.mubr.bf16.mxu1 %v5727_v45  ;;  %v4500_v45 = vcombine.low %v1265_v0, %v1269_v11  ;;  %v4548_v59 = vcombine.low %v1313_v41, %v1317_v42  ;;  %v1337_v0 = vld [vmem:[#allocation12 + $0x718] sm:$0xff] }
 0x482   :  { %2977 = vmatprep.subr.bf16.mxu1 %v4485_v60  ;;  %4082 = vmatprep.subr.bf16.mxu0 %v4919_v61  ;;  %v4946_v60 = vld [vmem:[#allocation16 + $0xa4] ss:$8 sps:$4 sm:$0xff]   ;;  %v4557_v61 = vcombine.high %v1321_v53, %v1325_v55 }
 0x483   :  { %v1341_v11 = vld [vmem:[#allocation12 + $0x738] sm:$0xff] }
 0x484   :  { %4083 = vmatpush1.bf16.msra.mxu0 %v4917_v7  ;;  %v4944_v7 = vld [vmem:[#allocation16 + $0xa0] ss:$8 sps:$4 sm:$0xff]  }
 0x485   :  { %2978 = vmatpush1.bf16.msra.mxu1 %v4484_v8  ;;  %4084 = vmatprep.subr.bf16.mxu0 %v4922_v9  ;;  %v4556_v8 = vcombine.low %v1321_v53, %v1325_v55  ;;  %v4949_v9 = vld [vmem:[#allocation16 + $0xb4] ss:$8 sps:$4 sm:$0xff]  }
 0x486   :  { %2979 = vmatprep.subr.bf16.mxu1 %v4493_v10  ;;  %v4565_v10 = vcombine.high %v1329_v62, %v1333_v6 }
 0x488   :  { %4085 = vmatpush1.bf16.msra.mxu0 %v4920_v36  ;;  %v4947_v36 = vld [vmem:[#allocation16 + $0xb0] ss:$8 sps:$4 sm:$0xff]  }
 0x489   :  { %2980 = vmatpush1.bf16.msra.mxu1 %v4492_v12  ;;  %4086 = vmatprep.subr.bf16.mxu0 %v4925_v13  ;;  %v4564_v12 = vcombine.low %v1329_v62, %v1333_v6  ;;  %v4952_v13 = vld [vmem:[#allocation16 + $0xc4] ss:$8 sps:$4 sm:$0xff]  }
 0x48a   :  { %2981 = vmatprep.subr.bf16.mxu1 %v4501_v5  ;;  %v4573_v5 = vcombine.high %v1337_v0, %v1341_v11 }
 0x48c   :  { %4087 = vmatpush1.bf16.msra.mxu0 %v4923_v15  ;;  %v4950_v15 = vld [vmem:[#allocation16 + $0xc0] ss:$8 sps:$4 sm:$0xff]  }
 0x48d   :  { %2982 = vmatpush1.bf16.msra.mxu1 %v4500_v45  ;;  %4088 = vmatprep.subr.bf16.mxu0 %v4928_v16  ;;  %v4572_v45 = vcombine.low %v1337_v0, %v1341_v11  ;;  %v4955_v16 = vld [vmem:[#allocation16 + $0xd4] ss:$8 sps:$4 sm:$0xff]  }
 0x48e   :  { %2983 = vmatprep.subr.bf16.mxu1 %v4509_v57  ;;  %v4581_v57 = vcombine.high %v1345_v14, %v1349_v56 }
 0x490   :  { %4089 = vmatpush1.bf16.msra.mxu0 %v4926_v37  ;;  %v4953_v37 = vld [vmem:[#allocation16 + $0xd0] ss:$8 sps:$4 sm:$0xff]  }
 0x491   :  { %2984 = vmatpush1.bf16.msra.mxu1 %v4508_v19  ;;  %4090 = vmatprep.subr.bf16.mxu0 %v4931_v20  ;;  %v4580_v19 = vcombine.low %v1345_v14, %v1349_v56  ;;  %v4958_v20 = vld [vmem:[#allocation16 + $0xe4] ss:$8 sps:$4 sm:$0xff]  }
 0x492   :  { %v5746_v25 = vpop.f32.mrb[12].mxu1  ;;  %2985 = vmatprep.subr.bf16.mxu1 %v4517_v21  ;;  %v4589_v21 = vcombine.high %v1353_v17, %v1357_v18 }
 0x493   :  { %v5748_v27 = vpop.f32.mrb[13].mxu1 }
 0x494   :  { %v2726_v30 = vpop.f32.mrb[14].mxu1  ;;  %4091 = vmatpush1.bf16.msra.mxu0 %v4929_v23  ;;  %v4956_v23 = vld [vmem:[#allocation16 + $0xe0] ss:$8 sps:$4 sm:$0xff]  }
 0x495   :  { %2986 = vmatpush1.bf16.msra.mxu1 %v4516_v52  ;;  %v2727_v32 = vpop.f32.mrb[15].mxu1  ;;  %4092 = vmatprep.subr.bf16.mxu0 %v4934_v24  ;;  %v4588_v52 = vcombine.low %v1353_v17, %v1357_v18  ;;  %v4961_v24 = vld [vmem:[#allocation16 + $0xf4] ss:$8 sps:$4 sm:$0xff]   ;;  %v4964_v30 = vld [vmem:[#allocation16 + $0x104] ss:$8 sps:$4 sm:$0xff]  }
 0x496   :  { %2987 = vmatprep.subr.bf16.mxu1 %v4525_v26  ;;  %v4597_v26 = vcombine.high %v1361_v44, %v1365_v47  ;;  %v5762_v18 = vld [vmem:[#allocation13] sm:$0xff] }
 0x498   :  { %4093 = vmatpush1.bf16.msra.mxu0 %v4932_v31  ;;  %v5754_v31 = vld [vmem:[%s5845_s12] sm:$0xff] }
 0x499   :  { %2988 = vmatpush1.bf16.msra.mxu1 %v4524_v33  ;;  %4094 = vmatprep.subr.bf16.mxu0 %v4937_v34  ;;  %v1371_v32 = vrot.slane %v5754_v31, %v5634_v2  ;;  %v1375_v33 = vrot.slane %v5754_v31, %v5640_v4 }
 0x49a   :  { %2989 = vmatprep.subr.bf16.mxu1 %v4533_v35 }
 0x49b   :  { %v2723_v34 = vadd.f32 %v5746_v25, %v1371_v32  ;;  %v2725_v35 = vadd.f32 %v5748_v27, %v1375_v33 }
 0x49c   :  { %4095 = vmatpush1.bf16.msra.mxu0 %v4935_v51 }
 0x49d   :  { %2990 = vmatpush1.bf16.msra.mxu1 %v4532_v54  ;;  %4096 = vmatprep.subr.bf16.mxu0 %v4940_v39 }
 0x49e   :  { %2991 = vmatprep.subr.bf16.mxu1 %v4541_v40 }
 0x4a0   :  { %4097 = vmatpush1.bf16.msra.mxu0 %v4938_v43 }
 0x4a1   :  { %2992 = vmatpush1.bf16.msra.mxu1 %v4540_v46  ;;  %4098 = vmatprep.subr.bf16.mxu0 %v4943_v48 }
 0x4a2   :  { %2993 = vmatprep.subr.bf16.mxu1 %v4549_v49 }
 0x4a4   :  { %4099 = vmatpush1.bf16.msra.mxu0 %v4941_v58 }
 0x4a5   :  { %2994 = vmatpush1.bf16.msra.mxu1 %v4548_v59  ;;  %4100 = vmatprep.subr.bf16.mxu0 %v4946_v60 }
 0x4a6   :  { %2995 = vmatprep.subr.bf16.mxu1 %v4557_v61 }
 0x4a8   :  { %4101 = vmatpush1.bf16.msra.mxu0 %v4944_v7 }
 0x4a9   :  { %2996 = vmatpush1.bf16.msra.mxu1 %v4556_v8  ;;  %4102 = vmatprep.subr.bf16.mxu0 %v4949_v9 }
 0x4aa   :  { %2997 = vmatprep.subr.bf16.mxu1 %v4565_v10 }
 0x4ac   :  { %4103 = vmatpush1.bf16.msra.mxu0 %v4947_v36 }
 0x4ad   :  { %2998 = vmatpush1.bf16.msra.mxu1 %v4564_v12  ;;  %4104 = vmatprep.subr.bf16.mxu0 %v4952_v13 }
 0x4ae   :  { %2999 = vmatprep.subr.bf16.mxu1 %v4573_v5 }
 0x4b0   :  { %4105 = vmatpush1.bf16.msra.mxu0 %v4950_v15 }
 0x4b1   :  { %3000 = vmatpush1.bf16.msra.mxu1 %v4572_v45  ;;  %4106 = vmatprep.subr.bf16.mxu0 %v4955_v16 }
 0x4b2   :  { %3001 = vmatprep.subr.bf16.mxu1 %v4581_v57 }
 0x4b4   :  { %4107 = vmatpush1.bf16.msra.mxu0 %v4953_v37  ;;  %v5764_v37 = vld [vmem:[#allocation15] sm:$0xff] }
 0x4b5   :  { %3002 = vmatpush1.bf16.msra.mxu1 %v4580_v19  ;;  %4108 = vmatprep.subr.bf16.mxu0 %v4958_v20  ;;  %v3173_v19 = vrot.slane %v5762_v18, %v5634_v2 }
 0x4b6   :  { %3003 = vmatprep.subr.bf16.mxu1 %v4589_v21  ;;  %v3177_v21 = vrot.slane %v5762_v18, %v5640_v4 }
 0x4b8   :  { %4109 = vmatpush1.bf16.msra.mxu0 %v4956_v23  ;;  %v3223_v23 = vrot.slane %v5764_v37, %v5634_v2 }
 0x4b9   :  { %3004 = vmatpush1.bf16.msra.mxu1 %v4588_v52  ;;  %4110 = vmatprep.subr.bf16.mxu0 %v4961_v24  ;;  %v3227_v24 = vrot.slane %v5764_v37, %v5640_v4 }
 0x4ba   :  { %3005 = vmatprep.subr.bf16.mxu1 %v4597_v26 }
 0x4bc   :  { %4111 = vmatpush1.bf16.msra.mxu0 %v4959_v28 }
 0x4bd   :  { %3006 = vmatpush1.bf16.msra.mxu1 %v4596_v29  ;;  %4121 = vmatprep.subr.bf16.mxu0 %v4964_v30 }
 0x4c0   :  { %3008 = vmatmul.mubr.bf16.vlgmr.msra.gmra.mrb[20].mxu1 %v5729_v22 }
 0x4d2   :  { %v2763_v38 = vpop.f32.mrb[4].mxu0 }
 0x4d3   :  { %v2764_v50 = vadd.f32 %v2763_v38, %v2723_v34  ;;  %v2765_v51 = vpop.f32.mrb[5].mxu0 }
 0x4d4   :  { %v2766_v54 = vadd.f32 %v2765_v51, %v2725_v35  ;;  %v2767_v22 = vpop.f32.mrb[6].mxu0 }
 0x4d5   :  { %v3016_v39 = vrot.slane %v2764_v50, 4  ;;  %v2768_v40 = vpop.f32.mrb[7].mxu0  ;;  %v1379_v22 = vrot.slane %v5754_v31, %v5690_v63 }
 0x4d6   :  { %v3022_v41 = vrot.slane %v2766_v54, 4  ;;  %v1383_v40 = vrot.slane %v5754_v31, %v5695_v3 }
 0x4d7   :  { %v3017_v42 = vadd.f32 %v3016_v39, %v2764_v50  ;;  %v4965_v39 = vld [vmem:[#allocation16 + $0x110] ss:$8 sps:$4 sm:$0xff]  }
 0x4d8   :  { %v3023_v43 = vadd.f32 %v3022_v41, %v2766_v54  ;;  %v4970_v41 = vld [vmem:[#allocation16 + $0x124] ss:$8 sps:$4 sm:$0xff]  }
 0x4d9   :  { %v3018_v46 = vrot.slane %v3017_v42, 2 }
 0x4da   :  { %v3024_v48 = vrot.slane %v3023_v43, 2 }
 0x4db   :  { %v3019_v49 = vadd.f32 %v3018_v46, %v3017_v42 }
 0x4dc   :  { %v3025_v53 = vadd.f32 %v3024_v48, %v3023_v43 }
 0x4dd   :  { %v3020_v55 = vrot.slane %v3019_v49, 1 }
 0x4de   :  { %v3026_v58 = vrot.slane %v3025_v53, 1 }
 0x4df   :  { %v3021_v59 = vadd.f32 %v3020_v55, %v3019_v49 }
 0x4e0   :  { %v3027_v25 = vadd.f32 %v3026_v58, %v3025_v53  ;;  %v4968_v53 = vld [vmem:[#allocation16 + $0x120] ss:$8 sps:$4 sm:$0xff]  }
 0x4e1   :  { %v3064_v60 = vmul.f32 0.125, %v3021_v59  ;;  %v4973_v59 = vld [vmem:[#allocation16 + $0x134] ss:$8 sps:$4 sm:$0xff]  }
 0x4e2   :  { %v3065_v27 = vmul.f32 0.125, %v3027_v25 }
 0x4e3   :  { %v3072_v61 = vsub.f32 %v2764_v50, %v3064_v60  ;;  %v4962_v50 = vld [vmem:[#allocation16 + $0x100] ss:$8 sps:$4 sm:$0xff]  }
 0x4e4   :  { %v3073_v62 = vsub.f32 %v2766_v54, %v3065_v27  ;;  %v4967_v54 = vld [vmem:[#allocation16 + $0x114] ss:$8 sps:$4 sm:$0xff]  }
 0x4e5   :  { %v3080_v6 = vmul.f32 %v3072_v61, %v3072_v61 }
 0x4e6   :  { %v3081_v7 = vmul.f32 %v3073_v62, %v3073_v62 }
 0x4e7   :  { %v3088_v8 = vrot.slane %v3080_v6, 4 }
 0x4e8   :  { %v3094_v9 = vrot.slane %v3081_v7, 4 }
 0x4e9   :  { %v3089_v10 = vadd.f32 %v3088_v8, %v3080_v6  ;;  %v4976_v6 = vld [vmem:[#allocation16 + $0x144] ss:$8 sps:$4 sm:$0xff]  }
 0x4ea   :  { %v3095_v0 = vadd.f32 %v3094_v9, %v3081_v7 }
 0x4eb   :  { %v3090_v11 = vrot.slane %v3089_v10, 2 }
 0x4ec   :  { %v3096_v36 = vrot.slane %v3095_v0, 2 }
 0x4ed   :  { %v3091_v12 = vadd.f32 %v3090_v11, %v3089_v10  ;;  %v4974_v10 = vld [vmem:[#allocation16 + $0x140] ss:$8 sps:$4 sm:$0xff]   ;;  %v4979_v11 = vld [vmem:[#allocation16 + $0x154] ss:$8 sps:$4 sm:$0xff]  }
 0x4ee   :  { %v3097_v13 = vadd.f32 %v3096_v36, %v3095_v0 }
 0x4ef   :  { %v3092_v5 = vrot.slane %v3091_v12, 1 }
 0x4f0   :  { %v3098_v14 = vrot.slane %v3097_v13, 1 }
 0x4f1   :  { %v3093_v56 = vadd.f32 %v3092_v5, %v3091_v12  ;;  %v4977_v5 = vld [vmem:[#allocation16 + $0x150] ss:$8 sps:$4 sm:$0xff]  }
 0x4f2   :  { %v3099_v15 = vadd.f32 %v3098_v14, %v3097_v13 }
 0x4f3   :  { %v3136_v45 = vmul.f32 0.125, %v3093_v56  ;;  %v4982_v56 = vld [vmem:[#allocation16 + $0x164] ss:$8 sps:$4 sm:$0xff]  }
 0x4f4   :  { %v3137_v16 = vmul.f32 0.125, %v3099_v15 }
 0x4f5   :  { %v3144_v57 = vadd.f32 0.8, %v3136_v45 }
 0x4f6   :  { %v3145_v17 = vadd.f32 0.8, %v3137_v16 }
 0x4f7   :  { %5118 = vrsqrt.f32 %v3144_v57  ;;  %v4980_v57 = vld [vmem:[#allocation16 + $0x160] ss:$8 sps:$4 sm:$0xff]  }
 0x4f8   :  { %5120 = vrsqrt.f32 %v3145_v17 }
 0x501   :  { %v5119_v20 = vpop.eup %5118 }
 0x502   :  { %v5121_v44 = vpop.eup %5120  ;;  %v3160_v47 = vmul.f32 %v5119_v20, %v3072_v61  ;;  %v4971_v61 = vld [vmem:[#allocation16 + $0x130] ss:$8 sps:$4 sm:$0xff]  }
 0x503   :  { %v3161_v52 = vmul.f32 %v5121_v44, %v3073_v62 }
 0x504   :  { %v3210_v26 = vmul.f32 %v3173_v19, %v3160_v47  ;;  %v4985_v19 = vld [vmem:[#allocation16 + $0x174] ss:$8 sps:$4 sm:$0xff]   ;;  %v4983_v47 = vld [vmem:[#allocation16 + $0x170] ss:$8 sps:$4 sm:$0xff]  }
 0x505   :  { %v3211_v28 = vmul.f32 %v3177_v21, %v3161_v52  ;;  %v4988_v52 = vld [vmem:[#allocation16 + $0x184] ss:$8 sps:$4 sm:$0xff]  }
 0x506   :  { %v3260_v29 = vadd.f32 %v3223_v23, %v3210_v26 }
 0x507   :  { %v3261_v30 = vadd.f32 %v3227_v24, %v3211_v28 }
 0x508   :  { %vm3268_vm9 = vcmp.gt.f32.partialorder %v3260_v29, 0.0  ;;  %v3276_v32 = vmul.f32 0.2, %v3260_v29 }
 0x509   :  { %vm3269_vm10 = vcmp.gt.f32.partialorder %v3261_v30, 0.0  ;;  %v3277_v33 = vmul.f32 0.2, %v3261_v30 }
 0x50a   :  { %v3284_v34 = vsel %vm3268_vm9, %v3260_v29, %v3276_v32  ;;  %v4986_v29 = vld [vmem:[#allocation16 + $0x180] ss:$8 sps:$4 sm:$0xff]   ;;  %v4991_v32 = vld [vmem:[#allocation16 + $0x194] ss:$8 sps:$4 sm:$0xff]  }
 0x50b   :  { %v3285_v35 = vsel %vm3269_vm10, %v3261_v30, %v3277_v33  ;;  %v3292_v51 = vpack.c.bf16 %v3284_v34, %v3284_v34 }
 0x50c   :  { %v3293_v38 = vpack.c.bf16 %v3285_v35, %v3285_v35 }
 0x50e   :  { %4112 = vmatprep.mubr.bf16.mxu0 %v3293_v38  ;;  %v4989_v38 = vld [vmem:[#allocation16 + $0x190] ss:$8 sps:$4 sm:$0xff]  }
 0x50f   :  { %4113 = vmatmul.mubr.bf16.vlgmr.msra.gmra.mrb[12].mxu0 %v3292_v51  ;;  %v4994_v51 = vld [vmem:[#allocation16 + $0x1a4] ss:$8 sps:$4 sm:$0xff]  }
 0x510   :  { %4122 = vmatpush1.bf16.msra.mxu0 %v4962_v50 }
 0x511   :  { %4123 = vmatprep.subr.bf16.mxu0 %v4967_v54 }
 0x512   :  { %v2845_v42 = vpop.f32.mrb[16].mxu1 }
 0x513   :  { %v4741_v43 = vadd.f32 %v2845_v42, %v1379_v22  ;;  %v2847_v46 = vpop.f32.mrb[17].mxu1  ;;  %v4997_v42 = vld [vmem:[#allocation16 + $0x1b4] ss:$8 sps:$4 sm:$0xff]  }
 0x514   :  { %v4742_v48 = vadd.f32 %v2847_v46, %v1383_v40  ;;  %4124 = vmatpush1.bf16.msra.mxu0 %v4965_v39  ;;  %v2849_v49 = vpop.f32.mrb[18].mxu1  ;;  %v4992_v40 = vld [vmem:[#allocation16 + $0x1a0] ss:$8 sps:$4 sm:$0xff]   ;;  %v4995_v46 = vld [vmem:[#allocation16 + $0x1b0] ss:$8 sps:$4 sm:$0xff]  }
 0x515   :  { %v3028_v55 = vrot.slane %v4741_v43, 4  ;;  %v2850_v58 = vpop.f32.mrb[19].mxu1  ;;  %4125 = vmatprep.subr.bf16.mxu0 %v4970_v41  ;;  %v4998_v49 = vld [vmem:[#allocation16 + $0x1c0] ss:$8 sps:$4 sm:$0xff]  }
 0x516   :  { %v3034_v25 = vrot.slane %v4742_v48, 4  ;;  %v5001_v58 = vld [vmem:[#allocation16 + $0x1d0] ss:$8 sps:$4 sm:$0xff]  }
 0x517   :  { %v3029_v60 = vadd.f32 %v4741_v43, %v3028_v55  ;;  %v3181_v55 = vrot.slane %v5762_v18, %v5690_v63 }
 0x518   :  { %v3035_v27 = vadd.f32 %v4742_v48, %v3034_v25  ;;  %4126 = vmatpush1.bf16.msra.mxu0 %v4968_v53  ;;  %v5003_v53 = vld [vmem:[#allocation16 + $0x1d4] ss:$8 sps:$4 sm:$0xff]   ;;  %v3185_v25 = vrot.slane %v5762_v18, %v5695_v3 }
 0x519   :  { %v3030_v62 = vrot.slane %v3029_v60, 2  ;;  %4127 = vmatprep.subr.bf16.mxu0 %v4973_v59 }
 0x51a   :  { %v3036_v7 = vrot.slane %v3035_v27, 2 }
 0x51b   :  { %v3031_v8 = vadd.f32 %v3030_v62, %v3029_v60  ;;  %v5006_v60 = vld [vmem:[#allocation16 + $0x1e4] ss:$8 sps:$4 sm:$0xff]   ;;  %v3231_v62 = vrot.slane %v5764_v37, %v5690_v63 }
 0x51c   :  { %v3037_v9 = vadd.f32 %v3036_v7, %v3035_v27  ;;  %4128 = vmatpush1.bf16.msra.mxu0 %v4971_v61  ;;  %v3235_v7 = vrot.slane %v5764_v37, %v5695_v3  ;;  %v5012_v63 = vld [vmem:[#allocation16 + $0x204] ss:$8 sps:$4 sm:$0xff]   ;;  %v5787_v3 = vsub.s32 4, %v5631_v1 }
 0x51d   :  { %v3032_v0 = vrot.slane %v3031_v8, 1  ;;  %4129 = vmatprep.subr.bf16.mxu0 %v4976_v6 }
 0x51e   :  { %v3038_v36 = vrot.slane %v3037_v9, 1 }
 0x51f   :  { %v3033_v12 = vadd.f32 %v3032_v0, %v3031_v8  ;;  %v5009_v0 = vld [vmem:[#allocation16 + $0x1f4] ss:$8 sps:$4 sm:$0xff]  }
 0x520   :  { %v3039_v13 = vadd.f32 %v3038_v36, %v3037_v9  ;;  %4130 = vmatpush1.bf16.msra.mxu0 %v4974_v10  ;;  %v5004_v9 = vld [vmem:[#allocation16 + $0x1e0] ss:$8 sps:$4 sm:$0xff]  }
 0x521   :  { %v3066_v14 = vmul.f32 0.125, %v3033_v12  ;;  %4131 = vmatprep.subr.bf16.mxu0 %v4979_v11  ;;  %v5007_v12 = vld [vmem:[#allocation16 + $0x1f0] ss:$8 sps:$4 sm:$0xff]  }
 0x522   :  { %v3067_v15 = vmul.f32 0.125, %v3039_v13 }
 0x523   :  { %v3074_v45 = vsub.f32 %v4741_v43, %v3066_v14 }
 0x524   :  { %v3075_v16 = vsub.f32 %v4742_v48, %v3067_v15  ;;  %4132 = vmatpush1.bf16.msra.mxu0 %v4977_v5  ;;  %v5000_v48 = vld [vmem:[#allocation16 + $0x1c4] ss:$8 sps:$4 sm:$0xff]  }
 0x525   :  { %v3082_v17 = vmul.f32 %v3074_v45, %v3074_v45  ;;  %4133 = vmatprep.subr.bf16.mxu0 %v4982_v56 }
 0x526   :  { %v3083_v20 = vmul.f32 %v3075_v16, %v3075_v16 }
 0x527   :  { %v3100_v21 = vrot.slane %v3082_v17, 4 }
 0x528   :  { %v3106_v44 = vrot.slane %v3083_v20, 4  ;;  %4134 = vmatpush1.bf16.msra.mxu0 %v4980_v57 }
 0x529   :  { %v3101_v23 = vadd.f32 %v3100_v21, %v3082_v17  ;;  %4135 = vmatprep.subr.bf16.mxu0 %v4985_v19  ;;  %v5015_v17 = vld [vmem:[#allocation16 + $0x214] ss:$8 sps:$4 sm:$0xff]   ;;  %v1387_v19 = vrot.slane %v5754_v31, %v5787_v3  ;;  %v5013_v21 = vld [vmem:[#allocation16 + $0x210] ss:$8 sps:$4 sm:$0xff]  }
 0x52a   :  { %v3107_v24 = vadd.f32 %v3106_v44, %v3083_v20  ;;  %v5018_v44 = vld [vmem:[#allocation16 + $0x224] ss:$8 sps:$4 sm:$0xff]  }
 0x52b   :  { %v3102_v26 = vrot.slane %v3101_v23, 2 }
 0x52c   :  { %v3108_v28 = vrot.slane %v3107_v24, 2  ;;  %4136 = vmatpush1.bf16.msra.mxu0 %v4983_v47 }
 0x52d   :  { %v3103_v30 = vadd.f32 %v3102_v26, %v3101_v23  ;;  %4137 = vmatprep.subr.bf16.mxu0 %v4988_v52 }
 0x52e   :  { %v3109_v33 = vadd.f32 %v3108_v28, %v3107_v24  ;;  %v5016_v28 = vld [vmem:[#allocation16 + $0x220] ss:$8 sps:$4 sm:$0xff]  }
 0x52f   :  { %v3104_v34 = vrot.slane %v3103_v30, 1 }
 0x530   :  { %v3110_v35 = vrot.slane %v3109_v33, 1  ;;  %4138 = vmatpush1.bf16.msra.mxu0 %v4986_v29 }
 0x531   :  { %v3105_v50 = vadd.f32 %v3104_v34, %v3103_v30  ;;  %4139 = vmatprep.subr.bf16.mxu0 %v4991_v32  ;;  %v5021_v32 = vld [vmem:[#allocation16 + $0x234] ss:$8 sps:$4 sm:$0xff]  }
 0x532   :  { %v3111_v54 = vadd.f32 %v3110_v35, %v3109_v33 }
 0x533   :  { %v3138_v22 = vmul.f32 0.125, %v3105_v50 }
 0x534   :  { %v3139_v39 = vmul.f32 0.125, %v3111_v54  ;;  %4140 = vmatpush1.bf16.msra.mxu0 %v4989_v38  ;;  %v5019_v38 = vld [vmem:[#allocation16 + $0x230] ss:$8 sps:$4 sm:$0xff]  }
 0x535   :  { %v3146_v41 = vadd.f32 0.8, %v3138_v22  ;;  %4141 = vmatprep.subr.bf16.mxu0 %v4994_v51  ;;  %v5024_v51 = vld [vmem:[#allocation16 + $0x244] ss:$8 sps:$4 sm:$0xff]  }
 0x536   :  { %v3147_v43 = vadd.f32 0.8, %v3139_v39 }
 0x537   :  { %5122 = vrsqrt.f32 %v3146_v41 }
 0x538   :  { %5124 = vrsqrt.f32 %v3147_v43  ;;  %4142 = vmatpush1.bf16.msra.mxu0 %v4992_v40  ;;  %v5022_v40 = vld [vmem:[#allocation16 + $0x240] ss:$8 sps:$4 sm:$0xff]  }
 0x539   :  { %4143 = vmatprep.subr.bf16.mxu0 %v4997_v42  ;;  %v5027_v42 = vld [vmem:[#allocation16 + $0x254] ss:$8 sps:$4 sm:$0xff]  }
 0x53c   :  { %4144 = vmatpush1.bf16.msra.mxu0 %v4995_v46 }
 0x53d   :  { %4145 = vmatprep.subr.bf16.mxu0 %v5000_v48 }
 0x540   :  { %4146 = vmatpush1.bf16.msra.mxu0 %v4998_v49  ;;  %v5025_v49 = vld [vmem:[#allocation16 + $0x250] ss:$8 sps:$4 sm:$0xff]  }
 0x541   :  { %v5123_v59 = vpop.eup %5122  ;;  %4147 = vmatprep.subr.bf16.mxu0 %v5003_v53 }
 0x542   :  { %v5125_v27 = vpop.eup %5124  ;;  %v3162_v61 = vmul.f32 %v5123_v59, %v3074_v45  ;;  %v5010_v45 = vld [vmem:[#allocation16 + $0x200] ss:$8 sps:$4 sm:$0xff]  }
 0x543   :  { %v3163_v6 = vmul.f32 %v5125_v27, %v3075_v16  ;;  %v5790_v16 = vsub.s32 5, %v5631_v1 }
 0x544   :  { %v3212_v8 = vmul.f32 %v3181_v55, %v3162_v61  ;;  %4148 = vmatpush1.bf16.msra.mxu0 %v5001_v58  ;;  %v5030_v55 = vld [vmem:[#allocation16 + $0x264] ss:$8 sps:$4 sm:$0xff]   ;;  %v5033_v61 = vld [vmem:[#allocation16 + $0x274] ss:$8 sps:$4 sm:$0xff]  }
 0x545   :  { %v3213_v10 = vmul.f32 %v3185_v25, %v3163_v6  ;;  %4149 = vmatprep.subr.bf16.mxu0 %v5006_v60  ;;  %v1391_v20 = vrot.slane %v5754_v31, %v5790_v16  ;;  %v5028_v60 = vld [vmem:[#allocation16 + $0x260] ss:$8 sps:$4 sm:$0xff]  }
 0x546   :  { %v3262_v11 = vadd.f32 %v3231_v62, %v3212_v8  ;;  %v5031_v8 = vld [vmem:[#allocation16 + $0x270] ss:$8 sps:$4 sm:$0xff]  }
 0x547   :  { %v3263_v36 = vadd.f32 %v3235_v7, %v3213_v10  ;;  %v5036_v10 = vld [vmem:[#allocation16 + $0x284] ss:$8 sps:$4 sm:$0xff]  }
 0x548   :  { %4150 = vmatpush1.bf16.msra.mxu0 %v5004_v9  ;;  %vm3270_vm11 = vcmp.gt.f32.partialorder %v3262_v11, 0.0  ;;  %v3278_v13 = vmul.f32 0.2, %v3262_v11 }
 0x549   :  { %4151 = vmatprep.subr.bf16.mxu0 %v5009_v0  ;;  %vm3271_vm12 = vcmp.gt.f32.partialorder %v3263_v36, 0.0  ;;  %v3279_v5 = vmul.f32 0.2, %v3263_v36 }
 0x54a   :  { %v3286_v14 = vsel %vm3270_vm11, %v3262_v11, %v3278_v13 }
 0x54b   :  { %v3287_v56 = vsel %vm3271_vm12, %v3263_v36, %v3279_v5  ;;  %v3294_v57 = vpack.c.bf16 %v3286_v14, %v3286_v14  ;;  %v5039_v5 = vld [vmem:[#allocation16 + $0x294] ss:$8 sps:$4 sm:$0xff]  }
 0x54c   :  { %4152 = vmatpush1.bf16.msra.mxu0 %v5007_v12  ;;  %v3295_v15 = vpack.c.bf16 %v3287_v56, %v3287_v56  ;;  %v5034_v12 = vld [vmem:[#allocation16 + $0x280] ss:$8 sps:$4 sm:$0xff]  }
 0x54d   :  { %4162 = vmatprep.subr.bf16.mxu0 %v5012_v63 }
 0x54e   :  { %4153 = vmatprep.mubr.bf16.mxu0 %v3295_v15  ;;  %v5037_v15 = vld [vmem:[#allocation16 + $0x290] ss:$8 sps:$4 sm:$0xff]  }
 0x54f   :  { %4154 = vmatmul.mubr.bf16.vlgmr.msra.gmra.mrb[12].mxu0 %v3294_v57  ;;  %v5042_v57 = vld [vmem:[#allocation16 + $0x2a4] ss:$8 sps:$4 sm:$0xff]  }
 0x550   :  { %4163 = vmatpush1.bf16.msra.mxu0 %v5010_v45 }
 0x551   :  { %4164 = vmatprep.subr.bf16.mxu0 %v5015_v17 }
 0x552   :  { %v2927_v47 = vpop.f32.mrb[8].mxu0 }
 0x553   :  { %v4743_v23 = vadd.f32 %v2927_v47, %v1387_v19  ;;  %v2929_v52 = vpop.f32.mrb[9].mxu0  ;;  %v5045_v47 = vld [vmem:[#allocation16 + $0x2b4] ss:$8 sps:$4 sm:$0xff]  }
 0x554   :  { %v4744_v24 = vadd.f32 %v2929_v52, %v1391_v20  ;;  %v2931_v26 = vpop.f32.mrb[10].mxu0  ;;  %4165 = vmatpush1.bf16.msra.mxu0 %v5013_v21  ;;  %v5040_v21 = vld [vmem:[#allocation16 + $0x2a0] ss:$8 sps:$4 sm:$0xff]   ;;  %v5043_v52 = vld [vmem:[#allocation16 + $0x2b0] ss:$8 sps:$4 sm:$0xff]  }
 0x555   :  { %v3040_v29 = vrot.slane %v4743_v23, 4  ;;  %v2932_v30 = vpop.f32.mrb[11].mxu0  ;;  %4166 = vmatprep.subr.bf16.mxu0 %v5018_v44  ;;  %v5046_v26 = vld [vmem:[#allocation16 + $0x2c0] ss:$8 sps:$4 sm:$0xff]  }
 0x556   :  { %v3046_v33 = vrot.slane %v4744_v24, 4  ;;  %v5049_v30 = vld [vmem:[#allocation16 + $0x2d0] ss:$8 sps:$4 sm:$0xff]  }
 0x557   :  { %v3041_v34 = vadd.f32 %v4743_v23, %v3040_v29  ;;  %v3189_v29 = vrot.slane %v5762_v18, %v5787_v3 }
 0x558   :  { %v3047_v35 = vadd.f32 %v4744_v24, %v3046_v33  ;;  %4167 = vmatpush1.bf16.msra.mxu0 %v5016_v28  ;;  %v5051_v28 = vld [vmem:[#allocation16 + $0x2d4] ss:$8 sps:$4 sm:$0xff]   ;;  %v3193_v33 = vrot.slane %v5762_v18, %v5790_v16 }
 0x559   :  { %v3042_v50 = vrot.slane %v3041_v34, 2  ;;  %4168 = vmatprep.subr.bf16.mxu0 %v5021_v32 }
 0x55a   :  { %v3048_v54 = vrot.slane %v3047_v35, 2 }
 0x55b   :  { %v3043_v22 = vadd.f32 %v3042_v50, %v3041_v34  ;;  %v5054_v34 = vld [vmem:[#allocation16 + $0x2e4] ss:$8 sps:$4 sm:$0xff]   ;;  %v3239_v50 = vrot.slane %v5764_v37, %v5787_v3 }
 0x55c   :  { %v3049_v39 = vadd.f32 %v3048_v54, %v3047_v35  ;;  %4169 = vmatpush1.bf16.msra.mxu0 %v5019_v38  ;;  %v3243_v54 = vrot.slane %v5764_v37, %v5790_v16  ;;  %v5060_v3 = vld [vmem:[#allocation16 + $0x304] ss:$8 sps:$4 sm:$0xff]  }
 0x55d   :  { %v3044_v41 = vrot.slane %v3043_v22, 1  ;;  %4170 = vmatprep.subr.bf16.mxu0 %v5024_v51 }
 0x55e   :  { %v3050_v43 = vrot.slane %v3049_v39, 1 }
 0x55f   :  { %v3045_v46 = vadd.f32 %v3044_v41, %v3043_v22  ;;  %v5057_v41 = vld [vmem:[#allocation16 + $0x2f4] ss:$8 sps:$4 sm:$0xff]  }
 0x560   :  { %v3051_v48 = vadd.f32 %v3050_v43, %v3049_v39  ;;  %4171 = vmatpush1.bf16.msra.mxu0 %v5022_v40  ;;  %v5052_v39 = vld [vmem:[#allocation16 + $0x2e0] ss:$8 sps:$4 sm:$0xff]  }
 0x561   :  { %v3068_v53 = vmul.f32 0.125, %v3045_v46  ;;  %4172 = vmatprep.subr.bf16.mxu0 %v5027_v42  ;;  %v5055_v46 = vld [vmem:[#allocation16 + $0x2f0] ss:$8 sps:$4 sm:$0xff]  }
 0x562   :  { %v3069_v58 = vmul.f32 0.125, %v3051_v48 }
 0x563   :  { %v3076_v59 = vsub.f32 %v4743_v23, %v3068_v53 }
 0x564   :  { %v3077_v25 = vsub.f32 %v4744_v24, %v3069_v58  ;;  %4173 = vmatpush1.bf16.msra.mxu0 %v5025_v49  ;;  %v5048_v24 = vld [vmem:[#allocation16 + $0x2c4] ss:$8 sps:$4 sm:$0xff]   ;;  %v5058_v58 = vld [vmem:[#allocation16 + $0x300] ss:$8 sps:$4 sm:$0xff]  }
 0x565   :  { %v3084_v27 = vmul.f32 %v3076_v59, %v3076_v59  ;;  %4174 = vmatprep.subr.bf16.mxu0 %v5030_v55 }
 0x566   :  { %v3085_v62 = vmul.f32 %v3077_v25, %v3077_v25 }
 0x567   :  { %v3112_v6 = vrot.slane %v3084_v27, 4 }
 0x568   :  { %v3118_v7 = vrot.slane %v3085_v62, 4  ;;  %4175 = vmatpush1.bf16.msra.mxu0 %v5028_v60  ;;  %v5808_v60 = vsub.s32 7, %v5631_v1 }
 0x569   :  { %v3113_v9 = vadd.f32 %v3112_v6, %v3084_v27  ;;  %4176 = vmatprep.subr.bf16.mxu0 %v5033_v61  ;;  %v5063_v27 = vld [vmem:[#allocation16 + $0x314] ss:$8 sps:$4 sm:$0xff]  }
 0x56a   :  { %v3119_v0 = vadd.f32 %v3118_v7, %v3085_v62  ;;  %v5061_v62 = vld [vmem:[#allocation16 + $0x310] ss:$8 sps:$4 sm:$0xff]   ;;  %v1399_v6 = vrot.slane %v5754_v31, %v5808_v60  ;;  %v5066_v7 = vld [vmem:[#allocation16 + $0x324] ss:$8 sps:$4 sm:$0xff]  }
 0x56b   :  { %v3114_v11 = vrot.slane %v3113_v9, 2 }
 0x56c   :  { %v3120_v36 = vrot.slane %v3119_v0, 2  ;;  %4177 = vmatpush1.bf16.msra.mxu0 %v5031_v8 }
 0x56d   :  { %v3115_v13 = vadd.f32 %v3114_v11, %v3113_v9  ;;  %4178 = vmatprep.subr.bf16.mxu0 %v5036_v10 }
 0x56e   :  { %v3121_v63 = vadd.f32 %v3120_v36, %v3119_v0  ;;  %v5064_v0 = vld [vmem:[#allocation16 + $0x320] ss:$8 sps:$4 sm:$0xff]   ;;  %v5069_v36 = vld [vmem:[#allocation16 + $0x334] ss:$8 sps:$4 sm:$0xff]  }
 0x56f   :  { %v3116_v14 = vrot.slane %v3115_v13, 1 }
 0x570   :  { %v3122_v56 = vrot.slane %v3121_v63, 1  ;;  %4179 = vmatpush1.bf16.msra.mxu0 %v5034_v12 }
 0x571   :  { %v3117_v45 = vadd.f32 %v3116_v14, %v3115_v13  ;;  %4180 = vmatprep.subr.bf16.mxu0 %v5039_v5  ;;  %v5067_v14 = vld [vmem:[#allocation16 + $0x330] ss:$8 sps:$4 sm:$0xff]  }
 0x572   :  { %v3123_v17 = vadd.f32 %v3122_v56, %v3121_v63 }
 0x573   :  { %v3140_v19 = vmul.f32 0.125, %v3117_v45 }
 0x574   :  { %v3141_v20 = vmul.f32 0.125, %v3123_v17  ;;  %4181 = vmatpush1.bf16.msra.mxu0 %v5037_v15  ;;  %v5070_v17 = vld [vmem:[#allocation16 + $0x340] ss:$8 sps:$4 sm:$0xff]  }
 0x575   :  { %v3148_v44 = vadd.f32 0.8, %v3140_v19  ;;  %4182 = vmatprep.subr.bf16.mxu0 %v5042_v57 }
 0x576   :  { %v3149_v23 = vadd.f32 0.8, %v3141_v20  ;;  %v5075_v20 = vld [vmem:[#allocation16 + $0x354] ss:$8 sps:$4 sm:$0xff]  }
 0x577   :  { %5126 = vrsqrt.f32 %v3148_v44 }
 0x578   :  { %5128 = vrsqrt.f32 %v3149_v23  ;;  %4183 = vmatpush1.bf16.msra.mxu0 %v5040_v21  ;;  %v5073_v23 = vld [vmem:[#allocation16 + $0x350] ss:$8 sps:$4 sm:$0xff]  }
 0x579   :  { %4184 = vmatprep.subr.bf16.mxu0 %v5045_v47 }
 0x57c   :  { %4185 = vmatpush1.bf16.msra.mxu0 %v5043_v52 }
 0x57d   :  { %4186 = vmatprep.subr.bf16.mxu0 %v5048_v24  ;;  %v5078_v24 = vld [vmem:[#allocation16 + $0x364] ss:$8 sps:$4 sm:$0xff]  }
 0x580   :  { %4187 = vmatpush1.bf16.msra.mxu0 %v5046_v26 }
 0x581   :  { %v5127_v32 = vpop.eup %5126  ;;  %4188 = vmatprep.subr.bf16.mxu0 %v5051_v28 }
 0x582   :  { %v5129_v35 = vpop.eup %5128  ;;  %v3164_v38 = vmul.f32 %v5127_v32, %v3076_v59  ;;  %v5805_v59 = vsub.s32 6, %v5631_v1 }
 0x583   :  { %v3165_v51 = vmul.f32 %v5129_v35, %v3077_v25 }
 0x584   :  { %v3214_v22 = vmul.f32 %v3189_v29, %v3164_v38  ;;  %4189 = vmatpush1.bf16.msra.mxu0 %v5049_v30  ;;  %v1395_v61 = vrot.slane %v5754_v31, %v5805_v59  ;;  %v5072_v31 = vld [vmem:[#allocation16 + $0x344] ss:$8 sps:$4 sm:$0xff]   ;;  %v5076_v30 = vld [vmem:[#allocation16 + $0x360] ss:$8 sps:$4 sm:$0xff]  }
 0x585   :  { %v3215_v40 = vmul.f32 %v3193_v33, %v3165_v51  ;;  %4190 = vmatprep.subr.bf16.mxu0 %v5054_v34  ;;  %v5081_v33 = vld [vmem:[#allocation16 + $0x374] ss:$8 sps:$4 sm:$0xff]  }
 0x586   :  { %v3264_v42 = vadd.f32 %v3239_v50, %v3214_v22  ;;  %v5079_v50 = vld [vmem:[#allocation16 + $0x370] ss:$8 sps:$4 sm:$0xff]  }
 0x587   :  { %v3265_v43 = vadd.f32 %v3243_v54, %v3215_v40  ;;  %v5084_v54 = vld [vmem:[#allocation16 + $0x384] ss:$8 sps:$4 sm:$0xff]  }
 0x588   :  { %4191 = vmatpush1.bf16.msra.mxu0 %v5052_v39  ;;  %vm3272_vm13 = vcmp.gt.f32.partialorder %v3264_v42, 0.0  ;;  %v3280_v48 = vmul.f32 0.2, %v3264_v42 }
 0x589   :  { %4192 = vmatprep.subr.bf16.mxu0 %v5057_v41  ;;  %vm3273_vm14 = vcmp.gt.f32.partialorder %v3265_v43, 0.0  ;;  %v3281_v49 = vmul.f32 0.2, %v3265_v43  ;;  %v5082_v41 = vld [vmem:[#allocation16 + $0x380] ss:$8 sps:$4 sm:$0xff]  }
 0x58a   :  { %v3288_v53 = vsel %vm3272_vm13, %v3264_v42, %v3280_v48 }
 0x58b   :  { %v3289_v55 = vsel %vm3273_vm14, %v3265_v43, %v3281_v49  ;;  %v3296_v25 = vpack.c.bf16 %v3288_v53, %v3288_v53  ;;  %v5087_v43 = vld [vmem:[#allocation16 + $0x394] ss:$8 sps:$4 sm:$0xff]  }
 0x58c   :  { %4193 = vmatpush1.bf16.msra.mxu0 %v5055_v46  ;;  %v3297_v16 = vpack.c.bf16 %v3289_v55, %v3289_v55  ;;  %v5090_v55 = vld [vmem:[#allocation16 + $0x3a4] ss:$8 sps:$4 sm:$0xff]  }
 0x58d   :  { %4203 = vmatprep.subr.bf16.mxu0 %v5060_v3  ;;  %v5085_v3 = vld [vmem:[#allocation16 + $0x390] ss:$8 sps:$4 sm:$0xff]  }
 0x58e   :  { %4194 = vmatprep.mubr.bf16.mxu0 %v3297_v16 }
 0x58f   :  { %4195 = vmatmul.mubr.bf16.vlgmr.msra.gmra.mrb[12].mxu0 %v3296_v25 }
 0x590   :  { %4204 = vmatpush1.bf16.msra.mxu0 %v5058_v58 }
 0x591   :  { %4205 = vmatprep.subr.bf16.mxu0 %v5063_v27  ;;  %v5088_v27 = vld [vmem:[#allocation16 + $0x3a0] ss:$8 sps:$4 sm:$0xff]  }
 0x593   :  { %v3009_v8 = vpop.f32.mrb[20].mxu1 }
 0x594   :  { %v4745_v9 = vadd.f32 %v3009_v8, %v1395_v61  ;;  %v3011_v10 = vpop.f32.mrb[21].mxu1  ;;  %4206 = vmatpush1.bf16.msra.mxu0 %v5061_v62  ;;  %v5093_v62 = vld [vmem:[#allocation16 + $0x3b4] ss:$8 sps:$4 sm:$0xff]   ;;  %v5091_v8 = vld [vmem:[#allocation16 + $0x3b0] ss:$8 sps:$4 sm:$0xff]  }
 0x595   :  { %v4746_v1 = vadd.f32 %v3011_v10, %v1399_v6  ;;  %v3013_v11 = vpop.f32.mrb[22].mxu1  ;;  %4207 = vmatprep.subr.bf16.mxu0 %v5066_v7  ;;  %v5094_v10 = vld [vmem:[#allocation16 + $0x3c0] ss:$8 sps:$4 sm:$0xff]  }
 0x596   :  { %v3052_v12 = vrot.slane %v4745_v9, 4  ;;  %v3014_v13 = vpop.f32.mrb[23].mxu1  ;;  %v3197_v11 = vrot.slane %v5762_v18, %v5805_v59 }
 0x597   :  { %v3058_v5 = vrot.slane %v4746_v1, 4  ;;  %v3201_v13 = vrot.slane %v5762_v18, %v5808_v60 }
 0x598   :  { %v3053_v63 = vadd.f32 %v4745_v9, %v3052_v12  ;;  %4208 = vmatpush1.bf16.msra.mxu0 %v5064_v0  ;;  %v5099_v0 = vld [vmem:[#allocation16 + $0x3d4] ss:$8 sps:$4 sm:$0xff]  }
 0x599   :  { %v3059_v56 = vadd.f32 %v4746_v1, %v3058_v5  ;;  %4209 = vmatprep.subr.bf16.mxu0 %v5069_v36  ;;  %v5102_v36 = vld [vmem:[#allocation16 + $0x3e4] ss:$8 sps:$4 sm:$0xff]  }
 0x59a   :  { %v3054_v15 = vrot.slane %v3053_v63, 2 }
 0x59b   :  { %v3060_v45 = vrot.slane %v3059_v56, 2 }
 0x59c   :  { %v3055_v57 = vadd.f32 %v3054_v15, %v3053_v63  ;;  %4210 = vmatpush1.bf16.msra.mxu0 %v5067_v14  ;;  %v3247_v14 = vrot.slane %v5764_v37, %v5805_v59  ;;  %v3251_v15 = vrot.slane %v5764_v37, %v5808_v60  ;;  %v3428_v37 = vld [vmem:[%s5849_s16] sm:$0x3] }
 0x59d   :  { %v3061_v19 = vadd.f32 %v3060_v45, %v3059_v56  ;;  %4211 = vmatprep.subr.bf16.mxu0 %v5072_v31  ;;  %v5100_v31 = vld [vmem:[#allocation16 + $0x3e0] ss:$8 sps:$4 sm:$0xff]   ;;  %v3433_v60 = vrot.slane %v3428_v37, %v5634_v2 }
 0x59e   :  { %v3056_v21 = vrot.slane %v3055_v57, 1 }
 0x59f   :  { %v3062_v44 = vrot.slane %v3061_v19, 1 }
 0x5a0   :  { %v3057_v47 = vadd.f32 %v3056_v21, %v3055_v57  ;;  %4212 = vmatpush1.bf16.msra.mxu0 %v5070_v17  ;;  %v5105_v57 = vld [vmem:[#allocation16 + $0x3f4] ss:$8 sps:$4 sm:$0xff]  }
 0x5a1   :  { %v3063_v52 = vadd.f32 %v3062_v44, %v3061_v19  ;;  %4213 = vmatprep.subr.bf16.mxu0 %v5075_v20  ;;  %v5103_v20 = vld [vmem:[#allocation16 + $0x3f0] ss:$8 sps:$4 sm:$0xff]  }
 0x5a2   :  { %v3070_v26 = vmul.f32 0.125, %v3057_v47 }
 0x5a3   :  { %v3071_v28 = vmul.f32 0.125, %v3063_v52 }
 0x5a4   :  { %v3078_v29 = vsub.f32 %v4745_v9, %v3070_v26  ;;  %4214 = vmatpush1.bf16.msra.mxu0 %v5073_v23  ;;  %v5096_v9 = vld [vmem:[#allocation16 + $0x3c4] ss:$8 sps:$4 sm:$0xff]  }
 0x5a5   :  { %v3079_v32 = vsub.f32 %v4746_v1, %v3071_v28  ;;  %4215 = vmatprep.subr.bf16.mxu0 %v5078_v24  ;;  %v5097_v1 = vld [vmem:[#allocation16 + $0x3d0] ss:$8 sps:$4 sm:$0xff]   ;;  %v3437_v24 = vrot.slane %v3428_v37, %v5640_v4 }
 0x5a6   :  { %v3086_v34 = vmul.f32 %v3078_v29, %v3078_v29 }
 0x5a7   :  { %v3087_v35 = vmul.f32 %v3079_v32, %v3079_v32 }
 0x5a8   :  { %v3124_v38 = vrot.slane %v3086_v34, 4  ;;  %4216 = vmatpush1.bf16.msra.mxu0 %v5076_v30 }
 0x5a9   :  { %v3130_v51 = vrot.slane %v3087_v35, 4  ;;  %4217 = vmatprep.subr.bf16.mxu0 %v5081_v33 }
 0x5aa   :  { %v3125_v22 = vadd.f32 %v3124_v38, %v3086_v34 }
 0x5ab   :  { %v3131_v39 = vadd.f32 %v3130_v51, %v3087_v35 }
 0x5ac   :  { %v3126_v40 = vrot.slane %v3125_v22, 2  ;;  %4218 = vmatpush1.bf16.msra.mxu0 %v5079_v50 }
 0x5ad   :  { %v3132_v42 = vrot.slane %v3131_v39, 2  ;;  %4219 = vmatprep.subr.bf16.mxu0 %v5084_v54 }
 0x5ae   :  { %v3127_v46 = vadd.f32 %v3126_v40, %v3125_v22 }
 0x5af   :  { %v3133_v48 = vadd.f32 %v3132_v42, %v3131_v39 }
 0x5b0   :  { %v3128_v49 = vrot.slane %v3127_v46, 1  ;;  %4220 = vmatpush1.bf16.msra.mxu0 %v5082_v41 }
 0x5b1   :  { %v3134_v53 = vrot.slane %v3133_v48, 1  ;;  %4221 = vmatprep.subr.bf16.mxu0 %v5087_v43 }
 0x5b2   :  { %v3129_v16 = vadd.f32 %v3128_v49, %v3127_v46 }
 0x5b3   :  { %v3135_v58 = vadd.f32 %v3134_v53, %v3133_v48 }
 0x5b4   :  { %v3142_v25 = vmul.f32 0.125, %v3129_v16  ;;  %4222 = vmatpush1.bf16.msra.mxu0 %v5085_v3 }
 0x5b5   :  { %v3143_v61 = vmul.f32 0.125, %v3135_v58  ;;  %4223 = vmatprep.subr.bf16.mxu0 %v5090_v55 }
 0x5b6   :  { %v3150_v6 = vadd.f32 0.8, %v3142_v25 }
 0x5b7   :  { %v3151_v7 = vadd.f32 0.8, %v3143_v61 }
 0x5b8   :  { %5130 = vrsqrt.f32 %v3150_v6  ;;  %4224 = vmatpush1.bf16.msra.mxu0 %v5088_v27 }
 0x5b9   :  { %5132 = vrsqrt.f32 %v3151_v7  ;;  %4225 = vmatprep.subr.bf16.mxu0 %v5093_v62 }
 0x5bc   :  { %4226 = vmatpush1.bf16.msra.mxu0 %v5091_v8 }
 0x5bd   :  { %4227 = vmatprep.subr.bf16.mxu0 %v5096_v9 }
 0x5c0   :  { %4228 = vmatpush1.bf16.msra.mxu0 %v5094_v10 }
 0x5c1   :  { %4229 = vmatprep.subr.bf16.mxu0 %v5099_v0 }
 0x5c2   :  { %v5131_v12 = vpop.eup %5130 }
 0x5c3   :  { %v5133_v5 = vpop.eup %5132  ;;  %v3166_v63 = vmul.f32 %v5131_v12, %v3078_v29 }
 0x5c4   :  { %v3167_v56 = vmul.f32 %v5133_v5, %v3079_v32  ;;  %4230 = vmatpush1.bf16.msra.mxu0 %v5097_v1 }
 0x5c5   :  { %v3216_v45 = vmul.f32 %v3197_v11, %v3166_v63  ;;  %4231 = vmatprep.subr.bf16.mxu0 %v5102_v36 }
 0x5c6   :  { %v3217_v17 = vmul.f32 %v3201_v13, %v3167_v56 }
 0x5c7   :  { %v3266_v19 = vadd.f32 %v3247_v14, %v3216_v45 }
 0x5c8   :  { %4232 = vmatpush1.bf16.msra.mxu0 %v5100_v31  ;;  %v3267_v21 = vadd.f32 %v3251_v15, %v3217_v17 }
 0x5c9   :  { %4233 = vmatprep.subr.bf16.mxu0 %v5105_v57  ;;  %vm3274_vm15 = vcmp.gt.f32.partialorder %v3266_v19, 0.0  ;;  %v3282_v18 = vmul.f32 0.2, %v3266_v19 }
 0x5ca   :  { %vm3275_vm0 = vcmp.gt.f32.partialorder %v3267_v21, 0.0  ;;  %v3283_v44 = vmul.f32 0.2, %v3267_v21 }
 0x5cb   :  { %v3290_v59 = vsel %vm3274_vm15, %v3266_v19, %v3282_v18 }
 0x5cc   :  { %4234 = vmatpush1.bf16.msra.mxu0 %v5103_v20  ;;  %v3291_v47 = vsel %vm3275_vm0, %v3267_v21, %v3283_v44  ;;  %v3298_v52 = vpack.c.bf16 %v3290_v59, %v3290_v59 }
 0x5cd   :  { %v3299_v23 = vpack.c.bf16 %v3291_v47, %v3291_v47 }
 0x5cf   :  { %4235 = vmatprep.mubr.bf16.mxu0 %v3299_v23 }
 0x5d0   :  { %4236 = vmatmul.mubr.bf16.vlgmr.msra.gmra.mrb[12].mxu0 %v3298_v52 }
 0x6a3   :  { %v4237_v26 = vpop.f32.mrb[12].mxu0 }
 0x6a4   :  { %v4747_v28 = vadd.f32 %v4237_v26, %v3433_v60  ;;  %v4239_v29 = vpop.f32.mrb[13].mxu0 }
 0x6a5   :  { %v4748_v30 = vadd.f32 %v4239_v29, %v3437_v24  ;;  %v4241_v32 = vpop.f32.mrb[14].mxu0 }
 0x6a6   :  { %5134 = vtanh.f32 %v4747_v28  ;;  %v4242_v33 = vpop.f32.mrb[15].mxu0 }
 0x6a7   :  { %5136 = vtanh.f32 %v4748_v30 }
 0x6b0   :  { %v5135_v34 = vpop.eup %5134 }
 0x6b1   :  { %v5137_v35 = vpop.eup %5136  ;;  %4246 = vst [vmem:[%s5850_s17] sm:$0xff] %v5135_v34 }
 0x6b2   :  { %4247 = vst [vmem:[%s5850_s17 + $0x8] sm:$0xff] %v5137_v35 }
 0x6b3   :  { %4252 = vsyncpa [#allocation3], 1 }
 0x6b4   :  { %4253 = vsyncpa [#allocation5], 1 }
 0x6b5   :  { %4254 = vsyncpa [#allocation8], 1 }
 0x6b6   :  { %4255 = vsyncpa [#allocation11], 1 }
 0x6b7   :  { %4256 = vsyncpa [#allocation14], 1 }
 0x6b8   :  { %4257 = vsyncpa [#allocation17], 1 }

</bundles_post_ra>
